<compile_context>
chip_gen: v7x
topology: tpu7x:2x2x1
jax: 0.10.0
libtpu: 0.0.40
codegen_flags: <defaults>
</compile_context>

<pallas_src>
import jax
import jax.numpy as jnp
from jax import lax
from jax.experimental import pallas as pl
from jax.experimental.pallas import tpu as pltpu

MXU_DTYPE = jnp.float32  # set to jnp.bfloat16 on v6e/v7x to halve matmul DMA bytes
TILE_M = 512             # rows per grid step at large batch (use ~256 on v7x: 64 MiB VMEM,
                         # or raise vmem_limit_bytes via pltpu.CompilerParams)


# ---------------------------------------------------------------------------
# Pallas kernels
# ---------------------------------------------------------------------------
def _conv_relu_pool_kernel(p00_ref, p01_ref, p10_ref, p11_ref, w_ref, b_ref, o_ref):
    """Fused conv (im2col matmul) + bias + ReLU + 2x2 max-pool epilogue.

    p??_ref : (tm, Kf)   im2col patches for one of the four 2x2-pool offsets
    w_ref   : (Kf, Cout)  flattened conv weights, feature order (ky, kx, c)
    b_ref   : (1, Cout)
    o_ref   : (tm, Cout)  pooled output rows (b, hp, wp)
    """
    w = w_ref[...]
    b = b_ref[...]

    def branch(p_ref):
        y = jnp.dot(p_ref[...], w, preferred_element_type=jnp.float32)
        return jnp.maximum(y + b, 0.0)          # f32 epilogue (VPU-friendly on v5e)

    o_ref[...] = jnp.maximum(
        jnp.maximum(branch(p00_ref), branch(p01_ref)),
        jnp.maximum(branch(p10_ref), branch(p11_ref)),
    ).astype(o_ref.dtype)


def _mlp_kernel(x_ref, w1_ref, b1_ref, w2_ref, b2_ref, w3_ref, b3_ref, o_ref):
    """Fused fc1+ReLU -> fc2+ReLU -> fc3; intermediates never leave VMEM."""
    h = jnp.dot(x_ref[...], w1_ref[...], preferred_element_type=jnp.float32)
    h = jnp.maximum(h + b1_ref[...], 0.0)
    h = jnp.dot(h.astype(w2_ref.dtype), w2_ref[...], preferred_element_type=jnp.float32)
    h = jnp.maximum(h + b2_ref[...], 0.0)
    o = jnp.dot(h.astype(w3_ref.dtype), w3_ref[...], preferred_element_type=jnp.float32)
    o_ref[...] = (o + b3_ref[...]).astype(o_ref.dtype)


# ---------------------------------------------------------------------------
# Wrappers (glue kept to layout plumbing only)
# ---------------------------------------------------------------------------
def _row_tile(m, tile):
    """Full block for small problems; 8-aligned tile for large ones."""
    return m if m <= tile else tile


def conv_relu_pool_pallas(x_nhwc, wm, b_row, *, K, tile_m=TILE_M):
    """VALID conv (stride 1) + bias + ReLU + 2x2/2 max-pool, fused in one kernel."""
    x = x_nhwc.astype(wm.dtype)
    B, H, W, C = x.shape
    Ho, Wo = H - K + 1, W - K + 1          # even for this network (28, 10)
    Hp, Wp = Ho // 2, Wo // 2
    Kf = K * K * C
    Cout = wm.shape[1]

    # im2col glue: 25 shifted views + one concat; feature order (ky, kx, c).
    cols = [x[:, ky:ky + Ho, kx:kx + Wo, :] for ky in range(K) for kx in range(K)]
    patches = jnp.concatenate(cols, axis=-1)                    # (B, Ho, Wo, Kf)
    # One patch matrix per 2x2-pool offset so the pool runs inside the kernel.
    offs = [patches[:, py::2, px::2, :].reshape(B * Hp * Wp, Kf)
            for py in range(2) for px in range(2)]

    Mq = B * Hp * Wp
    tm = _row_tile(Mq, tile_m)
    patch_spec = pl.BlockSpec((tm, Kf), lambda i: (i, 0))

    out = pl.pallas_call(
        _conv_relu_pool_kernel,
        out_shape=jax.ShapeDtypeStruct((Mq, Cout), jnp.float32),
        grid_spec=pltpu.PrefetchScalarGridSpec(
            num_scalar_prefetch=0,
            grid=(pl.cdiv(Mq, tm),),
            in_specs=[patch_spec] * 4 + [
                pl.BlockSpec((Kf, Cout), lambda i: (0, 0)),
                pl.BlockSpec((1, Cout), lambda i: (0, 0)),
            ],
            out_specs=pl.BlockSpec((tm, Cout), lambda i: (i, 0)),
        ),
        compiler_params=pltpu.CompilerParams(
            dimension_semantics=("parallel",)),   # shards rows over v7x's 2 TCs
    )(*offs, wm, b_row)
    return out.reshape(B, Hp, Wp, Cout)           # contiguous (free) reshape in XLA


def mlp_pallas(x, w1, b1, w2, b2, w3, b3, *, tile_b=TILE_M):
    """Single fused kernel for fc1+ReLU -> fc2+ReLU -> fc3."""
    B, D = x.shape
    N1, N2, N3 = w1.shape[1], w2.shape[1], w3.shape[1]
    tb = _row_tile(B, tile_b)

    def const(shape):
        return pl.BlockSpec(shape, lambda i: (0, 0))

    return pl.pallas_call(
        _mlp_kernel,
        out_shape=jax.ShapeDtypeStruct((B, N3), jnp.float32),
        grid_spec=pltpu.PrefetchScalarGridSpec(
            num_scalar_prefetch=0,
            grid=(pl.cdiv(B, tb),),
            in_specs=[pl.BlockSpec((tb, D), lambda i: (i, 0)),
                      const((D, N1)), const((1, N1)),
                      const((N1, N2)), const((1, N2)),
                      const((N2, N3)), const((1, N3))],
            out_specs=pl.BlockSpec((tb, N3), lambda i: (i, 0)),
        ),
        compiler_params=pltpu.CompilerParams(
            dimension_semantics=("parallel",)),
    )(x.astype(w1.dtype), w1, b1, w2, b2, w3, b3)


# ---------------------------------------------------------------------------
# One-time parameter staging (outside the hot path)
# ---------------------------------------------------------------------------
def prepare_params(params, mxu_dtype=MXU_DTYPE):
    """Conv weights -> (K*K*Cin, Cout) matrices in (ky,kx,c) feature order,
    fc1 columns permuted from (C,H,W) to (H,W,C) flatten order, all matmul
    operands pre-cast, biases as (1, N) rows."""
    (w1, b1, w2, b2, fw1, fb1, fw2, fb2, fw3, fb3) = params

    def conv_w(w):
        Cout, Cin, K, _ = w.shape
        return jnp.transpose(w, (2, 3, 1, 0)).reshape(K * K * Cin, Cout).astype(mxu_dtype)

    def row(b):
        return b.reshape(1, -1).astype(jnp.float32)

    # fc1 expects PyTorch (C,H,W) flatten; our pooled activations are (H,W,C).
    C2, Hp, Wp = 16, 5, 5
    fw1_hwc = fw1.reshape(-1, C2, Hp, Wp).transpose(0, 2, 3, 1).reshape(fw1.shape[0], -1)

    return dict(
        cw1=conv_w(w1), cb1=row(b1),
        cw2=conv_w(w2), cb2=row(b2),
        fw1=fw1_hwc.T.astype(mxu_dtype), fb1=row(fb1),
        fw2=fw2.T.astype(mxu_dtype), fb2=row(fb2),
        fw3=fw3.T.astype(mxu_dtype), fb3=row(fb3),
    )


# ---------------------------------------------------------------------------
# Full forward pass (equivalent to Net.forward)
# ---------------------------------------------------------------------------
def net_forward(x_nchw, pp):
    B = x_nchw.shape[0]
    x = jnp.transpose(x_nchw, (0, 2, 3, 1))                      # NCHW -> NHWC glue
    x = conv_relu_pool_pallas(x, pp["cw1"], pp["cb1"], K=5)      # (B,14,14,6)
    x = conv_relu_pool_pallas(x, pp["cw2"], pp["cb2"], K=5)      # (B,5,5,16)
    flat = x.reshape(B, -1)                                      # (B,400), (h,w,c) order
    return mlp_pallas(flat, pp["fw1"], pp["fb1"], pp["fw2"], pp["fb2"],
                      pp["fw3"], pp["fb3"])


# ---------------------------------------------------------------------------
# Pure-JAX reference (for correctness check) — uses the raw PyTorch-layout params
# ---------------------------------------------------------------------------
def reference_forward(x_nchw, params):
    (w1, b1, w2, b2, fw1, fb1, fw2, fb2, fw3, fb3) = params

    def conv(x, w, b):
        y = lax.conv_general_dilated(
            x, w, window_strides=(1, 1), padding="VALID",
            dimension_numbers=("NCHW", "OIHW", "NCHW"))
        return jax.nn.relu(y + b[None, :, None, None])

    def pool(x):
        return lax.reduce_window(x, -jnp.inf, lax.max,
                                 (1, 1, 2, 2), (1, 1, 2, 2), "VALID")

    x = pool(conv(x_nchw, w1, b1))
    x = pool(conv(x, w2, b2))
    x = x.reshape(x.shape[0], -1)
    x = jax.nn.relu(x @ fw1.T + fb1)
    x = jax.nn.relu(x @ fw2.T + fb2)
    return x @ fw3.T + fb3


# ---------------------------------------------------------------------------
# Deterministic parameter init (shapes from Net.__init__)
# ---------------------------------------------------------------------------
def init_params(key):
    ks = jax.random.split(key, 10)
    f32 = jnp.float32
    w1 = jax.random.normal(ks[0], (6, 3, 5, 5), f32) * 0.1
    b1 = jax.random.normal(ks[1], (6,), f32) * 0.1
    w2 = jax.random.normal(ks[2], (16, 6, 5, 5), f32) * 0.1
    b2 = jax.random.normal(ks[3], (16,), f32) * 0.1
    fw1 = jax.random.normal(ks[4], (120, 400), f32) * 0.05
    fb1 = jax.random.normal(ks[5], (120,), f32) * 0.05
    fw2 = jax.random.normal(ks[6], (84, 120), f32) * 0.05
    fb2 = jax.random.normal(ks[7], (84,), f32) * 0.05
    fw3 = jax.random.normal(ks[8], (10, 84), f32) * 0.05
    fb3 = jax.random.normal(ks[9], (10,), f32) * 0.05
    return (w1, b1, w2, b2, fw1, fb1, fw2, fb2, fw3, fb3)


if __name__ == "__main__":
    key = jax.random.PRNGKey(0)
    kp, kx = jax.random.split(key)
    params = init_params(kp)
    pp = prepare_params(params)     # one-time weight staging, outside the hot path

    # Net's Linear(16*5*5, 120) pins the spatial size to 32x32 (CIFAR-10); batch 2.
    x = jax.random.normal(kx, (2, 3, 32, 32), jnp.float32)

    fwd = jax.jit(net_forward)
    out = jax.block_until_ready(fwd(x, pp))

    ref = reference_forward(x, params)
    assert out.shape == (2, 10), out.shape
    tol = 1e-3 if MXU_DTYPE == jnp.float32 else 2e-2
    assert jnp.allclose(out, ref, rtol=tol, atol=tol), (
        "mismatch vs reference: max abs err "
        f"{float(jnp.max(jnp.abs(out - ref)))}")

    print("KERNEL_OK")
</pallas_src>

<mosaic_0001>
module attributes {stable_mosaic.version = 11 : i64} {
  func.func @_conv_relu_pool_kernel(%arg0: i32, %arg1: memref<392x75xf32, #tpu.memory_space<vmem>>, %arg2: memref<392x75xf32, #tpu.memory_space<vmem>>, %arg3: memref<392x75xf32, #tpu.memory_space<vmem>>, %arg4: memref<392x75xf32, #tpu.memory_space<vmem>>, %arg5: memref<75x6xf32, #tpu.memory_space<vmem>>, %arg6: memref<1x6xf32, #tpu.memory_space<vmem>>, %arg7: memref<392x6xf32, #tpu.memory_space<vmem>>) attributes {dimension_semantics = [#tpu.dimension_semantics<parallel>], iteration_bounds = array<i64: 1>, scalar_prefetch = 0 : i64, scratch_operands = 0 : i64, tpu.core_type = #tpu.core_type<tc>, window_params = [{transform_indices = @transform_0, window_bounds = array<i64: 392, 75>}, {transform_indices = @transform_1, window_bounds = array<i64: 392, 75>}, {transform_indices = @transform_2, window_bounds = array<i64: 392, 75>}, {transform_indices = @transform_3, window_bounds = array<i64: 392, 75>}, {pipeline_mode = #tpu.pipeline_mode<synchronous>, transform_indices = @transform_4, window_bounds = array<i64: 75, 6>}, {pipeline_mode = #tpu.pipeline_mode<synchronous>, transform_indices = @transform_5, window_bounds = array<i64: 1, 6>}, {transform_indices = @transform_6, window_bounds = array<i64: 392, 6>}]} {
    %c0 = arith.constant 0 : index
    %c0_0 = arith.constant 0 : index
    %0 = vector.load %arg5[%c0, %c0_0] : memref<75x6xf32, #tpu.memory_space<vmem>>, vector<75x6xf32>
    %c0_1 = arith.constant 0 : index
    %c0_2 = arith.constant 0 : index
    %1 = vector.load %arg6[%c0_1, %c0_2] : memref<1x6xf32, #tpu.memory_space<vmem>>, vector<1x6xf32>
    %c0_3 = arith.constant 0 : index
    %c0_4 = arith.constant 0 : index
    %2 = vector.load %arg1[%c0_3, %c0_4] : memref<392x75xf32, #tpu.memory_space<vmem>>, vector<392x75xf32>
    %cst = arith.constant dense<0.000000e+00> : vector<392x6xf32>
    %3 = tpu.matmul %2, %0, %cst {dimension_numbers = #tpu.dot_dimension_numbers<[1], [0], [0], [1], [0, 0, 1, 1], [], []>} : vector<392x75xf32>, vector<75x6xf32>, vector<392x6xf32> -> vector<392x6xf32>
    %4 = vector.broadcast %1 : vector<1x6xf32> to vector<392x6xf32>
    %5 = arith.addf %3, %4 : vector<392x6xf32>
    %cst_5 = arith.constant 0.000000e+00 : f32
    %6 = vector.broadcast %cst_5 : f32 to vector<392x6xf32>
    %7 = arith.maximumf %5, %6 : vector<392x6xf32>
    %c0_6 = arith.constant 0 : index
    %c0_7 = arith.constant 0 : index
    %8 = vector.load %arg2[%c0_6, %c0_7] : memref<392x75xf32, #tpu.memory_space<vmem>>, vector<392x75xf32>
    %cst_8 = arith.constant dense<0.000000e+00> : vector<392x6xf32>
    %9 = tpu.matmul %8, %0, %cst_8 {dimension_numbers = #tpu.dot_dimension_numbers<[1], [0], [0], [1], [0, 0, 1, 1], [], []>} : vector<392x75xf32>, vector<75x6xf32>, vector<392x6xf32> -> vector<392x6xf32>
    %10 = vector.broadcast %1 : vector<1x6xf32> to vector<392x6xf32>
    %11 = arith.addf %9, %10 : vector<392x6xf32>
    %cst_9 = arith.constant 0.000000e+00 : f32
    %12 = vector.broadcast %cst_9 : f32 to vector<392x6xf32>
    %13 = arith.maximumf %11, %12 : vector<392x6xf32>
    %14 = arith.maximumf %7, %13 : vector<392x6xf32>
    %c0_10 = arith.constant 0 : index
    %c0_11 = arith.constant 0 : index
    %15 = vector.load %arg3[%c0_10, %c0_11] : memref<392x75xf32, #tpu.memory_space<vmem>>, vector<392x75xf32>
    %cst_12 = arith.constant dense<0.000000e+00> : vector<392x6xf32>
    %16 = tpu.matmul %15, %0, %cst_12 {dimension_numbers = #tpu.dot_dimension_numbers<[1], [0], [0], [1], [0, 0, 1, 1], [], []>} : vector<392x75xf32>, vector<75x6xf32>, vector<392x6xf32> -> vector<392x6xf32>
    %17 = vector.broadcast %1 : vector<1x6xf32> to vector<392x6xf32>
    %18 = arith.addf %16, %17 : vector<392x6xf32>
    %cst_13 = arith.constant 0.000000e+00 : f32
    %19 = vector.broadcast %cst_13 : f32 to vector<392x6xf32>
    %20 = arith.maximumf %18, %19 : vector<392x6xf32>
    %c0_14 = arith.constant 0 : index
    %c0_15 = arith.constant 0 : index
    %21 = vector.load %arg4[%c0_14, %c0_15] : memref<392x75xf32, #tpu.memory_space<vmem>>, vector<392x75xf32>
    %cst_16 = arith.constant dense<0.000000e+00> : vector<392x6xf32>
    %22 = tpu.matmul %21, %0, %cst_16 {dimension_numbers = #tpu.dot_dimension_numbers<[1], [0], [0], [1], [0, 0, 1, 1], [], []>} : vector<392x75xf32>, vector<75x6xf32>, vector<392x6xf32> -> vector<392x6xf32>
    %23 = vector.broadcast %1 : vector<1x6xf32> to vector<392x6xf32>
    %24 = arith.addf %22, %23 : vector<392x6xf32>
    %cst_17 = arith.constant 0.000000e+00 : f32
    %25 = vector.broadcast %cst_17 : f32 to vector<392x6xf32>
    %26 = arith.maximumf %24, %25 : vector<392x6xf32>
    %27 = arith.maximumf %20, %26 : vector<392x6xf32>
    %28 = arith.maximumf %14, %27 : vector<392x6xf32>
    %c0_18 = arith.constant 0 : index
    %c0_19 = arith.constant 0 : index
    %29 = vector.load %arg7[%c0_18, %c0_19] : memref<392x6xf32, #tpu.memory_space<vmem>>, vector<392x6xf32>
    tpu.vector_store %arg7[%c0_18, %c0_19], %28 {strides = array<i32>} : memref<392x6xf32, #tpu.memory_space<vmem>>, vector<392x6xf32>,
    return
  }
  func.func @transform_0(%arg0: i32) -> (i32, i32) {
    %c0_i32 = arith.constant 0 : i32
    %c0_i32_0 = arith.constant 0 : i32
    return %arg0, %c0_i32 : i32, i32
  }
  func.func @transform_1(%arg0: i32) -> (i32, i32) {
    %c0_i32 = arith.constant 0 : i32
    %c0_i32_0 = arith.constant 0 : i32
    return %arg0, %c0_i32 : i32, i32
  }
  func.func @transform_2(%arg0: i32) -> (i32, i32) {
    %c0_i32 = arith.constant 0 : i32
    %c0_i32_0 = arith.constant 0 : i32
    return %arg0, %c0_i32 : i32, i32
  }
  func.func @transform_3(%arg0: i32) -> (i32, i32) {
    %c0_i32 = arith.constant 0 : i32
    %c0_i32_0 = arith.constant 0 : i32
    return %arg0, %c0_i32 : i32, i32
  }
  func.func @transform_4(%arg0: i32) -> (i32, i32) {
    %c0_i32 = arith.constant 0 : i32
    %c0_i32_0 = arith.constant 0 : i32
    %c0_i32_1 = arith.constant 0 : i32
    return %c0_i32, %c0_i32_0 : i32, i32
  }
  func.func @transform_5(%arg0: i32) -> (i32, i32) {
    %c0_i32 = arith.constant 0 : i32
    %c0_i32_0 = arith.constant 0 : i32
    %c0_i32_1 = arith.constant 0 : i32
    return %c0_i32, %c0_i32_0 : i32, i32
  }
  func.func @transform_6(%arg0: i32) -> (i32, i32) {
    %c0_i32 = arith.constant 0 : i32
    %c0_i32_0 = arith.constant 0 : i32
    return %arg0, %c0_i32 : i32, i32
  }
}

module attributes {stable_mosaic.version = 11 : i64} {
  func.func @_conv_relu_pool_kernel(%arg0: i32, %arg1: memref<50x150xf32, #tpu.memory_space<vmem>>, %arg2: memref<50x150xf32, #tpu.memory_space<vmem>>, %arg3: memref<50x150xf32, #tpu.memory_space<vmem>>, %arg4: memref<50x150xf32, #tpu.memory_space<vmem>>, %arg5: memref<150x16xf32, #tpu.memory_space<vmem>>, %arg6: memref<1x16xf32, #tpu.memory_space<vmem>>, %arg7: memref<50x16xf32, #tpu.memory_space<vmem>>) attributes {dimension_semantics = [#tpu.dimension_semantics<parallel>], iteration_bounds = array<i64: 1>, scalar_prefetch = 0 : i64, scratch_operands = 0 : i64, tpu.core_type = #tpu.core_type<tc>, window_params = [{transform_indices = @transform_0, window_bounds = array<i64: 50, 150>}, {transform_indices = @transform_1, window_bounds = array<i64: 50, 150>}, {transform_indices = @transform_2, window_bounds = array<i64: 50, 150>}, {transform_indices = @transform_3, window_bounds = array<i64: 50, 150>}, {pipeline_mode = #tpu.pipeline_mode<synchronous>, transform_indices = @transform_4, window_bounds = array<i64: 150, 16>}, {pipeline_mode = #tpu.pipeline_mode<synchronous>, transform_indices = @transform_5, window_bounds = array<i64: 1, 16>}, {transform_indices = @transform_6, window_bounds = array<i64: 50, 16>}]} {
    %c0 = arith.constant 0 : index
    %c0_0 = arith.constant 0 : index
    %0 = vector.load %arg5[%c0, %c0_0] : memref<150x16xf32, #tpu.memory_space<vmem>>, vector<150x16xf32>
    %c0_1 = arith.constant 0 : index
    %c0_2 = arith.constant 0 : index
    %1 = vector.load %arg6[%c0_1, %c0_2] : memref<1x16xf32, #tpu.memory_space<vmem>>, vector<1x16xf32>
    %c0_3 = arith.constant 0 : index
    %c0_4 = arith.constant 0 : index
    %2 = vector.load %arg1[%c0_3, %c0_4] : memref<50x150xf32, #tpu.memory_space<vmem>>, vector<50x150xf32>
    %cst = arith.constant dense<0.000000e+00> : vector<50x16xf32>
    %3 = tpu.matmul %2, %0, %cst {dimension_numbers = #tpu.dot_dimension_numbers<[1], [0], [0], [1], [0, 0, 1, 1], [], []>} : vector<50x150xf32>, vector<150x16xf32>, vector<50x16xf32> -> vector<50x16xf32>
    %4 = vector.broadcast %1 : vector<1x16xf32> to vector<50x16xf32>
    %5 = arith.addf %3, %4 : vector<50x16xf32>
    %cst_5 = arith.constant 0.000000e+00 : f32
    %6 = vector.broadcast %cst_5 : f32 to vector<50x16xf32>
    %7 = arith.maximumf %5, %6 : vector<50x16xf32>
    %c0_6 = arith.constant 0 : index
    %c0_7 = arith.constant 0 : index
    %8 = vector.load %arg2[%c0_6, %c0_7] : memref<50x150xf32, #tpu.memory_space<vmem>>, vector<50x150xf32>
    %cst_8 = arith.constant dense<0.000000e+00> : vector<50x16xf32>
    %9 = tpu.matmul %8, %0, %cst_8 {dimension_numbers = #tpu.dot_dimension_numbers<[1], [0], [0], [1], [0, 0, 1, 1], [], []>} : vector<50x150xf32>, vector<150x16xf32>, vector<50x16xf32> -> vector<50x16xf32>
    %10 = vector.broadcast %1 : vector<1x16xf32> to vector<50x16xf32>
    %11 = arith.addf %9, %10 : vector<50x16xf32>
    %cst_9 = arith.constant 0.000000e+00 : f32
    %12 = vector.broadcast %cst_9 : f32 to vector<50x16xf32>
    %13 = arith.maximumf %11, %12 : vector<50x16xf32>
    %14 = arith.maximumf %7, %13 : vector<50x16xf32>
    %c0_10 = arith.constant 0 : index
    %c0_11 = arith.constant 0 : index
    %15 = vector.load %arg3[%c0_10, %c0_11] : memref<50x150xf32, #tpu.memory_space<vmem>>, vector<50x150xf32>
    %cst_12 = arith.constant dense<0.000000e+00> : vector<50x16xf32>
    %16 = tpu.matmul %15, %0, %cst_12 {dimension_numbers = #tpu.dot_dimension_numbers<[1], [0], [0], [1], [0, 0, 1, 1], [], []>} : vector<50x150xf32>, vector<150x16xf32>, vector<50x16xf32> -> vector<50x16xf32>
    %17 = vector.broadcast %1 : vector<1x16xf32> to vector<50x16xf32>
    %18 = arith.addf %16, %17 : vector<50x16xf32>
    %cst_13 = arith.constant 0.000000e+00 : f32
    %19 = vector.broadcast %cst_13 : f32 to vector<50x16xf32>
    %20 = arith.maximumf %18, %19 : vector<50x16xf32>
    %c0_14 = arith.constant 0 : index
    %c0_15 = arith.constant 0 : index
    %21 = vector.load %arg4[%c0_14, %c0_15] : memref<50x150xf32, #tpu.memory_space<vmem>>, vector<50x150xf32>
    %cst_16 = arith.constant dense<0.000000e+00> : vector<50x16xf32>
    %22 = tpu.matmul %21, %0, %cst_16 {dimension_numbers = #tpu.dot_dimension_numbers<[1], [0], [0], [1], [0, 0, 1, 1], [], []>} : vector<50x150xf32>, vector<150x16xf32>, vector<50x16xf32> -> vector<50x16xf32>
    %23 = vector.broadcast %1 : vector<1x16xf32> to vector<50x16xf32>
    %24 = arith.addf %22, %23 : vector<50x16xf32>
    %cst_17 = arith.constant 0.000000e+00 : f32
    %25 = vector.broadcast %cst_17 : f32 to vector<50x16xf32>
    %26 = arith.maximumf %24, %25 : vector<50x16xf32>
    %27 = arith.maximumf %20, %26 : vector<50x16xf32>
    %28 = arith.maximumf %14, %27 : vector<50x16xf32>
    %c0_18 = arith.constant 0 : index
    %c0_19 = arith.constant 0 : index
    %29 = vector.load %arg7[%c0_18, %c0_19] : memref<50x16xf32, #tpu.memory_space<vmem>>, vector<50x16xf32>
    tpu.vector_store %arg7[%c0_18, %c0_19], %28 {strides = array<i32>} : memref<50x16xf32, #tpu.memory_space<vmem>>, vector<50x16xf32>,
    return
  }
  func.func @transform_0(%arg0: i32) -> (i32, i32) {
    %c0_i32 = arith.constant 0 : i32
    %c0_i32_0 = arith.constant 0 : i32
    return %arg0, %c0_i32 : i32, i32
  }
  func.func @transform_1(%arg0: i32) -> (i32, i32) {
    %c0_i32 = arith.constant 0 : i32
    %c0_i32_0 = arith.constant 0 : i32
    return %arg0, %c0_i32 : i32, i32
  }
  func.func @transform_2(%arg0: i32) -> (i32, i32) {
    %c0_i32 = arith.constant 0 : i32
    %c0_i32_0 = arith.constant 0 : i32
    return %arg0, %c0_i32 : i32, i32
  }
  func.func @transform_3(%arg0: i32) -> (i32, i32) {
    %c0_i32 = arith.constant 0 : i32
    %c0_i32_0 = arith.constant 0 : i32
    return %arg0, %c0_i32 : i32, i32
  }
  func.func @transform_4(%arg0: i32) -> (i32, i32) {
    %c0_i32 = arith.constant 0 : i32
    %c0_i32_0 = arith.constant 0 : i32
    %c0_i32_1 = arith.constant 0 : i32
    return %c0_i32, %c0_i32_0 : i32, i32
  }
  func.func @transform_5(%arg0: i32) -> (i32, i32) {
    %c0_i32 = arith.constant 0 : i32
    %c0_i32_0 = arith.constant 0 : i32
    %c0_i32_1 = arith.constant 0 : i32
    return %c0_i32, %c0_i32_0 : i32, i32
  }
  func.func @transform_6(%arg0: i32) -> (i32, i32) {
    %c0_i32 = arith.constant 0 : i32
    %c0_i32_0 = arith.constant 0 : i32
    return %arg0, %c0_i32 : i32, i32
  }
}

module attributes {stable_mosaic.version = 11 : i64} {
  func.func @_mlp_kernel(%arg0: i32, %arg1: memref<2x400xf32, #tpu.memory_space<vmem>>, %arg2: memref<400x120xf32, #tpu.memory_space<vmem>>, %arg3: memref<1x120xf32, #tpu.memory_space<vmem>>, %arg4: memref<120x84xf32, #tpu.memory_space<vmem>>, %arg5: memref<1x84xf32, #tpu.memory_space<vmem>>, %arg6: memref<84x10xf32, #tpu.memory_space<vmem>>, %arg7: memref<1x10xf32, #tpu.memory_space<vmem>>, %arg8: memref<2x10xf32, #tpu.memory_space<vmem>>) attributes {dimension_semantics = [#tpu.dimension_semantics<parallel>], iteration_bounds = array<i64: 1>, scalar_prefetch = 0 : i64, scratch_operands = 0 : i64, tpu.core_type = #tpu.core_type<tc>, window_params = [{transform_indices = @transform_0, window_bounds = array<i64: 2, 400>}, {pipeline_mode = #tpu.pipeline_mode<synchronous>, transform_indices = @transform_1, window_bounds = array<i64: 400, 120>}, {pipeline_mode = #tpu.pipeline_mode<synchronous>, transform_indices = @transform_2, window_bounds = array<i64: 1, 120>}, {pipeline_mode = #tpu.pipeline_mode<synchronous>, transform_indices = @transform_3, window_bounds = array<i64: 120, 84>}, {pipeline_mode = #tpu.pipeline_mode<synchronous>, transform_indices = @transform_4, window_bounds = array<i64: 1, 84>}, {pipeline_mode = #tpu.pipeline_mode<synchronous>, transform_indices = @transform_5, window_bounds = array<i64: 84, 10>}, {pipeline_mode = #tpu.pipeline_mode<synchronous>, transform_indices = @transform_6, window_bounds = array<i64: 1, 10>}, {transform_indices = @transform_7, window_bounds = array<i64: 2, 10>}]} {
    %c0 = arith.constant 0 : index
    %c0_0 = arith.constant 0 : index
    %0 = vector.load %arg1[%c0, %c0_0] : memref<2x400xf32, #tpu.memory_space<vmem>>, vector<2x400xf32>
    %c0_1 = arith.constant 0 : index
    %c0_2 = arith.constant 0 : index
    %1 = vector.load %arg2[%c0_1, %c0_2] : memref<400x120xf32, #tpu.memory_space<vmem>>, vector<400x120xf32>
    %cst = arith.constant dense<0.000000e+00> : vector<2x120xf32>
    %2 = tpu.matmul %0, %1, %cst {dimension_numbers = #tpu.dot_dimension_numbers<[1], [0], [0], [1], [0, 0, 1, 1], [], []>} : vector<2x400xf32>, vector<400x120xf32>, vector<2x120xf32> -> vector<2x120xf32>
    %c0_3 = arith.constant 0 : index
    %c0_4 = arith.constant 0 : index
    %3 = vector.load %arg3[%c0_3, %c0_4] : memref<1x120xf32, #tpu.memory_space<vmem>>, vector<1x120xf32>
    %4 = vector.broadcast %3 : vector<1x120xf32> to vector<2x120xf32>
    %5 = arith.addf %2, %4 : vector<2x120xf32>
    %cst_5 = arith.constant 0.000000e+00 : f32
    %6 = vector.broadcast %cst_5 : f32 to vector<2x120xf32>
    %7 = arith.maximumf %5, %6 : vector<2x120xf32>
    %c0_6 = arith.constant 0 : index
    %c0_7 = arith.constant 0 : index
    %8 = vector.load %arg4[%c0_6, %c0_7] : memref<120x84xf32, #tpu.memory_space<vmem>>, vector<120x84xf32>
    %cst_8 = arith.constant dense<0.000000e+00> : vector<2x84xf32>
    %9 = tpu.matmul %7, %8, %cst_8 {dimension_numbers = #tpu.dot_dimension_numbers<[1], [0], [0], [1], [0, 0, 1, 1], [], []>} : vector<2x120xf32>, vector<120x84xf32>, vector<2x84xf32> -> vector<2x84xf32>
    %c0_9 = arith.constant 0 : index
    %c0_10 = arith.constant 0 : index
    %10 = vector.load %arg5[%c0_9, %c0_10] : memref<1x84xf32, #tpu.memory_space<vmem>>, vector<1x84xf32>
    %11 = vector.broadcast %10 : vector<1x84xf32> to vector<2x84xf32>
    %12 = arith.addf %9, %11 : vector<2x84xf32>
    %cst_11 = arith.constant 0.000000e+00 : f32
    %13 = vector.broadcast %cst_11 : f32 to vector<2x84xf32>
    %14 = arith.maximumf %12, %13 : vector<2x84xf32>
    %c0_12 = arith.constant 0 : index
    %c0_13 = arith.constant 0 : index
    %15 = vector.load %arg6[%c0_12, %c0_13] : memref<84x10xf32, #tpu.memory_space<vmem>>, vector<84x10xf32>
    %cst_14 = arith.constant dense<0.000000e+00> : vector<2x10xf32>
    %16 = tpu.matmul %14, %15, %cst_14 {dimension_numbers = #tpu.dot_dimension_numbers<[1], [0], [0], [1], [0, 0, 1, 1], [], []>} : vector<2x84xf32>, vector<84x10xf32>, vector<2x10xf32> -> vector<2x10xf32>
    %c0_15 = arith.constant 0 : index
    %c0_16 = arith.constant 0 : index
    %17 = vector.load %arg7[%c0_15, %c0_16] : memref<1x10xf32, #tpu.memory_space<vmem>>, vector<1x10xf32>
    %18 = vector.broadcast %17 : vector<1x10xf32> to vector<2x10xf32>
    %19 = arith.addf %16, %18 : vector<2x10xf32>
    %c0_17 = arith.constant 0 : index
    %c0_18 = arith.constant 0 : index
    %20 = vector.load %arg8[%c0_17, %c0_18] : memref<2x10xf32, #tpu.memory_space<vmem>>, vector<2x10xf32>
    tpu.vector_store %arg8[%c0_17, %c0_18], %19 {strides = array<i32>} : memref<2x10xf32, #tpu.memory_space<vmem>>, vector<2x10xf32>,
    return
  }
  func.func @transform_0(%arg0: i32) -> (i32, i32) {
    %c0_i32 = arith.constant 0 : i32
    %c0_i32_0 = arith.constant 0 : i32
    return %arg0, %c0_i32 : i32, i32
  }
  func.func @transform_1(%arg0: i32) -> (i32, i32) {
    %c0_i32 = arith.constant 0 : i32
    %c0_i32_0 = arith.constant 0 : i32
    %c0_i32_1 = arith.constant 0 : i32
    return %c0_i32, %c0_i32_0 : i32, i32
  }
  func.func @transform_2(%arg0: i32) -> (i32, i32) {
    %c0_i32 = arith.constant 0 : i32
    %c0_i32_0 = arith.constant 0 : i32
    %c0_i32_1 = arith.constant 0 : i32
    return %c0_i32, %c0_i32_0 : i32, i32
  }
  func.func @transform_3(%arg0: i32) -> (i32, i32) {
    %c0_i32 = arith.constant 0 : i32
    %c0_i32_0 = arith.constant 0 : i32
    %c0_i32_1 = arith.constant 0 : i32
    return %c0_i32, %c0_i32_0 : i32, i32
  }
  func.func @transform_4(%arg0: i32) -> (i32, i32) {
    %c0_i32 = arith.constant 0 : i32
    %c0_i32_0 = arith.constant 0 : i32
    %c0_i32_1 = arith.constant 0 : i32
    return %c0_i32, %c0_i32_0 : i32, i32
  }
  func.func @transform_5(%arg0: i32) -> (i32, i32) {
    %c0_i32 = arith.constant 0 : i32
    %c0_i32_0 = arith.constant 0 : i32
    %c0_i32_1 = arith.constant 0 : i32
    return %c0_i32, %c0_i32_0 : i32, i32
  }
  func.func @transform_6(%arg0: i32) -> (i32, i32) {
    %c0_i32 = arith.constant 0 : i32
    %c0_i32_0 = arith.constant 0 : i32
    %c0_i32_1 = arith.constant 0 : i32
    return %c0_i32, %c0_i32_0 : i32, i32
  }
  func.func @transform_7(%arg0: i32) -> (i32, i32) {
    %c0_i32 = arith.constant 0 : i32
    %c0_i32_0 = arith.constant 0 : i32
    return %arg0, %c0_i32 : i32, i32
  }
}

</mosaic_0001>

<bundles_post_ra>
// kernel: net_forward.3
= control target key start
LH: loop header
LB: loop body
LE: loop exit
PB: predicated region body
PF: predicated region fallthrough
CT: control target
= control target key end

     0   :  { %v3641_v0 = vmov 0.0|0.0   ;;  %vm3642_vm0 = vmmov 0   ;;  %v3643_v6 = vmov 0.0   ;;  %vm237_vm1 = vcmask 1042432   ;;  %s5472_s4 = inlined_call_operand.vmem [shape: f32[75,6], index: 4, kind: input, shape index: {}]   ;;  %s5473_s0 = inlined_call_operand.vmem [shape: f32[392,75], index: 0, kind: input, shape index: {}]   ;;  %s5474_s1 = inlined_call_operand.vmem [shape: f32[392,75], index: 1, kind: input, shape index: {}]   ;;  %s5475_s2 = inlined_call_operand.vmem [shape: f32[392,75], index: 2, kind: input, shape index: {}]   ;;  %s5476_s3 = inlined_call_operand.vmem [shape: f32[392,75], index: 3, kind: input, shape index: {}]   ;;  %s5477_s5 = inlined_call_operand.vmem [shape: f32[1,6], index: 5, kind: input, shape index: {}]   ;;  %s5478_s6 = inlined_call_operand.vmem [shape: f32[392,6], index: 6, kind: output, shape index: {}]  }
   0x1   :  { %3571 = vmatprep.subr.bf16.mxu0 %v3641_v0  ;;  %3587 = vmatprep.subr.bf16.mxu1 %v3641_v0  ;;  %v23_v1 = vld [vmem:[%s5472_s4] sm:$0xff]  ;;  %v24_v2 = vld [vmem:[%s5472_s4 + $0x8] sm:$0xff]  ;;  %v25_v3 = vld [vmem:[%s5472_s4 + $0x10] sm:$0xff]  ;;  %vm3644_vm2 = vmmov 1   ;;  %vm89_vm4 = vcmask 613376   ;;  %vm2412_vm5 = vcmask 48128  }
   0x2   :  { %v3572_v4 = vpack.c.bf16 %v24_v2, %v23_v1  ;;  %v26_v5 = vld [vmem:[%s5472_s4 + $0x18] sm:$0xff]  ;;  %2923 = vmatprep.mubr.msk.f32.mxu0 %vm3642_vm0, %v3643_v6  ;;  %3090 = vmatprep.mubr.msk.f32.mxu1 %vm3642_vm0, %v3643_v6  ;;  %v27_v8 = vld [vmem:[%s5472_s4 + $0x20] sm:$0xff]  ;;  %v28_v9 = vld [vmem:[%s5472_s4 + $0x28] sm:$0xff] }
   0x3   :  { %v3575_v7 = vpack.c.bf16 %v26_v5, %v25_v3  ;;  %v3578_v10 = vpack.c.bf16 %v28_v9, %v27_v8  ;;  %v29_v11 = vld [vmem:[%s5472_s4 + $0x30] sm:$0xff]  ;;  %v30_v12 = vld [vmem:[%s5472_s4 + $0x38] sm:$0xff]  ;;  %v31_v14 = vld [vmem:[%s5472_s4 + $0x40] sm:$0xff] }
   0x4   :  { %3573 = vmatpush3.bf16.msra.mxu0 %v3572_v4  ;;  %3589 = vmatpush3.bf16.msra.mxu1 %v3572_v4  ;;  %v3581_v13 = vpack.c.bf16 %v30_v12, %v29_v11  ;;  %v32_v15 = vld [vmem:[%s5472_s4 + $0x48] sm:$0x7]  ;;  %vm3724_vm3 = vmpackc.low %vm237_vm1, %vm3644_vm2  ;;  %v34_v18 = vld [vmem:[%s5473_s0] sm:$0xff] }
   0x5   :  { %3574 = vmatprep.subr.bf16.mxu0 %v3641_v0  ;;  %3590 = vmatprep.subr.bf16.mxu1 %v3641_v0  ;;  %v3584_v16 = vpack.c.bf16 %v32_v15, %v31_v14  ;;  %v600_v19 = vld [vmem:[%s5474_s1] sm:$0xff]  ;;  %v35_v20 = vld [vmem:[%s5473_s0 + $0x8] sm:$0xff]  ;;  %v36_v22 = vld [vmem:[%s5473_s0 + $0x10] sm:$0xff] }
   0x6   :  { %v601_v21 = vld [vmem:[%s5474_s1 + $0x8] sm:$0xff]  ;;  %v602_v23 = vld [vmem:[%s5474_s1 + $0x10] sm:$0xff]  ;;  %v37_v24 = vld [vmem:[%s5473_s0 + $0x18] sm:$0xff] }
   0x7   :  { %v603_v25 = vld [vmem:[%s5474_s1 + $0x18] sm:$0xff]  ;;  %v38_v26 = vld [vmem:[%s5473_s0 + $0x20] sm:$0xff]  ;;  %v39_v28 = vld [vmem:[%s5473_s0 + $0x28] sm:$0xff] }
   0x8   :  { %3576 = vmatpush3.bf16.msra.mxu0 %v3575_v7  ;;  %3592 = vmatpush3.bf16.msra.mxu1 %v3575_v7  ;;  %v604_v27 = vld [vmem:[%s5474_s1 + $0x20] sm:$0xff]  ;;  %v605_v29 = vld [vmem:[%s5474_s1 + $0x28] sm:$0xff]  ;;  %v40_v30 = vld [vmem:[%s5473_s0 + $0x30] sm:$0xff] }
   0x9   :  { %3577 = vmatprep.subr.bf16.mxu0 %v3641_v0  ;;  %3593 = vmatprep.subr.bf16.mxu1 %v3641_v0  ;;  %v606_v31 = vld [vmem:[%s5474_s1 + $0x30] sm:$0xff]  ;;  %v41_v32 = vld [vmem:[%s5473_s0 + $0x38] sm:$0xff]  ;;  %v42_v34 = vld [vmem:[%s5473_s0 + $0x40] sm:$0xff] }
   0xa   :  { %v607_v33 = vld [vmem:[%s5474_s1 + $0x38] sm:$0xff]  ;;  %v608_v35 = vld [vmem:[%s5474_s1 + $0x40] sm:$0xff]  ;;  %v43_v36 = vld [vmem:[%s5473_s0 + $0x48] sm:$0xff] }
   0xb   :  { %v609_v37 = vld [vmem:[%s5474_s1 + $0x48] sm:$0xff]  ;;  %v44_v38 = vld [vmem:[%s5473_s0 + $0x50] sm:$0xff]  ;;  %v45_v40 = vld [vmem:[%s5473_s0 + $0x58] sm:$0xff] }
   0xc   :  { %3579 = vmatpush3.bf16.msra.mxu0 %v3578_v10  ;;  %3595 = vmatpush3.bf16.msra.mxu1 %v3578_v10  ;;  %v610_v39 = vld [vmem:[%s5474_s1 + $0x50] sm:$0xff]  ;;  %v611_v41 = vld [vmem:[%s5474_s1 + $0x58] sm:$0xff]  ;;  %v46_v42 = vld [vmem:[%s5473_s0 + $0x60] sm:$0xff] }
   0xd   :  { %3580 = vmatprep.subr.bf16.mxu0 %v3641_v0  ;;  %3596 = vmatprep.subr.bf16.mxu1 %v3641_v0  ;;  %v612_v43 = vld [vmem:[%s5474_s1 + $0x60] sm:$0xff]  ;;  %v47_v44 = vld [vmem:[%s5473_s0 + $0x68] sm:$0xff]  ;;  %v48_v46 = vld [vmem:[%s5473_s0 + $0x70] sm:$0xff] }
   0xe   :  { %v613_v45 = vld [vmem:[%s5474_s1 + $0x68] sm:$0xff]  ;;  %v614_v47 = vld [vmem:[%s5474_s1 + $0x70] sm:$0xff]  ;;  %v49_v48 = vld [vmem:[%s5473_s0 + $0x78] sm:$0xff] }
   0xf   :  { %v615_v49 = vld [vmem:[%s5474_s1 + $0x78] sm:$0xff]  ;;  %v50_v50 = vld [vmem:[%s5473_s0 + $0x80] sm:$0xff]  ;;  %v51_v52 = vld [vmem:[%s5473_s0 + $0x88] sm:$0xff] }
  0x10   :  { %3582 = vmatpush3.bf16.msra.mxu0 %v3581_v13  ;;  %3598 = vmatpush3.bf16.msra.mxu1 %v3581_v13  ;;  %v616_v51 = vld [vmem:[%s5474_s1 + $0x80] sm:$0xff]  ;;  %v617_v53 = vld [vmem:[%s5474_s1 + $0x88] sm:$0xff]  ;;  %v52_v54 = vld [vmem:[%s5473_s0 + $0x90] sm:$0xff] }
  0x11   :  { %3583 = vmatprep.subr.bf16.mxu0 %v3641_v0  ;;  %3599 = vmatprep.subr.bf16.mxu1 %v3641_v0  ;;  %v618_v55 = vld [vmem:[%s5474_s1 + $0x90] sm:$0xff]  ;;  %v53_v56 = vld [vmem:[%s5473_s0 + $0x98] sm:$0xff]  ;;  %v54_v58 = vld [vmem:[%s5473_s0 + $0xa0] sm:$0xff] }
  0x12   :  { %v619_v57 = vld [vmem:[%s5474_s1 + $0x98] sm:$0xff]  ;;  %v620_v59 = vld [vmem:[%s5474_s1 + $0xa0] sm:$0xff]  ;;  %v55_v60 = vld [vmem:[%s5473_s0 + $0xa8] sm:$0xff] }
  0x13   :  { %v621_v61 = vld [vmem:[%s5474_s1 + $0xa8] sm:$0xff]  ;;  %v56_v62 = vld [vmem:[%s5473_s0 + $0xb0] sm:$0xff]  ;;  %v623_v1 = vld [vmem:[%s5474_s1 + $0xb8] sm:$0xff] }
  0x14   :  { %3586 = vmatpush3.bf16.msk.msra.mxu0 %vm3724_vm3, %v3584_v16  ;;  %3602 = vmatpush3.bf16.msk.msra.mxu1 %vm3724_vm3, %v3584_v16  ;;  %v622_v63 = vld [vmem:[%s5474_s1 + $0xb0] sm:$0xff]  ;;  %v58_v2 = vld [vmem:[%s5473_s0 + $0xc0] sm:$0xff]  ;;  %v625_v5 = vld [vmem:[%s5474_s1 + $0xc8] sm:$0xff] }
  0x15   :  { %3603 = vmatprep.subr.bf16.mxu0 %v3641_v0  ;;  %3619 = vmatprep.subr.bf16.mxu1 %v3641_v0  ;;  %v624_v3 = vld [vmem:[%s5474_s1 + $0xc0] sm:$0xff]  ;;  %v626_v8 = vld [vmem:[%s5474_s1 + $0xd0] sm:$0xff]  ;;  %v61_v9 = vld [vmem:[%s5473_s0 + $0xd8] sm:$0xff] }
  0x16   :  { %v62_v11 = vld [vmem:[%s5473_s0 + $0xe0] sm:$0xff]  ;;  %v629_v14 = vld [vmem:[%s5474_s1 + $0xe8] sm:$0xff]  ;;  %v64_v15 = vld [vmem:[%s5473_s0 + $0xf0] sm:$0xff] }
  0x17   :  { %2924 = vmatmul.mubr.msk.f32.vlgmr.msra.gmra.mrb[0].mxu0 %vm89_vm4, %v34_v18  ;;  %3091 = vmatmul.mubr.msk.f32.vlgmr.msra.gmra.mrb[0].mxu1 %vm89_vm4, %v600_v19  ;;  %v628_v12 = vld [vmem:[%s5474_s1 + $0xe0] sm:$0xff]  ;;  %v65_v17 = vld [vmem:[%s5473_s0 + $0xf8] sm:$0xff] }
  0x18   :  { %3605 = vmatpush3.bf16.msra.mxu0 %v3572_v4  ;;  %3621 = vmatpush3.bf16.msra.mxu1 %v3572_v4  ;;  %v59_v4 = vld [vmem:[%s5473_s0 + $0xc8] sm:$0xff]  ;;  %v631_v18 = vld [vmem:[%s5474_s1 + $0xf8] sm:$0xff]  ;;  %v66_v19 = vld [vmem:[%s5473_s0 + $0x100] sm:$0xff] }
  0x19   :  { %2926 = vmatprep.mubr.msk.f32.mxu0 %vm3642_vm0, %v3643_v6  ;;  %3093 = vmatprep.mubr.msk.f32.mxu1 %vm3642_vm0, %v3643_v6 }
  0x1a   :  { %3606 = vmatprep.subr.bf16.mxu0 %v3641_v0  ;;  %3622 = vmatprep.subr.bf16.mxu1 %v3641_v0 }
  0x1b   :  { %2927 = vmatmul.mubr.msk.f32.gmra.mrb[2].mxu0 %vm89_vm4, %v35_v20  ;;  %3094 = vmatmul.mubr.msk.f32.gmra.mrb[2].mxu1 %vm89_vm4, %v601_v21  ;;  %v632_v20 = vld [vmem:[%s5474_s1 + $0x100] sm:$0xff]  ;;  %v67_v21 = vld [vmem:[%s5473_s0 + $0x108] sm:$0xff] }
  0x1c   :  { %2929 = vmatprep.mubr.msk.f32.mxu0 %vm3642_vm0, %v3643_v6  ;;  %3096 = vmatprep.mubr.msk.f32.mxu1 %vm3642_vm0, %v3643_v6 }
  0x1d   :  { %3608 = vmatpush3.bf16.msra.mxu0 %v3575_v7  ;;  %3624 = vmatpush3.bf16.msra.mxu1 %v3575_v7  ;;  %v60_v7 = vld [vmem:[%s5473_s0 + $0xd0] sm:$0xff] }
  0x1e   :  { %3609 = vmatprep.subr.bf16.mxu0 %v3641_v0  ;;  %3625 = vmatprep.subr.bf16.mxu1 %v3641_v0 }
  0x1f   :  { %2930 = vmatmul.mubr.msk.f32.gmra.mrb[4].mxu0 %vm89_vm4, %v36_v22  ;;  %3097 = vmatmul.mubr.msk.f32.gmra.mrb[4].mxu1 %vm89_vm4, %v602_v23  ;;  %v633_v22 = vld [vmem:[%s5474_s1 + $0x108] sm:$0xff]  ;;  %v68_v23 = vld [vmem:[%s5473_s0 + $0x110] sm:$0xff] }
  0x20   :  { %2932 = vmatprep.mubr.msk.f32.mxu0 %vm3642_vm0, %v3643_v6  ;;  %3099 = vmatprep.mubr.msk.f32.mxu1 %vm3642_vm0, %v3643_v6 }
  0x21   :  { %3611 = vmatpush3.bf16.msra.mxu0 %v3578_v10  ;;  %3627 = vmatpush3.bf16.msra.mxu1 %v3578_v10  ;;  %v627_v10 = vld [vmem:[%s5474_s1 + $0xd8] sm:$0xff] }
  0x22   :  { %3612 = vmatprep.subr.bf16.mxu0 %v3641_v0  ;;  %3628 = vmatprep.subr.bf16.mxu1 %v3641_v0 }
  0x23   :  { %2933 = vmatmul.mubr.msk.f32.gmra.mrb[6].mxu0 %vm89_vm4, %v37_v24  ;;  %3100 = vmatmul.mubr.msk.f32.gmra.mrb[6].mxu1 %vm89_vm4, %v603_v25  ;;  %v634_v24 = vld [vmem:[%s5474_s1 + $0x110] sm:$0xff]  ;;  %v69_v25 = vld [vmem:[%s5473_s0 + $0x118] sm:$0xff] }
  0x24   :  { %2935 = vmatprep.mubr.msk.f32.mxu0 %vm3642_vm0, %v3643_v6  ;;  %3102 = vmatprep.mubr.msk.f32.mxu1 %vm3642_vm0, %v3643_v6 }
  0x25   :  { %3614 = vmatpush3.bf16.msra.mxu0 %v3581_v13  ;;  %3630 = vmatpush3.bf16.msra.mxu1 %v3581_v13  ;;  %v63_v13 = vld [vmem:[%s5473_s0 + $0xe8] sm:$0xff] }
  0x26   :  { %3615 = vmatprep.subr.bf16.mxu0 %v3641_v0  ;;  %3631 = vmatprep.subr.bf16.mxu1 %v3641_v0  ;;  %v57_v0 = vld [vmem:[%s5473_s0 + $0xb8] sm:$0xff] }
  0x27   :  { %2936 = vmatmul.mubr.msk.f32.gmra.mrb[8].mxu0 %vm89_vm4, %v38_v26  ;;  %3103 = vmatmul.mubr.msk.f32.gmra.mrb[8].mxu1 %vm89_vm4, %v604_v27  ;;  %v635_v26 = vld [vmem:[%s5474_s1 + $0x118] sm:$0xff]  ;;  %v70_v27 = vld [vmem:[%s5473_s0 + $0x120] sm:$0xff] }
  0x28   :  { %2938 = vmatprep.mubr.msk.f32.mxu0 %vm3642_vm0, %v3643_v6  ;;  %3105 = vmatprep.mubr.msk.f32.mxu1 %vm3642_vm0, %v3643_v6 }
  0x29   :  { %3618 = vmatpush3.bf16.msk.msra.mxu0 %vm3724_vm3, %v3584_v16  ;;  %3634 = vmatpush3.bf16.msk.msra.mxu1 %vm3724_vm3, %v3584_v16  ;;  %v630_v16 = vld [vmem:[%s5474_s1 + $0xf0] sm:$0xff] }
  0x2b   :  { %2939 = vmatmul.mubr.msk.f32.gmra.mrb[10].mxu0 %vm89_vm4, %v39_v28  ;;  %3106 = vmatmul.mubr.msk.f32.gmra.mrb[10].mxu1 %vm89_vm4, %v605_v29  ;;  %v636_v28 = vld [vmem:[%s5474_s1 + $0x120] sm:$0xff]  ;;  %v71_v29 = vld [vmem:[%s5473_s0 + $0x128] sm:$0xff] }
  0x2c   :  { %2941 = vmatprep.mubr.msk.f32.mxu0 %vm3642_vm0, %v3643_v6  ;;  %3108 = vmatprep.mubr.msk.f32.mxu1 %vm3642_vm0, %v3643_v6 }
  0x2f   :  { %2942 = vmatmul.mubr.msk.f32.gmra.mrb[12].mxu0 %vm89_vm4, %v40_v30  ;;  %3109 = vmatmul.mubr.msk.f32.gmra.mrb[12].mxu1 %vm89_vm4, %v606_v31  ;;  %v637_v30 = vld [vmem:[%s5474_s1 + $0x128] sm:$0xff]  ;;  %v72_v31 = vld [vmem:[%s5473_s0 + $0x130] sm:$0xff] }
  0x30   :  { %2944 = vmatprep.mubr.msk.f32.mxu0 %vm3642_vm0, %v3643_v6  ;;  %3111 = vmatprep.mubr.msk.f32.mxu1 %vm3642_vm0, %v3643_v6 }
  0x33   :  { %2945 = vmatmul.mubr.msk.f32.gmra.mrb[14].mxu0 %vm89_vm4, %v41_v32  ;;  %3112 = vmatmul.mubr.msk.f32.gmra.mrb[14].mxu1 %vm89_vm4, %v607_v33  ;;  %v638_v32 = vld [vmem:[%s5474_s1 + $0x130] sm:$0xff]  ;;  %v73_v33 = vld [vmem:[%s5473_s0 + $0x138] sm:$0xff] }
  0x34   :  { %2947 = vmatprep.mubr.msk.f32.mxu0 %vm3642_vm0, %v3643_v6  ;;  %3114 = vmatprep.mubr.msk.f32.mxu1 %vm3642_vm0, %v3643_v6 }
  0x37   :  { %2948 = vmatmul.mubr.msk.f32.gmra.mrb[16].mxu0 %vm89_vm4, %v42_v34  ;;  %3115 = vmatmul.mubr.msk.f32.gmra.mrb[16].mxu1 %vm89_vm4, %v608_v35  ;;  %v639_v34 = vld [vmem:[%s5474_s1 + $0x138] sm:$0xff]  ;;  %v74_v35 = vld [vmem:[%s5473_s0 + $0x140] sm:$0xff] }
  0x38   :  { %2950 = vmatprep.mubr.msk.f32.mxu0 %vm3642_vm0, %v3643_v6  ;;  %3117 = vmatprep.mubr.msk.f32.mxu1 %vm3642_vm0, %v3643_v6 }
  0x3b   :  { %2951 = vmatmul.mubr.msk.f32.gmra.mrb[18].mxu0 %vm89_vm4, %v43_v36  ;;  %3118 = vmatmul.mubr.msk.f32.gmra.mrb[18].mxu1 %vm89_vm4, %v609_v37  ;;  %v640_v36 = vld [vmem:[%s5474_s1 + $0x140] sm:$0xff]  ;;  %v75_v37 = vld [vmem:[%s5473_s0 + $0x148] sm:$0xff] }
  0x3c   :  { %2953 = vmatprep.mubr.msk.f32.mxu0 %vm3642_vm0, %v3643_v6  ;;  %3120 = vmatprep.mubr.msk.f32.mxu1 %vm3642_vm0, %v3643_v6 }
  0x3f   :  { %2954 = vmatmul.mubr.msk.f32.gmra.mrb[20].mxu0 %vm89_vm4, %v44_v38  ;;  %3121 = vmatmul.mubr.msk.f32.gmra.mrb[20].mxu1 %vm89_vm4, %v610_v39  ;;  %v641_v38 = vld [vmem:[%s5474_s1 + $0x148] sm:$0xff]  ;;  %v76_v39 = vld [vmem:[%s5473_s0 + $0x150] sm:$0xff] }
  0x40   :  { %2956 = vmatprep.mubr.msk.f32.mxu0 %vm3642_vm0, %v3643_v6  ;;  %3123 = vmatprep.mubr.msk.f32.mxu1 %vm3642_vm0, %v3643_v6 }
  0x43   :  { %2957 = vmatmul.mubr.msk.f32.gmra.mrb[22].mxu0 %vm89_vm4, %v45_v40  ;;  %3124 = vmatmul.mubr.msk.f32.gmra.mrb[22].mxu1 %vm89_vm4, %v611_v41  ;;  %v642_v40 = vld [vmem:[%s5474_s1 + $0x150] sm:$0xff]  ;;  %v77_v41 = vld [vmem:[%s5473_s0 + $0x158] sm:$0xff] }
  0x44   :  { %2959 = vmatprep.mubr.msk.f32.mxu0 %vm3642_vm0, %v3643_v6  ;;  %3126 = vmatprep.mubr.msk.f32.mxu1 %vm3642_vm0, %v3643_v6 }
  0x47   :  { %2960 = vmatmul.mubr.msk.f32.gmra.mrb[24].mxu0 %vm89_vm4, %v46_v42  ;;  %3127 = vmatmul.mubr.msk.f32.gmra.mrb[24].mxu1 %vm89_vm4, %v612_v43  ;;  %v643_v42 = vld [vmem:[%s5474_s1 + $0x158] sm:$0xff]  ;;  %v78_v43 = vld [vmem:[%s5473_s0 + $0x160] sm:$0xff] }
  0x48   :  { %2962 = vmatprep.mubr.msk.f32.mxu0 %vm3642_vm0, %v3643_v6  ;;  %3129 = vmatprep.mubr.msk.f32.mxu1 %vm3642_vm0, %v3643_v6 }
  0x4b   :  { %2963 = vmatmul.mubr.msk.f32.gmra.mrb[26].mxu0 %vm89_vm4, %v47_v44  ;;  %3130 = vmatmul.mubr.msk.f32.gmra.mrb[26].mxu1 %vm89_vm4, %v613_v45  ;;  %v644_v44 = vld [vmem:[%s5474_s1 + $0x160] sm:$0xff]  ;;  %v79_v45 = vld [vmem:[%s5473_s0 + $0x168] sm:$0xff] }
  0x4c   :  { %2965 = vmatprep.mubr.msk.f32.mxu0 %vm3642_vm0, %v3643_v6  ;;  %3132 = vmatprep.mubr.msk.f32.mxu1 %vm3642_vm0, %v3643_v6 }
  0x4f   :  { %2966 = vmatmul.mubr.msk.f32.gmra.mrb[28].mxu0 %vm89_vm4, %v48_v46  ;;  %3133 = vmatmul.mubr.msk.f32.gmra.mrb[28].mxu1 %vm89_vm4, %v614_v47  ;;  %v645_v46 = vld [vmem:[%s5474_s1 + $0x168] sm:$0xff]  ;;  %v80_v47 = vld [vmem:[%s5473_s0 + $0x170] sm:$0xff] }
  0x50   :  { %2968 = vmatprep.mubr.msk.f32.mxu0 %vm3642_vm0, %v3643_v6  ;;  %3135 = vmatprep.mubr.msk.f32.mxu1 %vm3642_vm0, %v3643_v6 }
  0x53   :  { %2969 = vmatmul.mubr.msk.f32.gmra.mrb[30].mxu0 %vm89_vm4, %v49_v48  ;;  %3136 = vmatmul.mubr.msk.f32.gmra.mrb[30].mxu1 %vm89_vm4, %v615_v49  ;;  %v646_v48 = vld [vmem:[%s5474_s1 + $0x170] sm:$0xff]  ;;  %v81_v49 = vld [vmem:[%s5473_s0 + $0x178] sm:$0xff] }
  0x54   :  { %2971 = vmatprep.mubr.msk.f32.mxu0 %vm3642_vm0, %v3643_v6  ;;  %3138 = vmatprep.mubr.msk.f32.mxu1 %vm3642_vm0, %v3643_v6 }
  0x57   :  { %2972 = vmatmul.mubr.msk.f32.gmra.mrb[32].mxu0 %vm89_vm4, %v50_v50  ;;  %3139 = vmatmul.mubr.msk.f32.gmra.mrb[32].mxu1 %vm89_vm4, %v616_v51  ;;  %v647_v50 = vld [vmem:[%s5474_s1 + $0x178] sm:$0xff]  ;;  %v82_v51 = vld [vmem:[%s5473_s0 + $0x180] sm:$0xff] }
  0x58   :  { %2974 = vmatprep.mubr.msk.f32.mxu0 %vm3642_vm0, %v3643_v6  ;;  %3141 = vmatprep.mubr.msk.f32.mxu1 %vm3642_vm0, %v3643_v6 }
  0x5b   :  { %2975 = vmatmul.mubr.msk.f32.gmra.mrb[34].mxu0 %vm89_vm4, %v51_v52  ;;  %3142 = vmatmul.mubr.msk.f32.gmra.mrb[34].mxu1 %vm89_vm4, %v617_v53  ;;  %v648_v52 = vld [vmem:[%s5474_s1 + $0x180] sm:$0xff] }
  0x5c   :  { %2977 = vmatprep.mubr.msk.f32.mxu0 %vm3642_vm0, %v3643_v6  ;;  %3144 = vmatprep.mubr.msk.f32.mxu1 %vm3642_vm0, %v3643_v6  ;;  %v1204_v53 = vld [vmem:[%s5475_s2] sm:$0xff] }
  0x5f   :  { %2978 = vmatmul.mubr.msk.f32.gmra.mrb[36].mxu0 %vm89_vm4, %v52_v54  ;;  %3145 = vmatmul.mubr.msk.f32.gmra.mrb[36].mxu1 %vm89_vm4, %v618_v55  ;;  %v1759_v54 = vld [vmem:[%s5476_s3] sm:$0xff]  ;;  %v1205_v55 = vld [vmem:[%s5475_s2 + $0x8] sm:$0xff] }
  0x60   :  { %2980 = vmatprep.mubr.msk.f32.mxu0 %vm3642_vm0, %v3643_v6  ;;  %3147 = vmatprep.mubr.msk.f32.mxu1 %vm3642_vm0, %v3643_v6 }
  0x63   :  { %2981 = vmatmul.mubr.msk.f32.gmra.mrb[38].mxu0 %vm89_vm4, %v53_v56  ;;  %3148 = vmatmul.mubr.msk.f32.gmra.mrb[38].mxu1 %vm89_vm4, %v619_v57  ;;  %v1760_v56 = vld [vmem:[%s5476_s3 + $0x8] sm:$0xff]  ;;  %v1206_v57 = vld [vmem:[%s5475_s2 + $0x10] sm:$0xff] }
  0x64   :  { %2983 = vmatprep.mubr.msk.f32.mxu0 %vm3642_vm0, %v3643_v6  ;;  %3150 = vmatprep.mubr.msk.f32.mxu1 %vm3642_vm0, %v3643_v6 }
  0x67   :  { %2984 = vmatmul.mubr.msk.f32.gmra.mrb[40].mxu0 %vm89_vm4, %v54_v58  ;;  %3151 = vmatmul.mubr.msk.f32.gmra.mrb[40].mxu1 %vm89_vm4, %v620_v59  ;;  %v1761_v58 = vld [vmem:[%s5476_s3 + $0x10] sm:$0xff]  ;;  %v1207_v59 = vld [vmem:[%s5475_s2 + $0x18] sm:$0xff] }
  0x68   :  { %2986 = vmatprep.mubr.msk.f32.mxu0 %vm3642_vm0, %v3643_v6  ;;  %3153 = vmatprep.mubr.msk.f32.mxu1 %vm3642_vm0, %v3643_v6 }
  0x6b   :  { %2987 = vmatmul.mubr.msk.f32.gmra.mrb[42].mxu0 %vm89_vm4, %v55_v60  ;;  %3154 = vmatmul.mubr.msk.f32.gmra.mrb[42].mxu1 %vm89_vm4, %v621_v61  ;;  %v1762_v60 = vld [vmem:[%s5476_s3 + $0x18] sm:$0xff]  ;;  %v4381_v61 = vld [vmem:[%s5477_s5] ss:$0 sm:$0xff] }
  0x6c   :  { %2989 = vmatprep.mubr.msk.f32.mxu0 %vm3642_vm0, %v3643_v6  ;;  %3156 = vmatprep.mubr.msk.f32.mxu1 %vm3642_vm0, %v3643_v6 }
  0x6f   :  { %2990 = vmatmul.mubr.msk.f32.gmra.mrb[44].mxu0 %vm89_vm4, %v56_v62  ;;  %3157 = vmatmul.mubr.msk.f32.gmra.mrb[44].mxu1 %vm89_vm4, %v622_v63  ;;  %v1208_v62 = vld [vmem:[%s5475_s2 + $0x20] sm:$0xff] }
  0x70   :  { %2992 = vmatprep.mubr.msk.f32.mxu0 %vm3642_vm0, %v3643_v6  ;;  %3159 = vmatprep.mubr.msk.f32.mxu1 %vm3642_vm0, %v3643_v6  ;;  %v1763_v63 = vld [vmem:[%s5476_s3 + $0x20] sm:$0xff] }
  0x73   :  { %2993 = vmatmul.mubr.msk.f32.gmra.mrb[46].mxu0 %vm89_vm4, %v57_v0  ;;  %3160 = vmatmul.mubr.msk.f32.gmra.mrb[46].mxu1 %vm89_vm4, %v623_v1 }
  0x74   :  { %2995 = vmatprep.mubr.msk.f32.mxu0 %vm3642_vm0, %v3643_v6  ;;  %3162 = vmatprep.mubr.msk.f32.mxu1 %vm3642_vm0, %v3643_v6 }
  0x77   :  { %2996 = vmatmul.mubr.msk.f32.gmra.mrb[48].mxu0 %vm89_vm4, %v58_v2  ;;  %3163 = vmatmul.mubr.msk.f32.gmra.mrb[48].mxu1 %vm89_vm4, %v624_v3 }
  0x78   :  { %2998 = vmatprep.mubr.msk.f32.mxu0 %vm3642_vm0, %v3643_v6  ;;  %3165 = vmatprep.mubr.msk.f32.mxu1 %vm3642_vm0, %v3643_v6 }
  0x7b   :  { %2999 = vmatmul.mubr.msk.f32.gmra.mrb[50].mxu0 %vm89_vm4, %v59_v4  ;;  %3166 = vmatmul.mubr.msk.f32.gmra.mrb[50].mxu1 %vm89_vm4, %v625_v5 }
  0x7c   :  { %3001 = vmatprep.mubr.msk.f32.mxu0 %vm3642_vm0, %v3643_v6  ;;  %3168 = vmatprep.mubr.msk.f32.mxu1 %vm3642_vm0, %v3643_v6 }
  0x7f   :  { %3002 = vmatmul.mubr.msk.f32.gmra.mrb[52].mxu0 %vm89_vm4, %v60_v7  ;;  %3169 = vmatmul.mubr.msk.f32.gmra.mrb[52].mxu1 %vm89_vm4, %v626_v8  ;;  %v1209_v7 = vld [vmem:[%s5475_s2 + $0x28] sm:$0xff] }
  0x80   :  { %3004 = vmatprep.mubr.msk.f32.mxu0 %vm3642_vm0, %v3643_v6  ;;  %3171 = vmatprep.mubr.msk.f32.mxu1 %vm3642_vm0, %v3643_v6  ;;  %v1764_v8 = vld [vmem:[%s5476_s3 + $0x28] sm:$0xff] }
  0x83   :  { %3005 = vmatmul.mubr.msk.f32.gmra.mrb[54].mxu0 %vm89_vm4, %v61_v9  ;;  %3172 = vmatmul.mubr.msk.f32.gmra.mrb[54].mxu1 %vm89_vm4, %v627_v10 }
  0x84   :  { %3007 = vmatprep.mubr.msk.f32.mxu0 %vm3642_vm0, %v3643_v6  ;;  %3174 = vmatprep.mubr.msk.f32.mxu1 %vm3642_vm0, %v3643_v6 }
  0x87   :  { %3008 = vmatmul.mubr.msk.f32.gmra.mrb[56].mxu0 %vm89_vm4, %v62_v11  ;;  %3175 = vmatmul.mubr.msk.f32.gmra.mrb[56].mxu1 %vm89_vm4, %v628_v12 }
  0x88   :  { %3010 = vmatprep.mubr.msk.f32.mxu0 %vm3642_vm0, %v3643_v6  ;;  %3177 = vmatprep.mubr.msk.f32.mxu1 %vm3642_vm0, %v3643_v6 }
  0x8b   :  { %3011 = vmatmul.mubr.msk.f32.gmra.mrb[58].mxu0 %vm89_vm4, %v63_v13  ;;  %3178 = vmatmul.mubr.msk.f32.gmra.mrb[58].mxu1 %vm89_vm4, %v629_v14 }
  0x8c   :  { %3013 = vmatprep.mubr.msk.f32.mxu0 %vm3642_vm0, %v3643_v6  ;;  %3180 = vmatprep.mubr.msk.f32.mxu1 %vm3642_vm0, %v3643_v6 }
  0x8f   :  { %3014 = vmatmul.mubr.msk.f32.gmra.mrb[60].mxu0 %vm89_vm4, %v64_v15  ;;  %3181 = vmatmul.mubr.msk.f32.gmra.mrb[60].mxu1 %vm89_vm4, %v630_v16 }
  0x90   :  { %3016 = vmatprep.mubr.msk.f32.mxu0 %vm3642_vm0, %v3643_v6  ;;  %3183 = vmatprep.mubr.msk.f32.mxu1 %vm3642_vm0, %v3643_v6 }
  0x93   :  { %3017 = vmatmul.mubr.msk.f32.gmra.mrb[62].mxu0 %vm89_vm4, %v65_v17  ;;  %3184 = vmatmul.mubr.msk.f32.gmra.mrb[62].mxu1 %vm89_vm4, %v631_v18  ;;  %v1210_v18 = vld [vmem:[%s5475_s2 + $0x30] sm:$0xff] }
  0x94   :  { %3019 = vmatprep.mubr.msk.f32.mxu0 %vm3642_vm0, %v3643_v6  ;;  %3186 = vmatprep.mubr.msk.f32.mxu1 %vm3642_vm0, %v3643_v6 }
  0x97   :  { %3020 = vmatmul.mubr.msk.f32.gmra.mrb[64].mxu0 %vm89_vm4, %v66_v19  ;;  %3187 = vmatmul.mubr.msk.f32.gmra.mrb[64].mxu1 %vm89_vm4, %v632_v20  ;;  %v1765_v19 = vld [vmem:[%s5476_s3 + $0x30] sm:$0xff] }
  0x98   :  { %3022 = vmatprep.mubr.msk.f32.mxu0 %vm3642_vm0, %v3643_v6  ;;  %3189 = vmatprep.mubr.msk.f32.mxu1 %vm3642_vm0, %v3643_v6 }
  0x9b   :  { %3023 = vmatmul.mubr.msk.f32.gmra.mrb[66].mxu0 %vm89_vm4, %v67_v21  ;;  %3190 = vmatmul.mubr.msk.f32.gmra.mrb[66].mxu1 %vm89_vm4, %v633_v22 }
  0x9c   :  { %3025 = vmatprep.mubr.msk.f32.mxu0 %vm3642_vm0, %v3643_v6  ;;  %3192 = vmatprep.mubr.msk.f32.mxu1 %vm3642_vm0, %v3643_v6 }
  0x9f   :  { %3026 = vmatmul.mubr.msk.f32.gmra.mrb[68].mxu0 %vm89_vm4, %v68_v23  ;;  %3193 = vmatmul.mubr.msk.f32.gmra.mrb[68].mxu1 %vm89_vm4, %v634_v24 }
  0xa0   :  { %3028 = vmatprep.mubr.msk.f32.mxu0 %vm3642_vm0, %v3643_v6  ;;  %3195 = vmatprep.mubr.msk.f32.mxu1 %vm3642_vm0, %v3643_v6 }
  0xa3   :  { %3029 = vmatmul.mubr.msk.f32.gmra.mrb[70].mxu0 %vm89_vm4, %v69_v25  ;;  %3196 = vmatmul.mubr.msk.f32.gmra.mrb[70].mxu1 %vm89_vm4, %v635_v26 }
  0xa4   :  { %3031 = vmatprep.mubr.msk.f32.mxu0 %vm3642_vm0, %v3643_v6  ;;  %3198 = vmatprep.mubr.msk.f32.mxu1 %vm3642_vm0, %v3643_v6 }
  0xa7   :  { %3032 = vmatmul.mubr.msk.f32.gmra.mrb[72].mxu0 %vm89_vm4, %v70_v27  ;;  %3199 = vmatmul.mubr.msk.f32.gmra.mrb[72].mxu1 %vm89_vm4, %v636_v28 }
  0xa8   :  { %3034 = vmatprep.mubr.msk.f32.mxu0 %vm3642_vm0, %v3643_v6  ;;  %3201 = vmatprep.mubr.msk.f32.mxu1 %vm3642_vm0, %v3643_v6 }
  0xab   :  { %3035 = vmatmul.mubr.msk.f32.gmra.mrb[74].mxu0 %vm89_vm4, %v71_v29  ;;  %3202 = vmatmul.mubr.msk.f32.gmra.mrb[74].mxu1 %vm89_vm4, %v637_v30  ;;  %v1211_v29 = vld [vmem:[%s5475_s2 + $0x38] sm:$0xff] }
  0xac   :  { %3037 = vmatprep.mubr.msk.f32.mxu0 %vm3642_vm0, %v3643_v6  ;;  %3204 = vmatprep.mubr.msk.f32.mxu1 %vm3642_vm0, %v3643_v6  ;;  %v1766_v30 = vld [vmem:[%s5476_s3 + $0x38] sm:$0xff] }
  0xaf   :  { %3038 = vmatmul.mubr.msk.f32.gmra.mrb[76].mxu0 %vm89_vm4, %v72_v31  ;;  %3205 = vmatmul.mubr.msk.f32.gmra.mrb[76].mxu1 %vm89_vm4, %v638_v32 }
  0xb0   :  { %3040 = vmatprep.mubr.msk.f32.mxu0 %vm3642_vm0, %v3643_v6  ;;  %3207 = vmatprep.mubr.msk.f32.mxu1 %vm3642_vm0, %v3643_v6 }
  0xb3   :  { %3041 = vmatmul.mubr.msk.f32.gmra.mrb[78].mxu0 %vm89_vm4, %v73_v33  ;;  %3208 = vmatmul.mubr.msk.f32.gmra.mrb[78].mxu1 %vm89_vm4, %v639_v34 }
  0xb4   :  { %3043 = vmatprep.mubr.msk.f32.mxu0 %vm3642_vm0, %v3643_v6  ;;  %3210 = vmatprep.mubr.msk.f32.mxu1 %vm3642_vm0, %v3643_v6 }
  0xb7   :  { %3044 = vmatmul.mubr.msk.f32.gmra.mrb[80].mxu0 %vm89_vm4, %v74_v35  ;;  %3211 = vmatmul.mubr.msk.f32.gmra.mrb[80].mxu1 %vm89_vm4, %v640_v36 }
  0xb8   :  { %3046 = vmatprep.mubr.msk.f32.mxu0 %vm3642_vm0, %v3643_v6  ;;  %3213 = vmatprep.mubr.msk.f32.mxu1 %vm3642_vm0, %v3643_v6 }
  0xbb   :  { %3047 = vmatmul.mubr.msk.f32.gmra.mrb[82].mxu0 %vm89_vm4, %v75_v37  ;;  %3214 = vmatmul.mubr.msk.f32.gmra.mrb[82].mxu1 %vm89_vm4, %v641_v38 }
  0xbc   :  { %3049 = vmatprep.mubr.msk.f32.mxu0 %vm3642_vm0, %v3643_v6  ;;  %3216 = vmatprep.mubr.msk.f32.mxu1 %vm3642_vm0, %v3643_v6 }
  0xbf   :  { %3050 = vmatmul.mubr.msk.f32.gmra.mrb[84].mxu0 %vm89_vm4, %v76_v39  ;;  %3217 = vmatmul.mubr.msk.f32.gmra.mrb[84].mxu1 %vm89_vm4, %v642_v40  ;;  %v1212_v40 = vld [vmem:[%s5475_s2 + $0x40] sm:$0xff] }
  0xc0   :  { %3052 = vmatprep.mubr.msk.f32.mxu0 %vm3642_vm0, %v3643_v6  ;;  %3219 = vmatprep.mubr.msk.f32.mxu1 %vm3642_vm0, %v3643_v6 }
  0xc3   :  { %3053 = vmatmul.mubr.msk.f32.gmra.mrb[86].mxu0 %vm89_vm4, %v77_v41  ;;  %3220 = vmatmul.mubr.msk.f32.gmra.mrb[86].mxu1 %vm89_vm4, %v643_v42  ;;  %v1767_v41 = vld [vmem:[%s5476_s3 + $0x40] sm:$0xff] }
  0xc4   :  { %3055 = vmatprep.mubr.msk.f32.mxu0 %vm3642_vm0, %v3643_v6  ;;  %3222 = vmatprep.mubr.msk.f32.mxu1 %vm3642_vm0, %v3643_v6 }
  0xc7   :  { %3056 = vmatmul.mubr.msk.f32.gmra.mrb[88].mxu0 %vm89_vm4, %v78_v43  ;;  %3223 = vmatmul.mubr.msk.f32.gmra.mrb[88].mxu1 %vm89_vm4, %v644_v44 }
  0xc8   :  { %3058 = vmatprep.mubr.msk.f32.mxu0 %vm3642_vm0, %v3643_v6  ;;  %3225 = vmatprep.mubr.msk.f32.mxu1 %vm3642_vm0, %v3643_v6 }
  0xcb   :  { %3059 = vmatmul.mubr.msk.f32.gmra.mrb[90].mxu0 %vm89_vm4, %v79_v45  ;;  %3226 = vmatmul.mubr.msk.f32.gmra.mrb[90].mxu1 %vm89_vm4, %v645_v46 }
  0xcc   :  { %3061 = vmatprep.mubr.msk.f32.mxu0 %vm3642_vm0, %v3643_v6  ;;  %3228 = vmatprep.mubr.msk.f32.mxu1 %vm3642_vm0, %v3643_v6 }
  0xcf   :  { %3062 = vmatmul.mubr.msk.f32.gmra.mrb[92].mxu0 %vm89_vm4, %v80_v47  ;;  %3229 = vmatmul.mubr.msk.f32.gmra.mrb[92].mxu1 %vm89_vm4, %v646_v48 }
  0xd0   :  { %3064 = vmatprep.mubr.msk.f32.mxu0 %vm3642_vm0, %v3643_v6  ;;  %3231 = vmatprep.mubr.msk.f32.mxu1 %vm3642_vm0, %v3643_v6 }
  0xd3   :  { %3065 = vmatmul.mubr.msk.f32.gmra.mrb[94].mxu0 %vm89_vm4, %v81_v49  ;;  %3232 = vmatmul.mubr.msk.f32.gmra.mrb[94].mxu1 %vm89_vm4, %v647_v50 }
  0xd4   :  { %3067 = vmatprep.mubr.msk.f32.mxu0 %vm3642_vm0, %v3643_v6  ;;  %3234 = vmatprep.mubr.msk.f32.mxu1 %vm3642_vm0, %v3643_v6 }
  0xd7   :  { %3068 = vmatmul.mubr.msk.f32.gmra.mrb[96].mxu0 %vm89_vm4, %v82_v51  ;;  %3235 = vmatmul.mubr.msk.f32.gmra.mrb[96].mxu1 %vm89_vm4, %v648_v52  ;;  %v1213_v51 = vld [vmem:[%s5475_s2 + $0x48] sm:$0xff] }
  0xd8   :  { %3257 = vmatprep.mubr.msk.f32.mxu0 %vm3642_vm0, %v3643_v6  ;;  %3424 = vmatprep.mubr.msk.f32.mxu1 %vm3642_vm0, %v3643_v6  ;;  %v1768_v52 = vld [vmem:[%s5476_s3 + $0x48] sm:$0xff] }
  0xdb   :  { %3258 = vmatmul.mubr.msk.f32.vlgmr.msra.gmra.mrb[98].mxu0 %vm89_vm4, %v1204_v53  ;;  %3425 = vmatmul.mubr.msk.f32.vlgmr.msra.gmra.mrb[98].mxu1 %vm89_vm4, %v1759_v54 }
  0xdc   :  { %3260 = vmatprep.mubr.msk.f32.mxu0 %vm3642_vm0, %v3643_v6  ;;  %3427 = vmatprep.mubr.msk.f32.mxu1 %vm3642_vm0, %v3643_v6 }
  0xdf   :  { %3261 = vmatmul.mubr.msk.f32.gmra.mrb[100].mxu0 %vm89_vm4, %v1205_v55  ;;  %3428 = vmatmul.mubr.msk.f32.gmra.mrb[100].mxu1 %vm89_vm4, %v1760_v56 }
  0xe0   :  { %3263 = vmatprep.mubr.msk.f32.mxu0 %vm3642_vm0, %v3643_v6  ;;  %3430 = vmatprep.mubr.msk.f32.mxu1 %vm3642_vm0, %v3643_v6 }
  0xe3   :  { %3264 = vmatmul.mubr.msk.f32.gmra.mrb[102].mxu0 %vm89_vm4, %v1206_v57  ;;  %3431 = vmatmul.mubr.msk.f32.gmra.mrb[102].mxu1 %vm89_vm4, %v1761_v58 }
  0xe4   :  { %3266 = vmatprep.mubr.msk.f32.mxu0 %vm3642_vm0, %v3643_v6  ;;  %3433 = vmatprep.mubr.msk.f32.mxu1 %vm3642_vm0, %v3643_v6 }
  0xe7   :  { %3267 = vmatmul.mubr.msk.f32.gmra.mrb[104].mxu0 %vm89_vm4, %v1207_v59  ;;  %3434 = vmatmul.mubr.msk.f32.gmra.mrb[104].mxu1 %vm89_vm4, %v1762_v60 }
  0xe8   :  { %3269 = vmatprep.mubr.msk.f32.mxu0 %vm3642_vm0, %v3643_v6  ;;  %3436 = vmatprep.mubr.msk.f32.mxu1 %vm3642_vm0, %v3643_v6 }
  0xea   :  { %v307_v0 = vpop.f32.mrb[0].mxu0  ;;  %v862_v1 = vpop.f32.mrb[0].mxu1 }
  0xeb   :  { %v308_v2 = vadd.f32 %v4381_v61, %v307_v0  ;;  %v863_v3 = vadd.f32 %v4381_v61, %v862_v1  ;;  %v2925_v4 = vpop.f32.mrb[1].mxu0  ;;  %v3092_v5 = vpop.f32.mrb[1].mxu1  ;;  %3270 = vmatmul.mubr.msk.f32.gmra.mrb[106].mxu0 %vm89_vm4, %v1208_v62  ;;  %3437 = vmatmul.mubr.msk.f32.gmra.mrb[106].mxu1 %vm89_vm4, %v1763_v63  ;;  %v1214_v63 = vld [vmem:[%s5475_s2 + $0x50] sm:$0xff] }
  0xec   :  { %3272 = vmatprep.mubr.msk.f32.mxu0 %vm3642_vm0, %v3643_v6  ;;  %3439 = vmatprep.mubr.msk.f32.mxu1 %vm3642_vm0, %v3643_v6  ;;  %v1769_v0 = vld [vmem:[%s5476_s3 + $0x50] sm:$0xff] }
  0xed   :  { %v551_v9 = vmax.f32 %v308_v2, 0.0  ;;  %v1106_v10 = vmax.f32 %v863_v3, 0.0 }
  0xee   :  { %v312_v11 = vpop.f32.mrb[2].mxu0  ;;  %v867_v12 = vpop.f32.mrb[2].mxu1 }
  0xef   :  { %v4407_v13 = vmax.f32 %v551_v9, %v1106_v10  ;;  %v313_v14 = vadd.f32 %v4381_v61, %v312_v11  ;;  %v868_v15 = vadd.f32 %v4381_v61, %v867_v12  ;;  %v2928_v16 = vpop.f32.mrb[3].mxu0  ;;  %v3095_v17 = vpop.f32.mrb[3].mxu1  ;;  %3273 = vmatmul.mubr.msk.f32.gmra.mrb[108].mxu0 %vm89_vm4, %v1209_v7  ;;  %3440 = vmatmul.mubr.msk.f32.gmra.mrb[108].mxu1 %vm89_vm4, %v1764_v8  ;;  %v1215_v11 = vld [vmem:[%s5475_s2 + $0x58] sm:$0xff] }
  0xf0   :  { %3275 = vmatprep.mubr.msk.f32.mxu0 %vm3642_vm0, %v3643_v6  ;;  %3442 = vmatprep.mubr.msk.f32.mxu1 %vm3642_vm0, %v3643_v6  ;;  %v1770_v12 = vld [vmem:[%s5476_s3 + $0x58] sm:$0xff] }
  0xf1   :  { %v552_v20 = vmax.f32 %v313_v14, 0.0  ;;  %v1107_v21 = vmax.f32 %v868_v15, 0.0 }
  0xf2   :  { %v317_v22 = vpop.f32.mrb[4].mxu0  ;;  %v872_v23 = vpop.f32.mrb[4].mxu1 }
  0xf3   :  { %v4423_v24 = vmax.f32 %v552_v20, %v1107_v21  ;;  %v318_v25 = vadd.f32 %v4381_v61, %v317_v22  ;;  %v873_v26 = vadd.f32 %v4381_v61, %v872_v23  ;;  %v2931_v27 = vpop.f32.mrb[5].mxu0  ;;  %v3098_v28 = vpop.f32.mrb[5].mxu1  ;;  %3276 = vmatmul.mubr.msk.f32.gmra.mrb[110].mxu0 %vm89_vm4, %v1210_v18  ;;  %3443 = vmatmul.mubr.msk.f32.gmra.mrb[110].mxu1 %vm89_vm4, %v1765_v19  ;;  %v1216_v23 = vld [vmem:[%s5475_s2 + $0x60] sm:$0xff] }
  0xf4   :  { %3278 = vmatprep.mubr.msk.f32.mxu0 %vm3642_vm0, %v3643_v6  ;;  %3445 = vmatprep.mubr.msk.f32.mxu1 %vm3642_vm0, %v3643_v6 }
  0xf5   :  { %v553_v31 = vmax.f32 %v318_v25, 0.0  ;;  %v1108_v32 = vmax.f32 %v873_v26, 0.0  ;;  %v1771_v25 = vld [vmem:[%s5476_s3 + $0x60] sm:$0xff] }
  0xf6   :  { %v322_v33 = vpop.f32.mrb[6].mxu0  ;;  %v877_v34 = vpop.f32.mrb[6].mxu1 }
  0xf7   :  { %v4439_v35 = vmax.f32 %v553_v31, %v1108_v32  ;;  %v323_v36 = vadd.f32 %v4381_v61, %v322_v33  ;;  %v878_v37 = vadd.f32 %v4381_v61, %v877_v34  ;;  %v2934_v38 = vpop.f32.mrb[7].mxu0  ;;  %v3101_v39 = vpop.f32.mrb[7].mxu1  ;;  %3279 = vmatmul.mubr.msk.f32.gmra.mrb[112].mxu0 %vm89_vm4, %v1211_v29  ;;  %3446 = vmatmul.mubr.msk.f32.gmra.mrb[112].mxu1 %vm89_vm4, %v1766_v30 }
  0xf8   :  { %3281 = vmatprep.mubr.msk.f32.mxu0 %vm3642_vm0, %v3643_v6  ;;  %3448 = vmatprep.mubr.msk.f32.mxu1 %vm3642_vm0, %v3643_v6 }
  0xf9   :  { %v554_v42 = vmax.f32 %v323_v36, 0.0  ;;  %v1109_v43 = vmax.f32 %v878_v37, 0.0  ;;  %v1217_v36 = vld [vmem:[%s5475_s2 + $0x68] sm:$0xff] }
  0xfa   :  { %v327_v44 = vpop.f32.mrb[8].mxu0  ;;  %v882_v45 = vpop.f32.mrb[8].mxu1  ;;  %v1772_v37 = vld [vmem:[%s5476_s3 + $0x68] sm:$0xff] }
  0xfb   :  { %v4455_v46 = vmax.f32 %v554_v42, %v1109_v43  ;;  %v328_v47 = vadd.f32 %v4381_v61, %v327_v44  ;;  %v883_v48 = vadd.f32 %v4381_v61, %v882_v45  ;;  %v2937_v49 = vpop.f32.mrb[9].mxu0  ;;  %v3104_v50 = vpop.f32.mrb[9].mxu1  ;;  %3282 = vmatmul.mubr.msk.f32.gmra.mrb[114].mxu0 %vm89_vm4, %v1212_v40  ;;  %3449 = vmatmul.mubr.msk.f32.gmra.mrb[114].mxu1 %vm89_vm4, %v1767_v41 }
  0xfc   :  { %3284 = vmatprep.mubr.msk.f32.mxu0 %vm3642_vm0, %v3643_v6  ;;  %3451 = vmatprep.mubr.msk.f32.mxu1 %vm3642_vm0, %v3643_v6  ;;  %v1773_v49 = vld [vmem:[%s5476_s3 + $0x70] sm:$0xff] }
  0xfd   :  { %v555_v53 = vmax.f32 %v328_v47, 0.0  ;;  %v1110_v54 = vmax.f32 %v883_v48, 0.0  ;;  %v1218_v48 = vld [vmem:[%s5475_s2 + $0x70] sm:$0xff] }
  0xfe   :  { %v332_v55 = vpop.f32.mrb[10].mxu0  ;;  %v887_v56 = vpop.f32.mrb[10].mxu1 }
  0xff   :  { %v4471_v57 = vmax.f32 %v555_v53, %v1110_v54  ;;  %v333_v58 = vadd.f32 %v4381_v61, %v332_v55  ;;  %v888_v59 = vadd.f32 %v4381_v61, %v887_v56  ;;  %v2940_v60 = vpop.f32.mrb[11].mxu0  ;;  %v3107_v62 = vpop.f32.mrb[11].mxu1  ;;  %3285 = vmatmul.mubr.msk.f32.gmra.mrb[116].mxu0 %vm89_vm4, %v1213_v51  ;;  %3452 = vmatmul.mubr.msk.f32.gmra.mrb[116].mxu1 %vm89_vm4, %v1768_v52 }
 0x100   :  { %3287 = vmatprep.mubr.msk.f32.mxu0 %vm3642_vm0, %v3643_v6  ;;  %3454 = vmatprep.mubr.msk.f32.mxu1 %vm3642_vm0, %v3643_v6  ;;  %v1219_v60 = vld [vmem:[%s5475_s2 + $0x78] sm:$0xff] }
 0x101   :  { %v556_v1 = vmax.f32 %v333_v58, 0.0  ;;  %v1111_v2 = vmax.f32 %v888_v59, 0.0  ;;  %v1774_v62 = vld [vmem:[%s5476_s3 + $0x78] sm:$0xff] }
 0x102   :  { %v337_v3 = vpop.f32.mrb[12].mxu0  ;;  %v892_v4 = vpop.f32.mrb[12].mxu1 }
 0x103   :  { %v4487_v5 = vmax.f32 %v556_v1, %v1111_v2  ;;  %v338_v7 = vadd.f32 %v4381_v61, %v337_v3  ;;  %v893_v8 = vadd.f32 %v4381_v61, %v892_v4  ;;  %v2943_v9 = vpop.f32.mrb[13].mxu0  ;;  %v3110_v10 = vpop.f32.mrb[13].mxu1  ;;  %3288 = vmatmul.mubr.msk.f32.gmra.mrb[118].mxu0 %vm89_vm4, %v1214_v63  ;;  %3455 = vmatmul.mubr.msk.f32.gmra.mrb[118].mxu1 %vm89_vm4, %v1769_v0 }
 0x104   :  { %3290 = vmatprep.mubr.msk.f32.mxu0 %vm3642_vm0, %v3643_v6  ;;  %3457 = vmatprep.mubr.msk.f32.mxu1 %vm3642_vm0, %v3643_v6  ;;  %v1220_v10 = vld [vmem:[%s5475_s2 + $0x80] sm:$0xff] }
 0x105   :  { %v557_v14 = vmax.f32 %v338_v7, 0.0  ;;  %v1112_v15 = vmax.f32 %v893_v8, 0.0 }
 0x106   :  { %v342_v16 = vpop.f32.mrb[14].mxu0  ;;  %v897_v17 = vpop.f32.mrb[14].mxu1 }
 0x107   :  { %v4503_v18 = vmax.f32 %v557_v14, %v1112_v15  ;;  %v343_v19 = vadd.f32 %v4381_v61, %v342_v16  ;;  %v898_v20 = vadd.f32 %v4381_v61, %v897_v17  ;;  %v2946_v21 = vpop.f32.mrb[15].mxu0  ;;  %v3113_v22 = vpop.f32.mrb[15].mxu1  ;;  %3291 = vmatmul.mubr.msk.f32.gmra.mrb[120].mxu0 %vm89_vm4, %v1215_v11  ;;  %3458 = vmatmul.mubr.msk.f32.gmra.mrb[120].mxu1 %vm89_vm4, %v1770_v12  ;;  %v1775_v11 = vld [vmem:[%s5476_s3 + $0x80] sm:$0xff] }
 0x108   :  { %3293 = vmatprep.mubr.msk.f32.mxu0 %vm3642_vm0, %v3643_v6  ;;  %3460 = vmatprep.mubr.msk.f32.mxu1 %vm3642_vm0, %v3643_v6 }
 0x109   :  { %v558_v26 = vmax.f32 %v343_v19, 0.0  ;;  %v1113_v27 = vmax.f32 %v898_v20, 0.0 }
 0x10a   :  { %v347_v28 = vpop.f32.mrb[16].mxu0  ;;  %v902_v29 = vpop.f32.mrb[16].mxu1 }
 0x10b   :  { %v4519_v30 = vmax.f32 %v558_v26, %v1113_v27  ;;  %v348_v31 = vadd.f32 %v4381_v61, %v347_v28  ;;  %v903_v32 = vadd.f32 %v4381_v61, %v902_v29  ;;  %v2949_v33 = vpop.f32.mrb[17].mxu0  ;;  %v3116_v34 = vpop.f32.mrb[17].mxu1  ;;  %3294 = vmatmul.mubr.msk.f32.gmra.mrb[122].mxu0 %vm89_vm4, %v1216_v23  ;;  %3461 = vmatmul.mubr.msk.f32.gmra.mrb[122].mxu1 %vm89_vm4, %v1771_v25  ;;  %v1221_v23 = vld [vmem:[%s5475_s2 + $0x88] sm:$0xff] }
 0x10c   :  { %3296 = vmatprep.mubr.msk.f32.mxu0 %vm3642_vm0, %v3643_v6  ;;  %3463 = vmatprep.mubr.msk.f32.mxu1 %vm3642_vm0, %v3643_v6  ;;  %v1776_v25 = vld [vmem:[%s5476_s3 + $0x88] sm:$0xff] }
 0x10d   :  { %v559_v38 = vmax.f32 %v348_v31, 0.0  ;;  %v1114_v39 = vmax.f32 %v903_v32, 0.0 }
 0x10e   :  { %v352_v40 = vpop.f32.mrb[18].mxu0  ;;  %v907_v41 = vpop.f32.mrb[18].mxu1 }
 0x10f   :  { %v4535_v42 = vmax.f32 %v559_v38, %v1114_v39  ;;  %v353_v43 = vadd.f32 %v4381_v61, %v352_v40  ;;  %v908_v44 = vadd.f32 %v4381_v61, %v907_v41  ;;  %v2952_v45 = vpop.f32.mrb[19].mxu0  ;;  %v3119_v47 = vpop.f32.mrb[19].mxu1  ;;  %3297 = vmatmul.mubr.msk.f32.gmra.mrb[124].mxu0 %vm89_vm4, %v1217_v36  ;;  %3464 = vmatmul.mubr.msk.f32.gmra.mrb[124].mxu1 %vm89_vm4, %v1772_v37  ;;  %v1222_v37 = vld [vmem:[%s5475_s2 + $0x90] sm:$0xff] }
 0x110   :  { %3299 = vmatprep.mubr.msk.f32.mxu0 %vm3642_vm0, %v3643_v6  ;;  %3466 = vmatprep.mubr.msk.f32.mxu1 %vm3642_vm0, %v3643_v6  ;;  %v1777_v38 = vld [vmem:[%s5476_s3 + $0x90] sm:$0xff] }
 0x111   :  { %v560_v50 = vmax.f32 %v353_v43, 0.0  ;;  %v1115_v51 = vmax.f32 %v908_v44, 0.0 }
 0x112   :  { %v357_v52 = vpop.f32.mrb[20].mxu0  ;;  %v912_v53 = vpop.f32.mrb[20].mxu1 }
 0x113   :  { %v4551_v54 = vmax.f32 %v560_v50, %v1115_v51  ;;  %v358_v55 = vadd.f32 %v4381_v61, %v357_v52  ;;  %v913_v56 = vadd.f32 %v4381_v61, %v912_v53  ;;  %v2955_v58 = vpop.f32.mrb[21].mxu0  ;;  %v3122_v59 = vpop.f32.mrb[21].mxu1  ;;  %3300 = vmatmul.mubr.msk.f32.gmra.mrb[126].mxu0 %vm89_vm4, %v1218_v48  ;;  %3467 = vmatmul.mubr.msk.f32.gmra.mrb[126].mxu1 %vm89_vm4, %v1773_v49  ;;  %v1223_v50 = vld [vmem:[%s5475_s2 + $0x98] sm:$0xff] }
 0x114   :  { %3302 = vmatprep.mubr.msk.f32.mxu0 %vm3642_vm0, %v3643_v6  ;;  %3469 = vmatprep.mubr.msk.f32.mxu1 %vm3642_vm0, %v3643_v6  ;;  %v1778_v51 = vld [vmem:[%s5476_s3 + $0x98] sm:$0xff] }
 0x115   :  { %v561_v63 = vmax.f32 %v358_v55, 0.0  ;;  %v1116_v0 = vmax.f32 %v913_v56, 0.0 }
 0x116   :  { %v362_v1 = vpop.f32.mrb[22].mxu0  ;;  %v917_v2 = vpop.f32.mrb[22].mxu1 }
 0x117   :  { %v4567_v3 = vmax.f32 %v561_v63, %v1116_v0  ;;  %v363_v4 = vadd.f32 %v4381_v61, %v362_v1  ;;  %v918_v7 = vadd.f32 %v4381_v61, %v917_v2  ;;  %v2958_v8 = vpop.f32.mrb[23].mxu0  ;;  %v3125_v9 = vpop.f32.mrb[23].mxu1  ;;  %3303 = vmatmul.mubr.msk.f32.gmra.mrb[128].mxu0 %vm89_vm4, %v1219_v60  ;;  %3470 = vmatmul.mubr.msk.f32.gmra.mrb[128].mxu1 %vm89_vm4, %v1774_v62  ;;  %v1224_v0 = vld [vmem:[%s5475_s2 + $0xa0] sm:$0xff] }
 0x118   :  { %3305 = vmatprep.mubr.msk.f32.mxu0 %vm3642_vm0, %v3643_v6  ;;  %3472 = vmatprep.mubr.msk.f32.mxu1 %vm3642_vm0, %v3643_v6  ;;  %v1779_v1 = vld [vmem:[%s5476_s3 + $0xa0] sm:$0xff] }
 0x119   :  { %v562_v12 = vmax.f32 %v363_v4, 0.0  ;;  %v1117_v14 = vmax.f32 %v918_v7, 0.0 }
 0x11a   :  { %v367_v15 = vpop.f32.mrb[24].mxu0  ;;  %v922_v16 = vpop.f32.mrb[24].mxu1 }
 0x11b   :  { %v4583_v17 = vmax.f32 %v562_v12, %v1117_v14  ;;  %v368_v19 = vadd.f32 %v4381_v61, %v367_v15  ;;  %v923_v20 = vadd.f32 %v4381_v61, %v922_v16  ;;  %v2961_v21 = vpop.f32.mrb[25].mxu0  ;;  %v3128_v22 = vpop.f32.mrb[25].mxu1  ;;  %3306 = vmatmul.mubr.msk.f32.gmra.mrb[130].mxu0 %vm89_vm4, %v1220_v10  ;;  %3473 = vmatmul.mubr.msk.f32.gmra.mrb[130].mxu1 %vm89_vm4, %v1775_v11  ;;  %v1225_v15 = vld [vmem:[%s5475_s2 + $0xa8] sm:$0xff] }
 0x11c   :  { %3308 = vmatprep.mubr.msk.f32.mxu0 %vm3642_vm0, %v3643_v6  ;;  %3475 = vmatprep.mubr.msk.f32.mxu1 %vm3642_vm0, %v3643_v6  ;;  %v1780_v16 = vld [vmem:[%s5476_s3 + $0xa8] sm:$0xff] }
 0x11d   :  { %v563_v26 = vmax.f32 %v368_v19, 0.0  ;;  %v1118_v27 = vmax.f32 %v923_v20, 0.0 }
 0x11e   :  { %v372_v28 = vpop.f32.mrb[26].mxu0  ;;  %v927_v29 = vpop.f32.mrb[26].mxu1 }
 0x11f   :  { %v4599_v31 = vmax.f32 %v563_v26, %v1118_v27  ;;  %v373_v32 = vadd.f32 %v4381_v61, %v372_v28  ;;  %v928_v33 = vadd.f32 %v4381_v61, %v927_v29  ;;  %v2964_v34 = vpop.f32.mrb[27].mxu0  ;;  %v3131_v36 = vpop.f32.mrb[27].mxu1  ;;  %3309 = vmatmul.mubr.msk.f32.gmra.mrb[132].mxu0 %vm89_vm4, %v1221_v23  ;;  %3476 = vmatmul.mubr.msk.f32.gmra.mrb[132].mxu1 %vm89_vm4, %v1776_v25  ;;  %v1226_v29 = vld [vmem:[%s5475_s2 + $0xb0] sm:$0xff] }
 0x120   :  { %3311 = vmatprep.mubr.msk.f32.mxu0 %vm3642_vm0, %v3643_v6  ;;  %3478 = vmatprep.mubr.msk.f32.mxu1 %vm3642_vm0, %v3643_v6 }
 0x121   :  { %v564_v39 = vmax.f32 %v373_v32, 0.0  ;;  %v1119_v40 = vmax.f32 %v928_v33, 0.0  ;;  %v1781_v32 = vld [vmem:[%s5476_s3 + $0xb0] sm:$0xff] }
 0x122   :  { %v377_v41 = vpop.f32.mrb[28].mxu0  ;;  %v932_v43 = vpop.f32.mrb[28].mxu1 }
 0x123   :  { %v4615_v44 = vmax.f32 %v564_v39, %v1119_v40  ;;  %v378_v45 = vadd.f32 %v4381_v61, %v377_v41  ;;  %v933_v47 = vadd.f32 %v4381_v61, %v932_v43  ;;  %v2967_v48 = vpop.f32.mrb[29].mxu0  ;;  %v3134_v49 = vpop.f32.mrb[29].mxu1  ;;  %3312 = vmatmul.mubr.msk.f32.gmra.mrb[134].mxu0 %vm89_vm4, %v1222_v37  ;;  %3479 = vmatmul.mubr.msk.f32.gmra.mrb[134].mxu1 %vm89_vm4, %v1777_v38 }
 0x124   :  { %3314 = vmatprep.mubr.msk.f32.mxu0 %vm3642_vm0, %v3643_v6  ;;  %3481 = vmatprep.mubr.msk.f32.mxu1 %vm3642_vm0, %v3643_v6 }
 0x125   :  { %v565_v52 = vmax.f32 %v378_v45, 0.0  ;;  %v1120_v53 = vmax.f32 %v933_v47, 0.0  ;;  %v1227_v45 = vld [vmem:[%s5475_s2 + $0xb8] sm:$0xff] }
 0x126   :  { %v382_v55 = vpop.f32.mrb[30].mxu0  ;;  %v937_v56 = vpop.f32.mrb[30].mxu1  ;;  %v1782_v47 = vld [vmem:[%s5476_s3 + $0xb8] sm:$0xff] }
 0x127   :  { %v4631_v58 = vmax.f32 %v565_v52, %v1120_v53  ;;  %v383_v59 = vadd.f32 %v4381_v61, %v382_v55  ;;  %v938_v60 = vadd.f32 %v4381_v61, %v937_v56  ;;  %v2970_v62 = vpop.f32.mrb[31].mxu0  ;;  %v3137_v63 = vpop.f32.mrb[31].mxu1  ;;  %3315 = vmatmul.mubr.msk.f32.gmra.mrb[136].mxu0 %vm89_vm4, %v1223_v50  ;;  %3482 = vmatmul.mubr.msk.f32.gmra.mrb[136].mxu1 %vm89_vm4, %v1778_v51 }
 0x128   :  { %3317 = vmatprep.mubr.msk.f32.mxu0 %vm3642_vm0, %v3643_v6  ;;  %3484 = vmatprep.mubr.msk.f32.mxu1 %vm3642_vm0, %v3643_v6  ;;  %v1783_v62 = vld [vmem:[%s5476_s3 + $0xc0] sm:$0xff] }
 0x129   :  { %v566_v2 = vmax.f32 %v383_v59, 0.0  ;;  %v1121_v4 = vmax.f32 %v938_v60, 0.0  ;;  %v1228_v60 = vld [vmem:[%s5475_s2 + $0xc0] sm:$0xff] }
 0x12a   :  { %v387_v7 = vpop.f32.mrb[32].mxu0  ;;  %v942_v8 = vpop.f32.mrb[32].mxu1 }
 0x12b   :  { %v4647_v9 = vmax.f32 %v566_v2, %v1121_v4  ;;  %v388_v10 = vadd.f32 %v4381_v61, %v387_v7  ;;  %v943_v11 = vadd.f32 %v4381_v61, %v942_v8  ;;  %v2973_v12 = vpop.f32.mrb[33].mxu0  ;;  %v3140_v14 = vpop.f32.mrb[33].mxu1  ;;  %3318 = vmatmul.mubr.msk.f32.gmra.mrb[138].mxu0 %vm89_vm4, %v1224_v0  ;;  %3485 = vmatmul.mubr.msk.f32.gmra.mrb[138].mxu1 %vm89_vm4, %v1779_v1 }
 0x12c   :  { %3320 = vmatprep.mubr.msk.f32.mxu0 %vm3642_vm0, %v3643_v6  ;;  %3487 = vmatprep.mubr.msk.f32.mxu1 %vm3642_vm0, %v3643_v6  ;;  %v1229_v12 = vld [vmem:[%s5475_s2 + $0xc8] sm:$0xff] }
 0x12d   :  { %v567_v19 = vmax.f32 %v388_v10, 0.0  ;;  %v1122_v20 = vmax.f32 %v943_v11, 0.0  ;;  %v1784_v14 = vld [vmem:[%s5476_s3 + $0xc8] sm:$0xff] }
 0x12e   :  { %v392_v21 = vpop.f32.mrb[34].mxu0  ;;  %v947_v22 = vpop.f32.mrb[34].mxu1 }
 0x12f   :  { %v4663_v23 = vmax.f32 %v567_v19, %v1122_v20  ;;  %v393_v25 = vadd.f32 %v4381_v61, %v392_v21  ;;  %v948_v26 = vadd.f32 %v4381_v61, %v947_v22  ;;  %v2976_v27 = vpop.f32.mrb[35].mxu0  ;;  %v3143_v28 = vpop.f32.mrb[35].mxu1  ;;  %3321 = vmatmul.mubr.msk.f32.gmra.mrb[140].mxu0 %vm89_vm4, %v1225_v15  ;;  %3488 = vmatmul.mubr.msk.f32.gmra.mrb[140].mxu1 %vm89_vm4, %v1780_v16 }
 0x130   :  { %3323 = vmatprep.mubr.msk.f32.mxu0 %vm3642_vm0, %v3643_v6  ;;  %3490 = vmatprep.mubr.msk.f32.mxu1 %vm3642_vm0, %v3643_v6  ;;  %v1230_v28 = vld [vmem:[%s5475_s2 + $0xd0] sm:$0xff] }
 0x131   :  { %v568_v33 = vmax.f32 %v393_v25, 0.0  ;;  %v1123_v34 = vmax.f32 %v948_v26, 0.0 }
 0x132   :  { %v397_v36 = vpop.f32.mrb[36].mxu0  ;;  %v952_v37 = vpop.f32.mrb[36].mxu1 }
 0x133   :  { %v4679_v38 = vmax.f32 %v568_v33, %v1123_v34  ;;  %v398_v39 = vadd.f32 %v4381_v61, %v397_v36  ;;  %v953_v40 = vadd.f32 %v4381_v61, %v952_v37  ;;  %v2979_v41 = vpop.f32.mrb[37].mxu0  ;;  %v3146_v43 = vpop.f32.mrb[37].mxu1  ;;  %3324 = vmatmul.mubr.msk.f32.gmra.mrb[142].mxu0 %vm89_vm4, %v1226_v29  ;;  %3491 = vmatmul.mubr.msk.f32.gmra.mrb[142].mxu1 %vm89_vm4, %v1781_v32  ;;  %v1785_v29 = vld [vmem:[%s5476_s3 + $0xd0] sm:$0xff] }
 0x134   :  { %3326 = vmatprep.mubr.msk.f32.mxu0 %vm3642_vm0, %v3643_v6  ;;  %3493 = vmatprep.mubr.msk.f32.mxu1 %vm3642_vm0, %v3643_v6 }
 0x135   :  { %v569_v48 = vmax.f32 %v398_v39, 0.0  ;;  %v1124_v49 = vmax.f32 %v953_v40, 0.0 }
 0x136   :  { %v402_v50 = vpop.f32.mrb[38].mxu0  ;;  %v957_v51 = vpop.f32.mrb[38].mxu1 }
 0x137   :  { %v4695_v52 = vmax.f32 %v569_v48, %v1124_v49  ;;  %v403_v53 = vadd.f32 %v4381_v61, %v402_v50  ;;  %v958_v55 = vadd.f32 %v4381_v61, %v957_v51  ;;  %v2982_v56 = vpop.f32.mrb[39].mxu0  ;;  %v3149_v59 = vpop.f32.mrb[39].mxu1  ;;  %3327 = vmatmul.mubr.msk.f32.gmra.mrb[144].mxu0 %vm89_vm4, %v1227_v45  ;;  %3494 = vmatmul.mubr.msk.f32.gmra.mrb[144].mxu1 %vm89_vm4, %v1782_v47  ;;  %v1231_v45 = vld [vmem:[%s5475_s2 + $0xd8] sm:$0xff] }
 0x138   :  { %3329 = vmatprep.mubr.msk.f32.mxu0 %vm3642_vm0, %v3643_v6  ;;  %3496 = vmatprep.mubr.msk.f32.mxu1 %vm3642_vm0, %v3643_v6  ;;  %v1786_v47 = vld [vmem:[%s5476_s3 + $0xd8] sm:$0xff] }
 0x139   :  { %v570_v63 = vmax.f32 %v403_v53, 0.0  ;;  %v1125_v0 = vmax.f32 %v958_v55, 0.0 }
 0x13a   :  { %v407_v1 = vpop.f32.mrb[40].mxu0  ;;  %v962_v2 = vpop.f32.mrb[40].mxu1 }
 0x13b   :  { %v4711_v4 = vmax.f32 %v570_v63, %v1125_v0  ;;  %v408_v7 = vadd.f32 %v4381_v61, %v407_v1  ;;  %v963_v8 = vadd.f32 %v4381_v61, %v962_v2  ;;  %v2985_v10 = vpop.f32.mrb[41].mxu0  ;;  %v3152_v11 = vpop.f32.mrb[41].mxu1  ;;  %3330 = vmatmul.mubr.msk.f32.gmra.mrb[146].mxu0 %vm89_vm4, %v1228_v60  ;;  %3497 = vmatmul.mubr.msk.f32.gmra.mrb[146].mxu1 %vm89_vm4, %v1783_v62  ;;  %v1232_v62 = vld [vmem:[%s5475_s2 + $0xe0] sm:$0xff] }
 0x13c   :  { %3332 = vmatprep.mubr.msk.f32.mxu0 %vm3642_vm0, %v3643_v6  ;;  %3499 = vmatprep.mubr.msk.f32.mxu1 %vm3642_vm0, %v3643_v6  ;;  %v1787_v63 = vld [vmem:[%s5476_s3 + $0xe0] sm:$0xff] }
 0x13d   :  { %v571_v15 = vmax.f32 %v408_v7, 0.0  ;;  %v1126_v16 = vmax.f32 %v963_v8, 0.0 }
 0x13e   :  { %v412_v19 = vpop.f32.mrb[42].mxu0  ;;  %v967_v20 = vpop.f32.mrb[42].mxu1 }
 0x13f   :  { %v4727_v21 = vmax.f32 %v571_v15, %v1126_v16  ;;  %v413_v22 = vadd.f32 %v4381_v61, %v412_v19  ;;  %v968_v25 = vadd.f32 %v4381_v61, %v967_v20  ;;  %v2988_v26 = vpop.f32.mrb[43].mxu0  ;;  %v3155_v27 = vpop.f32.mrb[43].mxu1  ;;  %3333 = vmatmul.mubr.msk.f32.gmra.mrb[148].mxu0 %vm89_vm4, %v1229_v12  ;;  %3500 = vmatmul.mubr.msk.f32.gmra.mrb[148].mxu1 %vm89_vm4, %v1784_v14  ;;  %v1233_v15 = vld [vmem:[%s5475_s2 + $0xe8] sm:$0xff] }
 0x140   :  { %3335 = vmatprep.mubr.msk.f32.mxu0 %vm3642_vm0, %v3643_v6  ;;  %3502 = vmatprep.mubr.msk.f32.mxu1 %vm3642_vm0, %v3643_v6  ;;  %v1788_v16 = vld [vmem:[%s5476_s3 + $0xe8] sm:$0xff] }
 0x141   :  { %v572_v32 = vmax.f32 %v413_v22, 0.0  ;;  %v1127_v33 = vmax.f32 %v968_v25, 0.0 }
 0x142   :  { %v417_v34 = vpop.f32.mrb[44].mxu0  ;;  %v972_v36 = vpop.f32.mrb[44].mxu1 }
 0x143   :  { %v4743_v37 = vmax.f32 %v572_v32, %v1127_v33  ;;  %v418_v39 = vadd.f32 %v4381_v61, %v417_v34  ;;  %v973_v40 = vadd.f32 %v4381_v61, %v972_v36  ;;  %v2991_v41 = vpop.f32.mrb[45].mxu0  ;;  %v3158_v43 = vpop.f32.mrb[45].mxu1  ;;  %3336 = vmatmul.mubr.msk.f32.gmra.mrb[150].mxu0 %vm89_vm4, %v1230_v28  ;;  %3503 = vmatmul.mubr.msk.f32.gmra.mrb[150].mxu1 %vm89_vm4, %v1785_v29  ;;  %v1234_v33 = vld [vmem:[%s5475_s2 + $0xf0] sm:$0xff] }
 0x144   :  { %3338 = vmatprep.mubr.msk.f32.mxu0 %vm3642_vm0, %v3643_v6  ;;  %3505 = vmatprep.mubr.msk.f32.mxu1 %vm3642_vm0, %v3643_v6  ;;  %v1789_v34 = vld [vmem:[%s5476_s3 + $0xf0] sm:$0xff] }
 0x145   :  { %v573_v48 = vmax.f32 %v418_v39, 0.0  ;;  %v1128_v49 = vmax.f32 %v973_v40, 0.0 }
 0x146   :  { %v422_v50 = vpop.f32.mrb[46].mxu0  ;;  %v977_v51 = vpop.f32.mrb[46].mxu1 }
 0x147   :  { %v4759_v53 = vmax.f32 %v573_v48, %v1128_v49  ;;  %v423_v55 = vadd.f32 %v4381_v61, %v422_v50  ;;  %v978_v56 = vadd.f32 %v4381_v61, %v977_v51  ;;  %v2994_v59 = vpop.f32.mrb[47].mxu0  ;;  %v3161_v60 = vpop.f32.mrb[47].mxu1  ;;  %3339 = vmatmul.mubr.msk.f32.gmra.mrb[152].mxu0 %vm89_vm4, %v1231_v45  ;;  %3506 = vmatmul.mubr.msk.f32.gmra.mrb[152].mxu1 %vm89_vm4, %v1786_v47  ;;  %v1235_v50 = vld [vmem:[%s5475_s2 + $0xf8] sm:$0xff] }
 0x148   :  { %3341 = vmatprep.mubr.msk.f32.mxu0 %vm3642_vm0, %v3643_v6  ;;  %3508 = vmatprep.mubr.msk.f32.mxu1 %vm3642_vm0, %v3643_v6  ;;  %v1790_v51 = vld [vmem:[%s5476_s3 + $0xf8] sm:$0xff] }
 0x149   :  { %v574_v0 = vmax.f32 %v423_v55, 0.0  ;;  %v1129_v1 = vmax.f32 %v978_v56, 0.0 }
 0x14a   :  { %v427_v2 = vpop.f32.mrb[48].mxu0  ;;  %v982_v7 = vpop.f32.mrb[48].mxu1 }
 0x14b   :  { %v4775_v8 = vmax.f32 %v574_v0, %v1129_v1  ;;  %v428_v10 = vadd.f32 %v4381_v61, %v427_v2  ;;  %v983_v11 = vadd.f32 %v4381_v61, %v982_v7  ;;  %v2997_v12 = vpop.f32.mrb[49].mxu0  ;;  %v3164_v14 = vpop.f32.mrb[49].mxu1  ;;  %3342 = vmatmul.mubr.msk.f32.gmra.mrb[154].mxu0 %vm89_vm4, %v1232_v62  ;;  %3509 = vmatmul.mubr.msk.f32.gmra.mrb[154].mxu1 %vm89_vm4, %v1787_v63  ;;  %v1236_v7 = vld [vmem:[%s5475_s2 + $0x100] sm:$0xff] }
 0x14c   :  { %3344 = vmatprep.mubr.msk.f32.mxu0 %vm3642_vm0, %v3643_v6  ;;  %3511 = vmatprep.mubr.msk.f32.mxu1 %vm3642_vm0, %v3643_v6 }
 0x14d   :  { %v575_v19 = vmax.f32 %v428_v10, 0.0  ;;  %v1130_v20 = vmax.f32 %v983_v11, 0.0  ;;  %v1791_v10 = vld [vmem:[%s5476_s3 + $0x100] sm:$0xff] }
 0x14e   :  { %v432_v22 = vpop.f32.mrb[50].mxu0  ;;  %v987_v25 = vpop.f32.mrb[50].mxu1 }
 0x14f   :  { %v4791_v26 = vmax.f32 %v575_v19, %v1130_v20  ;;  %v433_v27 = vadd.f32 %v4381_v61, %v432_v22  ;;  %v988_v28 = vadd.f32 %v4381_v61, %v987_v25  ;;  %v3000_v29 = vpop.f32.mrb[51].mxu0  ;;  %v3167_v32 = vpop.f32.mrb[51].mxu1  ;;  %3345 = vmatmul.mubr.msk.f32.gmra.mrb[156].mxu0 %vm89_vm4, %v1233_v15  ;;  %3512 = vmatmul.mubr.msk.f32.gmra.mrb[156].mxu1 %vm89_vm4, %v1788_v16 }
 0x150   :  { %3347 = vmatprep.mubr.msk.f32.mxu0 %vm3642_vm0, %v3643_v6  ;;  %3514 = vmatprep.mubr.msk.f32.mxu1 %vm3642_vm0, %v3643_v6 }
 0x151   :  { %v576_v36 = vmax.f32 %v433_v27, 0.0  ;;  %v1131_v39 = vmax.f32 %v988_v28, 0.0  ;;  %v1237_v27 = vld [vmem:[%s5475_s2 + $0x108] sm:$0xff] }
 0x152   :  { %v437_v40 = vpop.f32.mrb[52].mxu0  ;;  %v992_v41 = vpop.f32.mrb[52].mxu1  ;;  %v1792_v28 = vld [vmem:[%s5476_s3 + $0x108] sm:$0xff] }
 0x153   :  { %v4807_v43 = vmax.f32 %v576_v36, %v1131_v39  ;;  %v438_v45 = vadd.f32 %v4381_v61, %v437_v40  ;;  %v993_v47 = vadd.f32 %v4381_v61, %v992_v41  ;;  %v3003_v48 = vpop.f32.mrb[53].mxu0  ;;  %v3170_v49 = vpop.f32.mrb[53].mxu1  ;;  %3348 = vmatmul.mubr.msk.f32.gmra.mrb[158].mxu0 %vm89_vm4, %v1234_v33  ;;  %3515 = vmatmul.mubr.msk.f32.gmra.mrb[158].mxu1 %vm89_vm4, %v1789_v34 }
 0x154   :  { %3350 = vmatprep.mubr.msk.f32.mxu0 %vm3642_vm0, %v3643_v6  ;;  %3517 = vmatprep.mubr.msk.f32.mxu1 %vm3642_vm0, %v3643_v6  ;;  %v1793_v48 = vld [vmem:[%s5476_s3 + $0x110] sm:$0xff] }
 0x155   :  { %v577_v55 = vmax.f32 %v438_v45, 0.0  ;;  %v1132_v56 = vmax.f32 %v993_v47, 0.0  ;;  %v1238_v47 = vld [vmem:[%s5475_s2 + $0x110] sm:$0xff] }
 0x156   :  { %v442_v59 = vpop.f32.mrb[54].mxu0  ;;  %v997_v60 = vpop.f32.mrb[54].mxu1 }
 0x157   :  { %v4823_v62 = vmax.f32 %v577_v55, %v1132_v56  ;;  %v443_v63 = vadd.f32 %v4381_v61, %v442_v59  ;;  %v998_v0 = vadd.f32 %v4381_v61, %v997_v60  ;;  %v3006_v1 = vpop.f32.mrb[55].mxu0  ;;  %v3173_v2 = vpop.f32.mrb[55].mxu1  ;;  %3351 = vmatmul.mubr.msk.f32.gmra.mrb[160].mxu0 %vm89_vm4, %v1235_v50  ;;  %3518 = vmatmul.mubr.msk.f32.gmra.mrb[160].mxu1 %vm89_vm4, %v1790_v51 }
 0x158   :  { %3353 = vmatprep.mubr.msk.f32.mxu0 %vm3642_vm0, %v3643_v6  ;;  %3520 = vmatprep.mubr.msk.f32.mxu1 %vm3642_vm0, %v3643_v6  ;;  %v1239_v1 = vld [vmem:[%s5475_s2 + $0x118] sm:$0xff] }
 0x159   :  { %v578_v11 = vmax.f32 %v443_v63, 0.0  ;;  %v1133_v12 = vmax.f32 %v998_v0, 0.0  ;;  %v1794_v2 = vld [vmem:[%s5476_s3 + $0x118] sm:$0xff] }
 0x15a   :  { %v447_v14 = vpop.f32.mrb[56].mxu0  ;;  %v1002_v15 = vpop.f32.mrb[56].mxu1 }
 0x15b   :  { %v4839_v16 = vmax.f32 %v578_v11, %v1133_v12  ;;  %v448_v19 = vadd.f32 %v4381_v61, %v447_v14  ;;  %v1003_v20 = vadd.f32 %v4381_v61, %v1002_v15  ;;  %v3009_v22 = vpop.f32.mrb[57].mxu0  ;;  %v3176_v25 = vpop.f32.mrb[57].mxu1  ;;  %3354 = vmatmul.mubr.msk.f32.gmra.mrb[162].mxu0 %vm89_vm4, %v1236_v7  ;;  %3521 = vmatmul.mubr.msk.f32.gmra.mrb[162].mxu1 %vm89_vm4, %v1791_v10 }
 0x15c   :  { %3356 = vmatprep.mubr.msk.f32.mxu0 %vm3642_vm0, %v3643_v6  ;;  %3523 = vmatprep.mubr.msk.f32.mxu1 %vm3642_vm0, %v3643_v6  ;;  %v1240_v25 = vld [vmem:[%s5475_s2 + $0x120] sm:$0xff] }
 0x15d   :  { %v579_v29 = vmax.f32 %v448_v19, 0.0  ;;  %v1134_v32 = vmax.f32 %v1003_v20, 0.0 }
 0x15e   :  { %v452_v33 = vpop.f32.mrb[58].mxu0  ;;  %v1007_v34 = vpop.f32.mrb[58].mxu1 }
 0x15f   :  { %v4855_v36 = vmax.f32 %v579_v29, %v1134_v32  ;;  %v453_v39 = vadd.f32 %v4381_v61, %v452_v33  ;;  %v1008_v40 = vadd.f32 %v4381_v61, %v1007_v34  ;;  %v3012_v41 = vpop.f32.mrb[59].mxu0  ;;  %v3179_v45 = vpop.f32.mrb[59].mxu1  ;;  %3357 = vmatmul.mubr.msk.f32.gmra.mrb[164].mxu0 %vm89_vm4, %v1237_v27  ;;  %3524 = vmatmul.mubr.msk.f32.gmra.mrb[164].mxu1 %vm89_vm4, %v1792_v28  ;;  %v1795_v27 = vld [vmem:[%s5476_s3 + $0x120] sm:$0xff] }
 0x160   :  { %3359 = vmatprep.mubr.msk.f32.mxu0 %vm3642_vm0, %v3643_v6  ;;  %3526 = vmatprep.mubr.msk.f32.mxu1 %vm3642_vm0, %v3643_v6 }
 0x161   :  { %v580_v49 = vmax.f32 %v453_v39, 0.0  ;;  %v1135_v50 = vmax.f32 %v1008_v40, 0.0 }
 0x162   :  { %v457_v51 = vpop.f32.mrb[60].mxu0  ;;  %v1012_v55 = vpop.f32.mrb[60].mxu1 }
 0x163   :  { %v4871_v56 = vmax.f32 %v580_v49, %v1135_v50  ;;  %v458_v59 = vadd.f32 %v4381_v61, %v457_v51  ;;  %v1013_v60 = vadd.f32 %v4381_v61, %v1012_v55  ;;  %v3015_v63 = vpop.f32.mrb[61].mxu0  ;;  %v3182_v0 = vpop.f32.mrb[61].mxu1  ;;  %3360 = vmatmul.mubr.msk.f32.gmra.mrb[166].mxu0 %vm89_vm4, %v1238_v47  ;;  %3527 = vmatmul.mubr.msk.f32.gmra.mrb[166].mxu1 %vm89_vm4, %v1793_v48  ;;  %v1241_v47 = vld [vmem:[%s5475_s2 + $0x128] sm:$0xff] }
 0x164   :  { %3362 = vmatprep.mubr.msk.f32.mxu0 %vm3642_vm0, %v3643_v6  ;;  %3529 = vmatprep.mubr.msk.f32.mxu1 %vm3642_vm0, %v3643_v6  ;;  %v1796_v48 = vld [vmem:[%s5476_s3 + $0x128] sm:$0xff] }
 0x165   :  { %v581_v7 = vmax.f32 %v458_v59, 0.0  ;;  %v1136_v10 = vmax.f32 %v1013_v60, 0.0 }
 0x166   :  { %v462_v11 = vpop.f32.mrb[62].mxu0  ;;  %v1017_v12 = vpop.f32.mrb[62].mxu1 }
 0x167   :  { %v4887_v14 = vmax.f32 %v581_v7, %v1136_v10  ;;  %v463_v15 = vadd.f32 %v4381_v61, %v462_v11  ;;  %v1018_v19 = vadd.f32 %v4381_v61, %v1017_v12  ;;  %v3018_v20 = vpop.f32.mrb[63].mxu0  ;;  %v3185_v22 = vpop.f32.mrb[63].mxu1  ;;  %3363 = vmatmul.mubr.msk.f32.gmra.mrb[168].mxu0 %vm89_vm4, %v1239_v1  ;;  %3530 = vmatmul.mubr.msk.f32.gmra.mrb[168].mxu1 %vm89_vm4, %v1794_v2  ;;  %v1242_v2 = vld [vmem:[%s5475_s2 + $0x130] sm:$0xff] }
 0x168   :  { %3365 = vmatprep.mubr.msk.f32.mxu0 %vm3642_vm0, %v3643_v6  ;;  %3532 = vmatprep.mubr.msk.f32.mxu1 %vm3642_vm0, %v3643_v6 }
 0x169   :  { %v582_v28 = vmax.f32 %v463_v15, 0.0  ;;  %v1137_v29 = vmax.f32 %v1018_v19, 0.0  ;;  %v4940_v19 = vld [vmem:[%s5477_s5] ss:$0 sm:$0xff] }
 0x16a   :  { %v467_v32 = vpop.f32.mrb[64].mxu0  ;;  %v1022_v33 = vpop.f32.mrb[64].mxu1 }
 0x16b   :  { %v4903_v34 = vmax.f32 %v582_v28, %v1137_v29  ;;  %v468_v39 = vadd.f32 %v4381_v61, %v467_v32  ;;  %v1023_v40 = vadd.f32 %v4381_v61, %v1022_v33  ;;  %v3021_v41 = vpop.f32.mrb[65].mxu0  ;;  %v3188_v45 = vpop.f32.mrb[65].mxu1  ;;  %3366 = vmatmul.mubr.msk.f32.gmra.mrb[170].mxu0 %vm89_vm4, %v1240_v25  ;;  %3533 = vmatmul.mubr.msk.f32.gmra.mrb[170].mxu1 %vm89_vm4, %v1795_v27  ;;  %v1243_v28 = vld [vmem:[%s5475_s2 + $0x138] sm:$0xff] }
 0x16c   :  { %3368 = vmatprep.mubr.msk.f32.mxu0 %vm3642_vm0, %v3643_v6  ;;  %3535 = vmatprep.mubr.msk.f32.mxu1 %vm3642_vm0, %v3643_v6  ;;  %v1798_v29 = vld [vmem:[%s5476_s3 + $0x138] sm:$0xff] }
 0x16d   :  { %v583_v49 = vmax.f32 %v468_v39, 0.0  ;;  %v1138_v50 = vmax.f32 %v1023_v40, 0.0 }
 0x16e   :  { %v472_v51 = vpop.f32.mrb[66].mxu0  ;;  %v1027_v55 = vpop.f32.mrb[66].mxu1 }
 0x16f   :  { %v4919_v59 = vmax.f32 %v583_v49, %v1138_v50  ;;  %v473_v60 = vadd.f32 %v4381_v61, %v472_v51  ;;  %v1028_v63 = vadd.f32 %v4381_v61, %v1027_v55  ;;  %v3024_v0 = vpop.f32.mrb[67].mxu0  ;;  %v3191_v1 = vpop.f32.mrb[67].mxu1  ;;  %3369 = vmatmul.mubr.msk.f32.gmra.mrb[172].mxu0 %vm89_vm4, %v1241_v47  ;;  %3536 = vmatmul.mubr.msk.f32.gmra.mrb[172].mxu1 %vm89_vm4, %v1796_v48  ;;  %v1797_v61 = vld [vmem:[%s5476_s3 + $0x130] sm:$0xff]  ;;  %v1244_v50 = vld [vmem:[%s5475_s2 + $0x140] sm:$0xff] }
 0x170   :  { %3371 = vmatprep.mubr.msk.f32.mxu0 %vm3642_vm0, %v3643_v6  ;;  %3538 = vmatprep.mubr.msk.f32.mxu1 %vm3642_vm0, %v3643_v6  ;;  %v1799_v51 = vld [vmem:[%s5476_s3 + $0x140] sm:$0xff] }
 0x171   :  { %v584_v7 = vmax.f32 %v473_v60, 0.0  ;;  %v1139_v10 = vmax.f32 %v1028_v63, 0.0 }
 0x172   :  { %v477_v11 = vpop.f32.mrb[68].mxu0  ;;  %v1032_v12 = vpop.f32.mrb[68].mxu1 }
 0x173   :  { %v4935_v15 = vmax.f32 %v584_v7, %v1139_v10  ;;  %v478_v20 = vadd.f32 %v4940_v19, %v477_v11  ;;  %v1033_v22 = vadd.f32 %v4940_v19, %v1032_v12  ;;  %v3027_v25 = vpop.f32.mrb[69].mxu0  ;;  %v3194_v27 = vpop.f32.mrb[69].mxu1  ;;  %3372 = vmatmul.mubr.msk.f32.gmra.mrb[174].mxu0 %vm89_vm4, %v1242_v2  ;;  %3539 = vmatmul.mubr.msk.f32.gmra.mrb[174].mxu1 %vm89_vm4, %v1797_v61  ;;  %v1245_v11 = vld [vmem:[%s5475_s2 + $0x148] sm:$0xff] }
 0x174   :  { %3374 = vmatprep.mubr.msk.f32.mxu0 %vm3642_vm0, %v3643_v6  ;;  %3541 = vmatprep.mubr.msk.f32.mxu1 %vm3642_vm0, %v3643_v6  ;;  %v1800_v12 = vld [vmem:[%s5476_s3 + $0x148] sm:$0xff] }
 0x175   :  { %v585_v32 = vmax.f32 %v478_v20, 0.0  ;;  %v1140_v33 = vmax.f32 %v1033_v22, 0.0 }
 0x176   :  { %v482_v39 = vpop.f32.mrb[70].mxu0  ;;  %v1037_v40 = vpop.f32.mrb[70].mxu1 }
 0x177   :  { %v4956_v41 = vmax.f32 %v585_v32, %v1140_v33  ;;  %v483_v45 = vadd.f32 %v4940_v19, %v482_v39  ;;  %v1038_v47 = vadd.f32 %v4940_v19, %v1037_v40  ;;  %v3030_v48 = vpop.f32.mrb[71].mxu0  ;;  %v3197_v49 = vpop.f32.mrb[71].mxu1  ;;  %3375 = vmatmul.mubr.msk.f32.gmra.mrb[176].mxu0 %vm89_vm4, %v1243_v28  ;;  %3542 = vmatmul.mubr.msk.f32.gmra.mrb[176].mxu1 %vm89_vm4, %v1798_v29  ;;  %v1246_v40 = vld [vmem:[%s5475_s2 + $0x150] sm:$0xff] }
 0x178   :  { %3377 = vmatprep.mubr.msk.f32.mxu0 %vm3642_vm0, %v3643_v6  ;;  %3544 = vmatprep.mubr.msk.f32.mxu1 %vm3642_vm0, %v3643_v6 }
 0x179   :  { %v586_v55 = vmax.f32 %v483_v45, 0.0  ;;  %v1141_v60 = vmax.f32 %v1038_v47, 0.0  ;;  %v1801_v45 = vld [vmem:[%s5476_s3 + $0x150] sm:$0xff] }
 0x17a   :  { %v487_v63 = vpop.f32.mrb[72].mxu0  ;;  %v1042_v0 = vpop.f32.mrb[72].mxu1 }
 0x17b   :  { %v4972_v1 = vmax.f32 %v586_v55, %v1141_v60  ;;  %v488_v2 = vadd.f32 %v4940_v19, %v487_v63  ;;  %v1043_v61 = vadd.f32 %v4940_v19, %v1042_v0  ;;  %v3033_v7 = vpop.f32.mrb[73].mxu0  ;;  %v3200_v10 = vpop.f32.mrb[73].mxu1  ;;  %3378 = vmatmul.mubr.msk.f32.gmra.mrb[178].mxu0 %vm89_vm4, %v1244_v50  ;;  %3545 = vmatmul.mubr.msk.f32.gmra.mrb[178].mxu1 %vm89_vm4, %v1799_v51 }
 0x17c   :  { %3380 = vmatprep.mubr.msk.f32.mxu0 %vm3642_vm0, %v3643_v6  ;;  %3547 = vmatprep.mubr.msk.f32.mxu1 %vm3642_vm0, %v3643_v6 }
 0x17d   :  { %v587_v20 = vmax.f32 %v488_v2, 0.0  ;;  %v1142_v22 = vmax.f32 %v1043_v61, 0.0  ;;  %v1247_v2 = vld [vmem:[%s5475_s2 + $0x158] sm:$0xff] }
 0x17e   :  { %v492_v25 = vpop.f32.mrb[74].mxu0  ;;  %v1047_v27 = vpop.f32.mrb[74].mxu1  ;;  %v1802_v61 = vld [vmem:[%s5476_s3 + $0x158] sm:$0xff] }
 0x17f   :  { %v4988_v28 = vmax.f32 %v587_v20, %v1142_v22  ;;  %v493_v29 = vadd.f32 %v4940_v19, %v492_v25  ;;  %v1048_v32 = vadd.f32 %v4940_v19, %v1047_v27  ;;  %v3036_v33 = vpop.f32.mrb[75].mxu0  ;;  %v3203_v39 = vpop.f32.mrb[75].mxu1  ;;  %3381 = vmatmul.mubr.msk.f32.gmra.mrb[180].mxu0 %vm89_vm4, %v1245_v11  ;;  %3548 = vmatmul.mubr.msk.f32.gmra.mrb[180].mxu1 %vm89_vm4, %v1800_v12 }
 0x180   :  { %3383 = vmatprep.mubr.msk.f32.mxu0 %vm3642_vm0, %v3643_v6  ;;  %3550 = vmatprep.mubr.msk.f32.mxu1 %vm3642_vm0, %v3643_v6  ;;  %v1803_v33 = vld [vmem:[%s5476_s3 + $0x160] sm:$0xff] }
 0x181   :  { %v588_v47 = vmax.f32 %v493_v29, 0.0  ;;  %v1143_v48 = vmax.f32 %v1048_v32, 0.0  ;;  %v1248_v32 = vld [vmem:[%s5475_s2 + $0x160] sm:$0xff] }
 0x182   :  { %v497_v49 = vpop.f32.mrb[76].mxu0  ;;  %v1052_v50 = vpop.f32.mrb[76].mxu1 }
 0x183   :  { %v5004_v51 = vmax.f32 %v588_v47, %v1143_v48  ;;  %v498_v55 = vadd.f32 %v4940_v19, %v497_v49  ;;  %v1053_v60 = vadd.f32 %v4940_v19, %v1052_v50  ;;  %v3039_v63 = vpop.f32.mrb[77].mxu0  ;;  %v3206_v0 = vpop.f32.mrb[77].mxu1  ;;  %3384 = vmatmul.mubr.msk.f32.gmra.mrb[182].mxu0 %vm89_vm4, %v1246_v40  ;;  %3551 = vmatmul.mubr.msk.f32.gmra.mrb[182].mxu1 %vm89_vm4, %v1801_v45 }
 0x184   :  { %3386 = vmatprep.mubr.msk.f32.mxu0 %vm3642_vm0, %v3643_v6  ;;  %3553 = vmatprep.mubr.msk.f32.mxu1 %vm3642_vm0, %v3643_v6  ;;  %v1249_v63 = vld [vmem:[%s5475_s2 + $0x168] sm:$0xff] }
 0x185   :  { %v589_v7 = vmax.f32 %v498_v55, 0.0  ;;  %v1144_v10 = vmax.f32 %v1053_v60, 0.0  ;;  %v1804_v0 = vld [vmem:[%s5476_s3 + $0x168] sm:$0xff] }
 0x186   :  { %v502_v11 = vpop.f32.mrb[78].mxu0  ;;  %v1057_v12 = vpop.f32.mrb[78].mxu1 }
 0x187   :  { %v5020_v20 = vmax.f32 %v589_v7, %v1144_v10  ;;  %v503_v22 = vadd.f32 %v4940_v19, %v502_v11  ;;  %v1058_v25 = vadd.f32 %v4940_v19, %v1057_v12  ;;  %v3042_v27 = vpop.f32.mrb[79].mxu0  ;;  %v3209_v29 = vpop.f32.mrb[79].mxu1  ;;  %3387 = vmatmul.mubr.msk.f32.gmra.mrb[184].mxu0 %vm89_vm4, %v1247_v2  ;;  %3554 = vmatmul.mubr.msk.f32.gmra.mrb[184].mxu1 %vm89_vm4, %v1802_v61 }
 0x188   :  { %3389 = vmatprep.mubr.msk.f32.mxu0 %vm3642_vm0, %v3643_v6  ;;  %3556 = vmatprep.mubr.msk.f32.mxu1 %vm3642_vm0, %v3643_v6  ;;  %v1250_v29 = vld [vmem:[%s5475_s2 + $0x170] sm:$0xff] }
 0x189   :  { %v590_v39 = vmax.f32 %v503_v22, 0.0  ;;  %v1145_v40 = vmax.f32 %v1058_v25, 0.0 }
 0x18a   :  { %v507_v45 = vpop.f32.mrb[80].mxu0  ;;  %v1062_v47 = vpop.f32.mrb[80].mxu1 }
 0x18b   :  { %v5036_v48 = vmax.f32 %v590_v39, %v1145_v40  ;;  %v508_v49 = vadd.f32 %v4940_v19, %v507_v45  ;;  %v1063_v50 = vadd.f32 %v4940_v19, %v1062_v47  ;;  %v3045_v55 = vpop.f32.mrb[81].mxu0  ;;  %v3212_v60 = vpop.f32.mrb[81].mxu1  ;;  %3390 = vmatmul.mubr.msk.f32.gmra.mrb[186].mxu0 %vm89_vm4, %v1248_v32  ;;  %3557 = vmatmul.mubr.msk.f32.gmra.mrb[186].mxu1 %vm89_vm4, %v1803_v33  ;;  %v1805_v32 = vld [vmem:[%s5476_s3 + $0x170] sm:$0xff] }
 0x18c   :  { %3392 = vmatprep.mubr.msk.f32.mxu0 %vm3642_vm0, %v3643_v6  ;;  %3559 = vmatprep.mubr.msk.f32.mxu1 %vm3642_vm0, %v3643_v6 }
 0x18d   :  { %v591_v2 = vmax.f32 %v508_v49, 0.0  ;;  %v1146_v61 = vmax.f32 %v1063_v50, 0.0 }
 0x18e   :  { %v512_v7 = vpop.f32.mrb[82].mxu0  ;;  %v1067_v10 = vpop.f32.mrb[82].mxu1 }
 0x18f   :  { %v5052_v11 = vmax.f32 %v591_v2, %v1146_v61  ;;  %v513_v12 = vadd.f32 %v4940_v19, %v512_v7  ;;  %v1068_v22 = vadd.f32 %v4940_v19, %v1067_v10  ;;  %v3048_v25 = vpop.f32.mrb[83].mxu0  ;;  %v3215_v27 = vpop.f32.mrb[83].mxu1  ;;  %3393 = vmatmul.mubr.msk.f32.gmra.mrb[188].mxu0 %vm89_vm4, %v1249_v63  ;;  %3560 = vmatmul.mubr.msk.f32.gmra.mrb[188].mxu1 %vm89_vm4, %v1804_v0  ;;  %v1251_v63 = vld [vmem:[%s5475_s2 + $0x178] sm:$0xff] }
 0x190   :  { %3395 = vmatprep.mubr.msk.f32.mxu0 %vm3642_vm0, %v3643_v6  ;;  %3562 = vmatprep.mubr.msk.f32.mxu1 %vm3642_vm0, %v3643_v6  ;;  %v1806_v0 = vld [vmem:[%s5476_s3 + $0x178] sm:$0xff] }
 0x191   :  { %v592_v33 = vmax.f32 %v513_v12, 0.0  ;;  %v1147_v39 = vmax.f32 %v1068_v22, 0.0 }
 0x192   :  { %v517_v40 = vpop.f32.mrb[84].mxu0  ;;  %v1072_v45 = vpop.f32.mrb[84].mxu1 }
 0x193   :  { %v5068_v47 = vmax.f32 %v592_v33, %v1147_v39  ;;  %v518_v49 = vadd.f32 %v4940_v19, %v517_v40  ;;  %v1073_v50 = vadd.f32 %v4940_v19, %v1072_v45  ;;  %v3051_v55 = vpop.f32.mrb[85].mxu0  ;;  %v3218_v60 = vpop.f32.mrb[85].mxu1  ;;  %3396 = vmatmul.mubr.msk.f32.gmra.mrb[190].mxu0 %vm89_vm4, %v1250_v29  ;;  %3563 = vmatmul.mubr.msk.f32.gmra.mrb[190].mxu1 %vm89_vm4, %v1805_v32  ;;  %v1252_v32 = vld [vmem:[%s5475_s2 + $0x180] sm:$0xff] }
 0x194   :  { %3398 = vmatprep.mubr.msk.f32.mxu0 %vm3642_vm0, %v3643_v6  ;;  %3565 = vmatprep.mubr.msk.f32.mxu1 %vm3642_vm0, %v3643_v6  ;;  %v1807_v33 = vld [vmem:[%s5476_s3 + $0x180] sm:$0xff] }
 0x195   :  { %v593_v2 = vmax.f32 %v518_v49, 0.0  ;;  %v1148_v61 = vmax.f32 %v1073_v50, 0.0 }
 0x196   :  { %v522_v7 = vpop.f32.mrb[86].mxu0  ;;  %v1077_v10 = vpop.f32.mrb[86].mxu1 }
 0x197   :  { %v5084_v12 = vmax.f32 %v593_v2, %v1148_v61  ;;  %v523_v22 = vadd.f32 %v4940_v19, %v522_v7  ;;  %v1078_v25 = vadd.f32 %v4940_v19, %v1077_v10  ;;  %v3054_v27 = vpop.f32.mrb[87].mxu0  ;;  %v3221_v29 = vpop.f32.mrb[87].mxu1  ;;  %3399 = vmatmul.mubr.msk.f32.gmra.mrb[192].mxu0 %vm89_vm4, %v1251_v63  ;;  %3566 = vmatmul.mubr.msk.f32.gmra.mrb[192].mxu1 %vm89_vm4, %v1806_v0 }
 0x198   :  { %3401 = vmatprep.mubr.msk.f32.mxu0 %vm3642_vm0, %v3643_v6  ;;  %3568 = vmatprep.mubr.msk.f32.mxu1 %vm3642_vm0, %v3643_v6 }
 0x199   :  { %v594_v39 = vmax.f32 %v523_v22, 0.0  ;;  %v1149_v40 = vmax.f32 %v1078_v25, 0.0 }
 0x19a   :  { %v527_v45 = vpop.f32.mrb[88].mxu0  ;;  %v1082_v49 = vpop.f32.mrb[88].mxu1 }
 0x19b   :  { %v5100_v50 = vmax.f32 %v594_v39, %v1149_v40  ;;  %v528_v55 = vadd.f32 %v4940_v19, %v527_v45  ;;  %v1083_v60 = vadd.f32 %v4940_v19, %v1082_v49  ;;  %v3057_v63 = vpop.f32.mrb[89].mxu0  ;;  %v3224_v6 = vpop.f32.mrb[89].mxu1  ;;  %3402 = vmatmul.mubr.msk.f32.gmra.mrb[194].mxu0 %vm89_vm4, %v1252_v32  ;;  %3569 = vmatmul.mubr.msk.f32.gmra.mrb[194].mxu1 %vm89_vm4, %v1807_v33 }
 0x19d   :  { %v595_v0 = vmax.f32 %v528_v55, 0.0  ;;  %v1150_v2 = vmax.f32 %v1083_v60, 0.0 }
 0x19e   :  { %v532_v61 = vpop.f32.mrb[90].mxu0  ;;  %v1087_v7 = vpop.f32.mrb[90].mxu1 }
 0x19f   :  { %v5106_v10 = vmax.f32 %v595_v0, %v1150_v2  ;;  %v533_v22 = vadd.f32 %v4940_v19, %v532_v61  ;;  %v1088_v25 = vadd.f32 %v4940_v19, %v1087_v7  ;;  %v3060_v27 = vpop.f32.mrb[91].mxu0  ;;  %v3227_v29 = vpop.f32.mrb[91].mxu1 }
 0x1a1   :  { %5481 = vst [vmem:[#allocation2_spill] sm:$0xff] %v5106_v10  ;;  %v596_v39 = vmax.f32 %v533_v22, 0.0  ;;  %v1151_v40 = vmax.f32 %v1088_v25, 0.0 }
 0x1a2   :  { %v537_v45 = vpop.f32.mrb[92].mxu0  ;;  %v1092_v49 = vpop.f32.mrb[92].mxu1 }
 0x1a3   :  { %v5110_v63 = vmax.f32 %v596_v39, %v1151_v40  ;;  %v538_v32 = vadd.f32 %v4940_v19, %v537_v45  ;;  %v1093_v33 = vadd.f32 %v4940_v19, %v1092_v49  ;;  %v3063_v55 = vpop.f32.mrb[93].mxu0  ;;  %v3230_v60 = vpop.f32.mrb[93].mxu1 }
 0x1a5   :  { %5482 = vst [vmem:[#allocation3_spill] sm:$0xff] %v5110_v63  ;;  %v597_v6 = vmax.f32 %v538_v32, 0.0  ;;  %v1152_v0 = vmax.f32 %v1093_v33, 0.0 }
 0x1a6   :  { %v542_v2 = vpop.f32.mrb[94].mxu0  ;;  %v1097_v61 = vpop.f32.mrb[94].mxu1 }
 0x1a7   :  { %v5114_v10 = vmax.f32 %v597_v6, %v1152_v0  ;;  %v543_v7 = vadd.f32 %v4940_v19, %v542_v2  ;;  %v1098_v22 = vadd.f32 %v4940_v19, %v1097_v61  ;;  %v3066_v25 = vpop.f32.mrb[95].mxu0  ;;  %v3233_v27 = vpop.f32.mrb[95].mxu1 }
 0x1a9   :  { %5483 = vst [vmem:[#allocation4_spill] sm:$0xff] %v5114_v10  ;;  %v598_v29 = vmax.f32 %v543_v7, 0.0  ;;  %v1153_v39 = vmax.f32 %v1098_v22, 0.0 }
 0x1aa   :  { %v547_v40 = vpop.f32.mrb[96].mxu0  ;;  %v1102_v45 = vpop.f32.mrb[96].mxu1 }
 0x1ab   :  { %v5118_v63 = vmax.f32 %v598_v29, %v1153_v39  ;;  %v548_v49 = vadd.f32 %v4940_v19, %v547_v40  ;;  %v1103_v32 = vadd.f32 %v4940_v19, %v1102_v45  ;;  %v3069_v33 = vpop.f32.mrb[97].mxu0  ;;  %v3236_v55 = vpop.f32.mrb[97].mxu1 }
 0x1ad   :  { %5484 = vst [vmem:[#allocation5_spill] sm:$0xff] %v5118_v63  ;;  %v599_v60 = vmax.f32 %v548_v49, 0.0  ;;  %v1154_v6 = vmax.f32 %v1103_v32, 0.0 }
 0x1ae   :  { %v1466_v0 = vpop.f32.mrb[98].mxu0  ;;  %v2021_v2 = vpop.f32.mrb[98].mxu1 }
 0x1af   :  { %v5122_v10 = vmax.f32 %v599_v60, %v1154_v6  ;;  %v1467_v61 = vadd.f32 %v4940_v19, %v1466_v0  ;;  %v2022_v7 = vadd.f32 %v4940_v19, %v2021_v2  ;;  %v3259_v22 = vpop.f32.mrb[99].mxu0  ;;  %v3426_v25 = vpop.f32.mrb[99].mxu1 }
 0x1b1   :  { %v1710_v27 = vmax.f32 %v1467_v61, 0.0  ;;  %v2265_v29 = vmax.f32 %v2022_v7, 0.0 }
 0x1b2   :  { %v1471_v39 = vpop.f32.mrb[100].mxu0  ;;  %v2026_v40 = vpop.f32.mrb[100].mxu1 }
 0x1b3   :  { %v2314_v63 = vmax.f32 %v1710_v27, %v2265_v29  ;;  %v1472_v45 = vadd.f32 %v4940_v19, %v1471_v39  ;;  %v2027_v49 = vadd.f32 %v4940_v19, %v2026_v40  ;;  %v3262_v32 = vpop.f32.mrb[101].mxu0  ;;  %v3429_v33 = vpop.f32.mrb[101].mxu1 }
 0x1b5   :  { %v2363_v55 = vmax.f32 %v4407_v13, %v2314_v63  ;;  %v1711_v60 = vmax.f32 %v1472_v45, 0.0  ;;  %v2266_v6 = vmax.f32 %v2027_v49, 0.0 }
 0x1b6   :  { %v1476_v0 = vpop.f32.mrb[102].mxu0  ;;  %v2031_v2 = vpop.f32.mrb[102].mxu1 }
 0x1b7   :  { %2413 = vst.msk [vmem:[%s5478_s6] sm:$0xff] %vm2412_vm5, %v2363_v55  ;;  %v2315_v61 = vmax.f32 %v1711_v60, %v2266_v6  ;;  %v1477_v7 = vadd.f32 %v4940_v19, %v1476_v0  ;;  %v2032_v22 = vadd.f32 %v4940_v19, %v2031_v2  ;;  %v3265_v25 = vpop.f32.mrb[103].mxu0  ;;  %v3432_v27 = vpop.f32.mrb[103].mxu1 }
 0x1b9   :  { %v2364_v29 = vmax.f32 %v4423_v24, %v2315_v61  ;;  %v1712_v39 = vmax.f32 %v1477_v7, 0.0  ;;  %v2267_v13 = vmax.f32 %v2032_v22, 0.0 }
 0x1ba   :  { %v1481_v63 = vpop.f32.mrb[104].mxu0  ;;  %v2036_v40 = vpop.f32.mrb[104].mxu1 }
 0x1bb   :  { %2414 = vst.msk [vmem:[%s5478_s6 + $0x8] sm:$0xff] %vm2412_vm5, %v2364_v29  ;;  %v2316_v45 = vmax.f32 %v1712_v39, %v2267_v13  ;;  %v1482_v49 = vadd.f32 %v4940_v19, %v1481_v63  ;;  %v2037_v32 = vadd.f32 %v4940_v19, %v2036_v40  ;;  %v3268_v33 = vpop.f32.mrb[105].mxu0  ;;  %v3435_v55 = vpop.f32.mrb[105].mxu1 }
 0x1bd   :  { %v2365_v60 = vmax.f32 %v4439_v35, %v2316_v45  ;;  %v1713_v6 = vmax.f32 %v1482_v49, 0.0  ;;  %v2268_v24 = vmax.f32 %v2037_v32, 0.0 }
 0x1be   :  { %v1486_v0 = vpop.f32.mrb[106].mxu0  ;;  %v2041_v2 = vpop.f32.mrb[106].mxu1 }
 0x1bf   :  { %2415 = vst.msk [vmem:[%s5478_s6 + $0x10] sm:$0xff] %vm2412_vm5, %v2365_v60  ;;  %v2317_v61 = vmax.f32 %v1713_v6, %v2268_v24  ;;  %v1487_v7 = vadd.f32 %v4940_v19, %v1486_v0  ;;  %v2042_v22 = vadd.f32 %v4940_v19, %v2041_v2  ;;  %v3271_v25 = vpop.f32.mrb[107].mxu0  ;;  %v3438_v27 = vpop.f32.mrb[107].mxu1 }
 0x1c1   :  { %v2366_v29 = vmax.f32 %v4455_v46, %v2317_v61  ;;  %v1714_v39 = vmax.f32 %v1487_v7, 0.0  ;;  %v2269_v35 = vmax.f32 %v2042_v22, 0.0 }
 0x1c2   :  { %v1491_v13 = vpop.f32.mrb[108].mxu0  ;;  %v2046_v63 = vpop.f32.mrb[108].mxu1 }
 0x1c3   :  { %2416 = vst.msk [vmem:[%s5478_s6 + $0x18] sm:$0xff] %vm2412_vm5, %v2366_v29  ;;  %v2318_v40 = vmax.f32 %v1714_v39, %v2269_v35  ;;  %v1492_v45 = vadd.f32 %v4940_v19, %v1491_v13  ;;  %v2047_v49 = vadd.f32 %v4940_v19, %v2046_v63  ;;  %v3274_v32 = vpop.f32.mrb[109].mxu0  ;;  %v3441_v33 = vpop.f32.mrb[109].mxu1 }
 0x1c5   :  { %v2367_v55 = vmax.f32 %v4471_v57, %v2318_v40  ;;  %v1715_v60 = vmax.f32 %v1492_v45, 0.0  ;;  %v2270_v46 = vmax.f32 %v2047_v49, 0.0 }
 0x1c6   :  { %v1496_v6 = vpop.f32.mrb[110].mxu0  ;;  %v2051_v24 = vpop.f32.mrb[110].mxu1 }
 0x1c7   :  { %2417 = vst.msk [vmem:[%s5478_s6 + $0x20] sm:$0xff] %vm2412_vm5, %v2367_v55  ;;  %v2319_v0 = vmax.f32 %v1715_v60, %v2270_v46  ;;  %v1497_v2 = vadd.f32 %v4940_v19, %v1496_v6  ;;  %v2052_v61 = vadd.f32 %v4940_v19, %v2051_v24  ;;  %v3277_v7 = vpop.f32.mrb[111].mxu0  ;;  %v3444_v22 = vpop.f32.mrb[111].mxu1 }
 0x1c9   :  { %v2368_v25 = vmax.f32 %v4487_v5, %v2319_v0  ;;  %v1716_v27 = vmax.f32 %v1497_v2, 0.0  ;;  %v2271_v57 = vmax.f32 %v2052_v61, 0.0 }
 0x1ca   :  { %v1501_v29 = vpop.f32.mrb[112].mxu0  ;;  %v2056_v39 = vpop.f32.mrb[112].mxu1 }
 0x1cb   :  { %2418 = vst.msk [vmem:[%s5478_s6 + $0x28] sm:$0xff] %vm2412_vm5, %v2368_v25  ;;  %v2320_v35 = vmax.f32 %v1716_v27, %v2271_v57  ;;  %v1502_v13 = vadd.f32 %v4940_v19, %v1501_v29  ;;  %v2057_v63 = vadd.f32 %v4940_v19, %v2056_v39  ;;  %v3280_v40 = vpop.f32.mrb[113].mxu0  ;;  %v3447_v45 = vpop.f32.mrb[113].mxu1 }
 0x1cd   :  { %v2369_v49 = vmax.f32 %v4503_v18, %v2320_v35  ;;  %v1717_v32 = vmax.f32 %v1502_v13, 0.0  ;;  %v2272_v5 = vmax.f32 %v2057_v63, 0.0 }
 0x1ce   :  { %v1506_v33 = vpop.f32.mrb[114].mxu0  ;;  %v2061_v55 = vpop.f32.mrb[114].mxu1 }
 0x1cf   :  { %2419 = vst.msk [vmem:[%s5478_s6 + $0x30] sm:$0xff] %vm2412_vm5, %v2369_v49  ;;  %v2321_v60 = vmax.f32 %v1717_v32, %v2272_v5  ;;  %v1507_v46 = vadd.f32 %v4940_v19, %v1506_v33  ;;  %v2062_v6 = vadd.f32 %v4940_v19, %v2061_v55  ;;  %v3283_v24 = vpop.f32.mrb[115].mxu0  ;;  %v3450_v0 = vpop.f32.mrb[115].mxu1 }
 0x1d1   :  { %v2370_v2 = vmax.f32 %v4519_v30, %v2321_v60  ;;  %v1718_v61 = vmax.f32 %v1507_v46, 0.0  ;;  %v2273_v18 = vmax.f32 %v2062_v6, 0.0 }
 0x1d2   :  { %v1511_v7 = vpop.f32.mrb[116].mxu0  ;;  %v2066_v22 = vpop.f32.mrb[116].mxu1 }
 0x1d3   :  { %2420 = vst.msk [vmem:[%s5478_s6 + $0x38] sm:$0xff] %vm2412_vm5, %v2370_v2  ;;  %v2322_v25 = vmax.f32 %v1718_v61, %v2273_v18  ;;  %v1512_v27 = vadd.f32 %v4940_v19, %v1511_v7  ;;  %v2067_v57 = vadd.f32 %v4940_v19, %v2066_v22  ;;  %v3286_v29 = vpop.f32.mrb[117].mxu0  ;;  %v3453_v39 = vpop.f32.mrb[117].mxu1 }
 0x1d5   :  { %v2371_v35 = vmax.f32 %v4535_v42, %v2322_v25  ;;  %v1719_v13 = vmax.f32 %v1512_v27, 0.0  ;;  %v2274_v30 = vmax.f32 %v2067_v57, 0.0 }
 0x1d6   :  { %v1516_v63 = vpop.f32.mrb[118].mxu0  ;;  %v2071_v40 = vpop.f32.mrb[118].mxu1 }
 0x1d7   :  { %2421 = vst.msk [vmem:[%s5478_s6 + $0x40] sm:$0xff] %vm2412_vm5, %v2371_v35  ;;  %v2323_v45 = vmax.f32 %v1719_v13, %v2274_v30  ;;  %v1517_v49 = vadd.f32 %v4940_v19, %v1516_v63  ;;  %v2072_v32 = vadd.f32 %v4940_v19, %v2071_v40  ;;  %v3289_v5 = vpop.f32.mrb[119].mxu0  ;;  %v3456_v33 = vpop.f32.mrb[119].mxu1 }
 0x1d9   :  { %v2372_v55 = vmax.f32 %v4551_v54, %v2323_v45  ;;  %v1720_v60 = vmax.f32 %v1517_v49, 0.0  ;;  %v2275_v42 = vmax.f32 %v2072_v32, 0.0 }
 0x1da   :  { %v1521_v46 = vpop.f32.mrb[120].mxu0  ;;  %v2076_v6 = vpop.f32.mrb[120].mxu1 }
 0x1db   :  { %2422 = vst.msk [vmem:[%s5478_s6 + $0x48] sm:$0xff] %vm2412_vm5, %v2372_v55  ;;  %v2324_v24 = vmax.f32 %v1720_v60, %v2275_v42  ;;  %v1522_v0 = vadd.f32 %v4940_v19, %v1521_v46  ;;  %v2077_v2 = vadd.f32 %v4940_v19, %v2076_v6  ;;  %v3292_v61 = vpop.f32.mrb[121].mxu0  ;;  %v3459_v18 = vpop.f32.mrb[121].mxu1 }
 0x1dd   :  { %v2373_v7 = vmax.f32 %v4567_v3, %v2324_v24  ;;  %v1721_v22 = vmax.f32 %v1522_v0, 0.0  ;;  %v2276_v54 = vmax.f32 %v2077_v2, 0.0 }
 0x1de   :  { %v1526_v25 = vpop.f32.mrb[122].mxu0  ;;  %v2081_v27 = vpop.f32.mrb[122].mxu1 }
 0x1df   :  { %2423 = vst.msk [vmem:[%s5478_s6 + $0x50] sm:$0xff] %vm2412_vm5, %v2373_v7  ;;  %v2325_v57 = vmax.f32 %v1721_v22, %v2276_v54  ;;  %v1527_v29 = vadd.f32 %v4940_v19, %v1526_v25  ;;  %v2082_v39 = vadd.f32 %v4940_v19, %v2081_v27  ;;  %v3295_v35 = vpop.f32.mrb[123].mxu0  ;;  %v3462_v13 = vpop.f32.mrb[123].mxu1 }
 0x1e1   :  { %v2374_v30 = vmax.f32 %v4583_v17, %v2325_v57  ;;  %v1722_v63 = vmax.f32 %v1527_v29, 0.0  ;;  %v2277_v3 = vmax.f32 %v2082_v39, 0.0 }
 0x1e2   :  { %v1531_v40 = vpop.f32.mrb[124].mxu0  ;;  %v2086_v45 = vpop.f32.mrb[124].mxu1 }
 0x1e3   :  { %2424 = vst.msk [vmem:[%s5478_s6 + $0x58] sm:$0xff] %vm2412_vm5, %v2374_v30  ;;  %v2326_v49 = vmax.f32 %v1722_v63, %v2277_v3  ;;  %v1532_v32 = vadd.f32 %v4940_v19, %v1531_v40  ;;  %v2087_v5 = vadd.f32 %v4940_v19, %v2086_v45  ;;  %v3298_v33 = vpop.f32.mrb[125].mxu0  ;;  %v3465_v55 = vpop.f32.mrb[125].mxu1 }
 0x1e5   :  { %v2375_v60 = vmax.f32 %v4599_v31, %v2326_v49  ;;  %v1723_v42 = vmax.f32 %v1532_v32, 0.0  ;;  %v2278_v17 = vmax.f32 %v2087_v5, 0.0 }
 0x1e6   :  { %v1536_v46 = vpop.f32.mrb[126].mxu0  ;;  %v2091_v6 = vpop.f32.mrb[126].mxu1 }
 0x1e7   :  { %2425 = vst.msk [vmem:[%s5478_s6 + $0x60] sm:$0xff] %vm2412_vm5, %v2375_v60  ;;  %v2327_v24 = vmax.f32 %v1723_v42, %v2278_v17  ;;  %v1537_v0 = vadd.f32 %v4940_v19, %v1536_v46  ;;  %v2092_v2 = vadd.f32 %v4940_v19, %v2091_v6  ;;  %v3301_v61 = vpop.f32.mrb[127].mxu0  ;;  %v3468_v18 = vpop.f32.mrb[127].mxu1 }
 0x1e9   :  { %v2376_v7 = vmax.f32 %v4615_v44, %v2327_v24  ;;  %v1724_v22 = vmax.f32 %v1537_v0, 0.0  ;;  %v2279_v31 = vmax.f32 %v2092_v2, 0.0 }
 0x1ea   :  { %v1541_v54 = vpop.f32.mrb[128].mxu0  ;;  %v2096_v25 = vpop.f32.mrb[128].mxu1 }
 0x1eb   :  { %2426 = vst.msk [vmem:[%s5478_s6 + $0x68] sm:$0xff] %vm2412_vm5, %v2376_v7  ;;  %v2328_v27 = vmax.f32 %v1724_v22, %v2279_v31  ;;  %v1542_v57 = vadd.f32 %v4940_v19, %v1541_v54  ;;  %v2097_v29 = vadd.f32 %v4940_v19, %v2096_v25  ;;  %v3304_v39 = vpop.f32.mrb[129].mxu0  ;;  %v3471_v35 = vpop.f32.mrb[129].mxu1 }
 0x1ed   :  { %v2377_v13 = vmax.f32 %v4631_v58, %v2328_v27  ;;  %v1725_v30 = vmax.f32 %v1542_v57, 0.0  ;;  %v2280_v44 = vmax.f32 %v2097_v29, 0.0 }
 0x1ee   :  { %v1546_v63 = vpop.f32.mrb[130].mxu0  ;;  %v2101_v3 = vpop.f32.mrb[130].mxu1 }
 0x1ef   :  { %2427 = vst.msk [vmem:[%s5478_s6 + $0x70] sm:$0xff] %vm2412_vm5, %v2377_v13  ;;  %v2329_v40 = vmax.f32 %v1725_v30, %v2280_v44  ;;  %v1547_v45 = vadd.f32 %v4940_v19, %v1546_v63  ;;  %v2102_v49 = vadd.f32 %v4940_v19, %v2101_v3  ;;  %v3307_v32 = vpop.f32.mrb[131].mxu0  ;;  %v3474_v5 = vpop.f32.mrb[131].mxu1 }
 0x1f1   :  { %v2378_v33 = vmax.f32 %v4647_v9, %v2329_v40  ;;  %v1726_v55 = vmax.f32 %v1547_v45, 0.0  ;;  %v2281_v58 = vmax.f32 %v2102_v49, 0.0 }
 0x1f2   :  { %v1551_v60 = vpop.f32.mrb[132].mxu0  ;;  %v2106_v42 = vpop.f32.mrb[132].mxu1 }
 0x1f3   :  { %2428 = vst.msk [vmem:[%s5478_s6 + $0x78] sm:$0xff] %vm2412_vm5, %v2378_v33  ;;  %v2330_v17 = vmax.f32 %v1726_v55, %v2281_v58  ;;  %v1552_v46 = vadd.f32 %v4940_v19, %v1551_v60  ;;  %v2107_v6 = vadd.f32 %v4940_v19, %v2106_v42  ;;  %v3310_v24 = vpop.f32.mrb[133].mxu0  ;;  %v3477_v0 = vpop.f32.mrb[133].mxu1 }
 0x1f5   :  { %v2379_v2 = vmax.f32 %v4663_v23, %v2330_v17  ;;  %v1727_v61 = vmax.f32 %v1552_v46, 0.0  ;;  %v2282_v9 = vmax.f32 %v2107_v6, 0.0 }
 0x1f6   :  { %v1556_v18 = vpop.f32.mrb[134].mxu0  ;;  %v2111_v7 = vpop.f32.mrb[134].mxu1 }
 0x1f7   :  { %2429 = vst.msk [vmem:[%s5478_s6 + $0x80] sm:$0xff] %vm2412_vm5, %v2379_v2  ;;  %v2331_v22 = vmax.f32 %v1727_v61, %v2282_v9  ;;  %v1557_v31 = vadd.f32 %v4940_v19, %v1556_v18  ;;  %v2112_v54 = vadd.f32 %v4940_v19, %v2111_v7  ;;  %v3313_v25 = vpop.f32.mrb[135].mxu0  ;;  %v3480_v27 = vpop.f32.mrb[135].mxu1 }
 0x1f9   :  { %v2380_v57 = vmax.f32 %v4679_v38, %v2331_v22  ;;  %v1728_v29 = vmax.f32 %v1557_v31, 0.0  ;;  %v2283_v23 = vmax.f32 %v2112_v54, 0.0 }
 0x1fa   :  { %v1561_v39 = vpop.f32.mrb[136].mxu0  ;;  %v2116_v35 = vpop.f32.mrb[136].mxu1 }
 0x1fb   :  { %2430 = vst.msk [vmem:[%s5478_s6 + $0x88] sm:$0xff] %vm2412_vm5, %v2380_v57  ;;  %v2332_v13 = vmax.f32 %v1728_v29, %v2283_v23  ;;  %v1562_v30 = vadd.f32 %v4940_v19, %v1561_v39  ;;  %v2117_v44 = vadd.f32 %v4940_v19, %v2116_v35  ;;  %v3316_v63 = vpop.f32.mrb[137].mxu0  ;;  %v3483_v3 = vpop.f32.mrb[137].mxu1 }
 0x1fd   :  { %v2381_v40 = vmax.f32 %v4695_v52, %v2332_v13  ;;  %v1729_v45 = vmax.f32 %v1562_v30, 0.0  ;;  %v2284_v38 = vmax.f32 %v2117_v44, 0.0 }
 0x1fe   :  { %v1566_v49 = vpop.f32.mrb[138].mxu0  ;;  %v2121_v32 = vpop.f32.mrb[138].mxu1 }
 0x1ff   :  { %2431 = vst.msk [vmem:[%s5478_s6 + $0x90] sm:$0xff] %vm2412_vm5, %v2381_v40  ;;  %v2333_v5 = vmax.f32 %v1729_v45, %v2284_v38  ;;  %v1567_v33 = vadd.f32 %v4940_v19, %v1566_v49  ;;  %v2122_v55 = vadd.f32 %v4940_v19, %v2121_v32  ;;  %v3319_v58 = vpop.f32.mrb[139].mxu0  ;;  %v3486_v60 = vpop.f32.mrb[139].mxu1 }
 0x201   :  { %v2382_v42 = vmax.f32 %v4711_v4, %v2333_v5  ;;  %v1730_v17 = vmax.f32 %v1567_v33, 0.0  ;;  %v2285_v52 = vmax.f32 %v2122_v55, 0.0 }
 0x202   :  { %v1571_v46 = vpop.f32.mrb[140].mxu0  ;;  %v2126_v6 = vpop.f32.mrb[140].mxu1 }
 0x203   :  { %2432 = vst.msk [vmem:[%s5478_s6 + $0x98] sm:$0xff] %vm2412_vm5, %v2382_v42  ;;  %v2334_v24 = vmax.f32 %v1730_v17, %v2285_v52  ;;  %v1572_v0 = vadd.f32 %v4940_v19, %v1571_v46  ;;  %v2127_v2 = vadd.f32 %v4940_v19, %v2126_v6  ;;  %v3322_v61 = vpop.f32.mrb[141].mxu0  ;;  %v3489_v9 = vpop.f32.mrb[141].mxu1 }
 0x205   :  { %v2383_v18 = vmax.f32 %v4727_v21, %v2334_v24  ;;  %v1731_v7 = vmax.f32 %v1572_v0, 0.0  ;;  %v2286_v4 = vmax.f32 %v2127_v2, 0.0 }
 0x206   :  { %v1576_v22 = vpop.f32.mrb[142].mxu0  ;;  %v2131_v31 = vpop.f32.mrb[142].mxu1 }
 0x207   :  { %2433 = vst.msk [vmem:[%s5478_s6 + $0xa0] sm:$0xff] %vm2412_vm5, %v2383_v18  ;;  %v2335_v54 = vmax.f32 %v1731_v7, %v2286_v4  ;;  %v1577_v25 = vadd.f32 %v4940_v19, %v1576_v22  ;;  %v2132_v27 = vadd.f32 %v4940_v19, %v2131_v31  ;;  %v3325_v57 = vpop.f32.mrb[143].mxu0  ;;  %v3492_v29 = vpop.f32.mrb[143].mxu1 }
 0x209   :  { %v2384_v23 = vmax.f32 %v4743_v37, %v2335_v54  ;;  %v1732_v39 = vmax.f32 %v1577_v25, 0.0  ;;  %v2287_v21 = vmax.f32 %v2132_v27, 0.0 }
 0x20a   :  { %v1581_v35 = vpop.f32.mrb[144].mxu0  ;;  %v2136_v13 = vpop.f32.mrb[144].mxu1 }
 0x20b   :  { %2434 = vst.msk [vmem:[%s5478_s6 + $0xa8] sm:$0xff] %vm2412_vm5, %v2384_v23  ;;  %v2336_v30 = vmax.f32 %v1732_v39, %v2287_v21  ;;  %v1582_v44 = vadd.f32 %v4940_v19, %v1581_v35  ;;  %v2137_v63 = vadd.f32 %v4940_v19, %v2136_v13  ;;  %v3328_v3 = vpop.f32.mrb[145].mxu0  ;;  %v3495_v40 = vpop.f32.mrb[145].mxu1 }
 0x20d   :  { %v2385_v45 = vmax.f32 %v4759_v53, %v2336_v30  ;;  %v1733_v38 = vmax.f32 %v1582_v44, 0.0  ;;  %v2288_v37 = vmax.f32 %v2137_v63, 0.0 }
 0x20e   :  { %v1586_v49 = vpop.f32.mrb[146].mxu0  ;;  %v2141_v32 = vpop.f32.mrb[146].mxu1 }
 0x20f   :  { %2435 = vst.msk [vmem:[%s5478_s6 + $0xb0] sm:$0xff] %vm2412_vm5, %v2385_v45  ;;  %v2337_v5 = vmax.f32 %v1733_v38, %v2288_v37  ;;  %v1587_v33 = vadd.f32 %v4940_v19, %v1586_v49  ;;  %v2142_v55 = vadd.f32 %v4940_v19, %v2141_v32  ;;  %v3331_v58 = vpop.f32.mrb[147].mxu0  ;;  %v3498_v60 = vpop.f32.mrb[147].mxu1 }
 0x211   :  { %v2386_v42 = vmax.f32 %v4775_v8, %v2337_v5  ;;  %v1734_v17 = vmax.f32 %v1587_v33, 0.0  ;;  %v2289_v53 = vmax.f32 %v2142_v55, 0.0 }
 0x212   :  { %v1591_v52 = vpop.f32.mrb[148].mxu0  ;;  %v2146_v46 = vpop.f32.mrb[148].mxu1 }
 0x213   :  { %2436 = vst.msk [vmem:[%s5478_s6 + $0xb8] sm:$0xff] %vm2412_vm5, %v2386_v42  ;;  %v2338_v6 = vmax.f32 %v1734_v17, %v2289_v53  ;;  %v1592_v24 = vadd.f32 %v4940_v19, %v1591_v52  ;;  %v2147_v0 = vadd.f32 %v4940_v19, %v2146_v46  ;;  %v3334_v2 = vpop.f32.mrb[149].mxu0  ;;  %v3501_v61 = vpop.f32.mrb[149].mxu1  ;;  %v5325_v17 = vld [vmem:[%s5477_s5] ss:$0 sm:$0xff] }
 0x215   :  { %v2387_v9 = vmax.f32 %v4791_v26, %v2338_v6  ;;  %v1735_v18 = vmax.f32 %v1592_v24, 0.0  ;;  %v2290_v8 = vmax.f32 %v2147_v0, 0.0 }
 0x216   :  { %v1596_v7 = vpop.f32.mrb[150].mxu0  ;;  %v2151_v4 = vpop.f32.mrb[150].mxu1 }
 0x217   :  { %2437 = vst.msk [vmem:[%s5478_s6 + $0xc0] sm:$0xff] %vm2412_vm5, %v2387_v9  ;;  %v2339_v22 = vmax.f32 %v1735_v18, %v2290_v8  ;;  %v1597_v31 = vadd.f32 %v4940_v19, %v1596_v7  ;;  %v2152_v54 = vadd.f32 %v4940_v19, %v2151_v4  ;;  %v3337_v25 = vpop.f32.mrb[151].mxu0  ;;  %v3504_v27 = vpop.f32.mrb[151].mxu1 }
 0x219   :  { %v2388_v57 = vmax.f32 %v4807_v43, %v2339_v22  ;;  %v1736_v29 = vmax.f32 %v1597_v31, 0.0  ;;  %v2291_v26 = vmax.f32 %v2152_v54, 0.0 }
 0x21a   :  { %v1601_v23 = vpop.f32.mrb[152].mxu0  ;;  %v2156_v39 = vpop.f32.mrb[152].mxu1 }
 0x21b   :  { %2438 = vst.msk [vmem:[%s5478_s6 + $0xc8] sm:$0xff] %vm2412_vm5, %v2388_v57  ;;  %v2340_v21 = vmax.f32 %v1736_v29, %v2291_v26  ;;  %v1602_v35 = vadd.f32 %v4940_v19, %v1601_v23  ;;  %v2157_v13 = vadd.f32 %v4940_v19, %v2156_v39  ;;  %v3340_v30 = vpop.f32.mrb[153].mxu0  ;;  %v3507_v44 = vpop.f32.mrb[153].mxu1 }
 0x21d   :  { %v2389_v63 = vmax.f32 %v4823_v62, %v2340_v21  ;;  %v1737_v3 = vmax.f32 %v1602_v35, 0.0  ;;  %v2292_v43 = vmax.f32 %v2157_v13, 0.0 }
 0x21e   :  { %v1606_v40 = vpop.f32.mrb[154].mxu0  ;;  %v2161_v45 = vpop.f32.mrb[154].mxu1 }
 0x21f   :  { %2439 = vst.msk [vmem:[%s5478_s6 + $0xd0] sm:$0xff] %vm2412_vm5, %v2389_v63  ;;  %v2341_v38 = vmax.f32 %v1737_v3, %v2292_v43  ;;  %v1607_v37 = vadd.f32 %v4940_v19, %v1606_v40  ;;  %v2162_v49 = vadd.f32 %v4940_v19, %v2161_v45  ;;  %v3343_v32 = vpop.f32.mrb[155].mxu0  ;;  %v3510_v5 = vpop.f32.mrb[155].mxu1 }
 0x221   :  { %v2390_v33 = vmax.f32 %v4839_v16, %v2341_v38  ;;  %v1738_v55 = vmax.f32 %v1607_v37, 0.0  ;;  %v2293_v62 = vmax.f32 %v2162_v49, 0.0 }
 0x222   :  { %v1611_v58 = vpop.f32.mrb[156].mxu0  ;;  %v2166_v60 = vpop.f32.mrb[156].mxu1 }
 0x223   :  { %2440 = vst.msk [vmem:[%s5478_s6 + $0xd8] sm:$0xff] %vm2412_vm5, %v2390_v33  ;;  %v2342_v42 = vmax.f32 %v1738_v55, %v2293_v62  ;;  %v1612_v19 = vadd.f32 %v5325_v17, %v1611_v58  ;;  %v2167_v53 = vadd.f32 %v5325_v17, %v2166_v60  ;;  %v3346_v16 = vpop.f32.mrb[157].mxu0  ;;  %v3513_v52 = vpop.f32.mrb[157].mxu1 }
 0x225   :  { %v2391_v46 = vmax.f32 %v4855_v36, %v2342_v42  ;;  %v1739_v6 = vmax.f32 %v1612_v19, 0.0  ;;  %v2294_v24 = vmax.f32 %v2167_v53, 0.0 }
 0x226   :  { %v1616_v0 = vpop.f32.mrb[158].mxu0  ;;  %v2171_v2 = vpop.f32.mrb[158].mxu1 }
 0x227   :  { %2441 = vst.msk [vmem:[%s5478_s6 + $0xe0] sm:$0xff] %vm2412_vm5, %v2391_v46  ;;  %v2343_v61 = vmax.f32 %v1739_v6, %v2294_v24  ;;  %v1617_v9 = vadd.f32 %v5325_v17, %v1616_v0  ;;  %v2172_v18 = vadd.f32 %v5325_v17, %v2171_v2  ;;  %v3349_v8 = vpop.f32.mrb[159].mxu0  ;;  %v3516_v7 = vpop.f32.mrb[159].mxu1 }
 0x229   :  { %v2392_v4 = vmax.f32 %v4871_v56, %v2343_v61  ;;  %v1740_v22 = vmax.f32 %v1617_v9, 0.0  ;;  %v2295_v36 = vmax.f32 %v2172_v18, 0.0 }
 0x22a   :  { %v1621_v31 = vpop.f32.mrb[160].mxu0  ;;  %v2176_v54 = vpop.f32.mrb[160].mxu1 }
 0x22b   :  { %2442 = vst.msk [vmem:[%s5478_s6 + $0xe8] sm:$0xff] %vm2412_vm5, %v2392_v4  ;;  %v2344_v25 = vmax.f32 %v1740_v22, %v2295_v36  ;;  %v1622_v27 = vadd.f32 %v5325_v17, %v1621_v31  ;;  %v2177_v57 = vadd.f32 %v5325_v17, %v2176_v54  ;;  %v3352_v29 = vpop.f32.mrb[161].mxu0  ;;  %v3519_v26 = vpop.f32.mrb[161].mxu1 }
 0x22d   :  { %v2393_v23 = vmax.f32 %v4887_v14, %v2344_v25  ;;  %v1741_v39 = vmax.f32 %v1622_v27, 0.0  ;;  %v2296_v56 = vmax.f32 %v2177_v57, 0.0 }
 0x22e   :  { %v1626_v21 = vpop.f32.mrb[162].mxu0  ;;  %v2181_v35 = vpop.f32.mrb[162].mxu1 }
 0x22f   :  { %2443 = vst.msk [vmem:[%s5478_s6 + $0xf0] sm:$0xff] %vm2412_vm5, %v2393_v23  ;;  %v2345_v13 = vmax.f32 %v1741_v39, %v2296_v56  ;;  %v1627_v30 = vadd.f32 %v5325_v17, %v1626_v21  ;;  %v2182_v44 = vadd.f32 %v5325_v17, %v2181_v35  ;;  %v3355_v63 = vpop.f32.mrb[163].mxu0  ;;  %v3522_v3 = vpop.f32.mrb[163].mxu1 }
 0x231   :  { %v2394_v43 = vmax.f32 %v4903_v34, %v2345_v13  ;;  %v1742_v40 = vmax.f32 %v1627_v30, 0.0  ;;  %v2297_v14 = vmax.f32 %v2182_v44, 0.0 }
 0x232   :  { %v1631_v45 = vpop.f32.mrb[164].mxu0  ;;  %v2186_v38 = vpop.f32.mrb[164].mxu1 }
 0x233   :  { %2444 = vst.msk [vmem:[%s5478_s6 + $0xf8] sm:$0xff] %vm2412_vm5, %v2394_v43  ;;  %v2346_v37 = vmax.f32 %v1742_v40, %v2297_v14  ;;  %v1632_v49 = vadd.f32 %v5325_v17, %v1631_v45  ;;  %v2187_v32 = vadd.f32 %v5325_v17, %v2186_v38  ;;  %v3358_v5 = vpop.f32.mrb[165].mxu0  ;;  %v3525_v33 = vpop.f32.mrb[165].mxu1 }
 0x235   :  { %v2395_v55 = vmax.f32 %v4919_v59, %v2346_v37  ;;  %v1743_v62 = vmax.f32 %v1632_v49, 0.0  ;;  %v2298_v34 = vmax.f32 %v2187_v32, 0.0 }
 0x236   :  { %v1636_v58 = vpop.f32.mrb[166].mxu0  ;;  %v2191_v60 = vpop.f32.mrb[166].mxu1 }
 0x237   :  { %2445 = vst.msk [vmem:[%s5478_s6 + $0x100] sm:$0xff] %vm2412_vm5, %v2395_v55  ;;  %v2347_v42 = vmax.f32 %v1743_v62, %v2298_v34  ;;  %v1637_v19 = vadd.f32 %v5325_v17, %v1636_v58  ;;  %v2192_v53 = vadd.f32 %v5325_v17, %v2191_v60  ;;  %v3361_v16 = vpop.f32.mrb[167].mxu0  ;;  %v3528_v52 = vpop.f32.mrb[167].mxu1 }
 0x239   :  { %v2396_v46 = vmax.f32 %v4935_v15, %v2347_v42  ;;  %v1744_v6 = vmax.f32 %v1637_v19, 0.0  ;;  %v2299_v59 = vmax.f32 %v2192_v53, 0.0 }
 0x23a   :  { %v1641_v24 = vpop.f32.mrb[168].mxu0  ;;  %v2196_v0 = vpop.f32.mrb[168].mxu1 }
 0x23b   :  { %2446 = vst.msk [vmem:[%s5478_s6 + $0x108] sm:$0xff] %vm2412_vm5, %v2396_v46  ;;  %v2348_v2 = vmax.f32 %v1744_v6, %v2299_v59  ;;  %v1642_v61 = vadd.f32 %v5325_v17, %v1641_v24  ;;  %v2197_v9 = vadd.f32 %v5325_v17, %v2196_v0  ;;  %v3364_v18 = vpop.f32.mrb[169].mxu0  ;;  %v3531_v8 = vpop.f32.mrb[169].mxu1 }
 0x23d   :  { %v2397_v7 = vmax.f32 %v4956_v41, %v2348_v2  ;;  %v1745_v4 = vmax.f32 %v1642_v61, 0.0  ;;  %v2300_v15 = vmax.f32 %v2197_v9, 0.0 }
 0x23e   :  { %v1646_v22 = vpop.f32.mrb[170].mxu0  ;;  %v2201_v36 = vpop.f32.mrb[170].mxu1 }
 0x23f   :  { %2447 = vst.msk [vmem:[%s5478_s6 + $0x110] sm:$0xff] %vm2412_vm5, %v2397_v7  ;;  %v2349_v31 = vmax.f32 %v1745_v4, %v2300_v15  ;;  %v1647_v54 = vadd.f32 %v5325_v17, %v1646_v22  ;;  %v2202_v25 = vadd.f32 %v5325_v17, %v2201_v36  ;;  %v3367_v27 = vpop.f32.mrb[171].mxu0  ;;  %v3534_v57 = vpop.f32.mrb[171].mxu1 }
 0x241   :  { %v2398_v29 = vmax.f32 %v4972_v1, %v2349_v31  ;;  %v1746_v26 = vmax.f32 %v1647_v54, 0.0  ;;  %v2301_v41 = vmax.f32 %v2202_v25, 0.0 }
 0x242   :  { %v1651_v23 = vpop.f32.mrb[172].mxu0  ;;  %v2206_v39 = vpop.f32.mrb[172].mxu1 }
 0x243   :  { %2448 = vst.msk [vmem:[%s5478_s6 + $0x118] sm:$0xff] %vm2412_vm5, %v2398_v29  ;;  %v2350_v56 = vmax.f32 %v1746_v26, %v2301_v41  ;;  %v1652_v21 = vadd.f32 %v5325_v17, %v1651_v23  ;;  %v2207_v35 = vadd.f32 %v5325_v17, %v2206_v39  ;;  %v3370_v13 = vpop.f32.mrb[173].mxu0  ;;  %v3537_v30 = vpop.f32.mrb[173].mxu1 }
 0x245   :  { %v2399_v44 = vmax.f32 %v4988_v28, %v2350_v56  ;;  %v1747_v63 = vmax.f32 %v1652_v21, 0.0  ;;  %v2302_v1 = vmax.f32 %v2207_v35, 0.0 }
 0x246   :  { %v1656_v3 = vpop.f32.mrb[174].mxu0  ;;  %v2211_v43 = vpop.f32.mrb[174].mxu1 }
 0x247   :  { %2449 = vst.msk [vmem:[%s5478_s6 + $0x120] sm:$0xff] %vm2412_vm5, %v2399_v44  ;;  %v2351_v40 = vmax.f32 %v1747_v63, %v2302_v1  ;;  %v1657_v14 = vadd.f32 %v5325_v17, %v1656_v3  ;;  %v2212_v45 = vadd.f32 %v5325_v17, %v2211_v43  ;;  %v3373_v38 = vpop.f32.mrb[175].mxu0  ;;  %v3540_v37 = vpop.f32.mrb[175].mxu1 }
 0x249   :  { %v2400_v49 = vmax.f32 %v5004_v51, %v2351_v40  ;;  %v1748_v32 = vmax.f32 %v1657_v14, 0.0  ;;  %v2303_v28 = vmax.f32 %v2212_v45, 0.0 }
 0x24a   :  { %v1661_v5 = vpop.f32.mrb[176].mxu0  ;;  %v2216_v33 = vpop.f32.mrb[176].mxu1 }
 0x24b   :  { %2450 = vst.msk [vmem:[%s5478_s6 + $0x128] sm:$0xff] %vm2412_vm5, %v2400_v49  ;;  %v2352_v55 = vmax.f32 %v1748_v32, %v2303_v28  ;;  %v1662_v62 = vadd.f32 %v5325_v17, %v1661_v5  ;;  %v2217_v34 = vadd.f32 %v5325_v17, %v2216_v33  ;;  %v3376_v58 = vpop.f32.mrb[177].mxu0  ;;  %v3543_v60 = vpop.f32.mrb[177].mxu1 }
 0x24c   :  { %v5485_v60 = vld [vmem:[#allocation2_spill] sm:$0xff] }
 0x24d   :  { %v2401_v42 = vmax.f32 %v5020_v20, %v2352_v55  ;;  %v1749_v19 = vmax.f32 %v1662_v62, 0.0  ;;  %v2304_v51 = vmax.f32 %v2217_v34, 0.0 }
 0x24e   :  { %v1666_v53 = vpop.f32.mrb[178].mxu0  ;;  %v2221_v16 = vpop.f32.mrb[178].mxu1 }
 0x24f   :  { %2451 = vst.msk [vmem:[%s5478_s6 + $0x130] sm:$0xff] %vm2412_vm5, %v2401_v42  ;;  %v2353_v52 = vmax.f32 %v1749_v19, %v2304_v51  ;;  %v1667_v46 = vadd.f32 %v5325_v17, %v1666_v53  ;;  %v2222_v6 = vadd.f32 %v5325_v17, %v2221_v16  ;;  %v3379_v59 = vpop.f32.mrb[179].mxu0  ;;  %v3546_v24 = vpop.f32.mrb[179].mxu1 }
 0x250   :  { %v5486_v24 = vld [vmem:[#allocation3_spill] sm:$0xff] }
 0x251   :  { %v2402_v0 = vmax.f32 %v5036_v48, %v2353_v52  ;;  %v1750_v2 = vmax.f32 %v1667_v46, 0.0  ;;  %v2305_v20 = vmax.f32 %v2222_v6, 0.0 }
 0x252   :  { %v1671_v61 = vpop.f32.mrb[180].mxu0  ;;  %v2226_v9 = vpop.f32.mrb[180].mxu1 }
 0x253   :  { %2452 = vst.msk [vmem:[%s5478_s6 + $0x138] sm:$0xff] %vm2412_vm5, %v2402_v0  ;;  %v2354_v18 = vmax.f32 %v1750_v2, %v2305_v20  ;;  %v1672_v8 = vadd.f32 %v5325_v17, %v1671_v61  ;;  %v2227_v7 = vadd.f32 %v5325_v17, %v2226_v9  ;;  %v3382_v4 = vpop.f32.mrb[181].mxu0  ;;  %v3549_v15 = vpop.f32.mrb[181].mxu1 }
 0x255   :  { %v2403_v22 = vmax.f32 %v5052_v11, %v2354_v18  ;;  %v1751_v36 = vmax.f32 %v1672_v8, 0.0  ;;  %v2306_v48 = vmax.f32 %v2227_v7, 0.0 }
 0x256   :  { %v1676_v31 = vpop.f32.mrb[182].mxu0  ;;  %v2231_v54 = vpop.f32.mrb[182].mxu1 }
 0x257   :  { %2453 = vst.msk [vmem:[%s5478_s6 + $0x140] sm:$0xff] %vm2412_vm5, %v2403_v22  ;;  %v2355_v25 = vmax.f32 %v1751_v36, %v2306_v48  ;;  %v1677_v27 = vadd.f32 %v5325_v17, %v1676_v31  ;;  %v2232_v57 = vadd.f32 %v5325_v17, %v2231_v54  ;;  %v3385_v29 = vpop.f32.mrb[183].mxu0  ;;  %v3552_v26 = vpop.f32.mrb[183].mxu1  ;;  %v5487_v22 = vld [vmem:[#allocation4_spill] sm:$0xff] }
 0x259   :  { %v2404_v41 = vmax.f32 %v5068_v47, %v2355_v25  ;;  %v1752_v23 = vmax.f32 %v1677_v27, 0.0  ;;  %v2307_v11 = vmax.f32 %v2232_v57, 0.0 }
 0x25a   :  { %v1681_v39 = vpop.f32.mrb[184].mxu0  ;;  %v2236_v56 = vpop.f32.mrb[184].mxu1 }
 0x25b   :  { %2454 = vst.msk [vmem:[%s5478_s6 + $0x148] sm:$0xff] %vm2412_vm5, %v2404_v41  ;;  %v2356_v21 = vmax.f32 %v1752_v23, %v2307_v11  ;;  %v1682_v35 = vadd.f32 %v5325_v17, %v1681_v39  ;;  %v2237_v13 = vadd.f32 %v5325_v17, %v2236_v56  ;;  %v3388_v30 = vpop.f32.mrb[185].mxu0  ;;  %v3555_v44 = vpop.f32.mrb[185].mxu1  ;;  %v5488_v23 = vld [vmem:[#allocation5_spill] sm:$0xff] }
 0x25d   :  { %v2405_v63 = vmax.f32 %v5084_v12, %v2356_v21  ;;  %v1753_v1 = vmax.f32 %v1682_v35, 0.0  ;;  %v2308_v47 = vmax.f32 %v2237_v13, 0.0 }
 0x25e   :  { %v1686_v3 = vpop.f32.mrb[186].mxu0  ;;  %v2241_v43 = vpop.f32.mrb[186].mxu1 }
 0x25f   :  { %2455 = vst.msk [vmem:[%s5478_s6 + $0x150] sm:$0xff] %vm2412_vm5, %v2405_v63  ;;  %v2357_v40 = vmax.f32 %v1753_v1, %v2308_v47  ;;  %v1687_v14 = vadd.f32 %v5325_v17, %v1686_v3  ;;  %v2242_v45 = vadd.f32 %v5325_v17, %v2241_v43  ;;  %v3391_v38 = vpop.f32.mrb[187].mxu0  ;;  %v3558_v37 = vpop.f32.mrb[187].mxu1 }
 0x261   :  { %v2406_v49 = vmax.f32 %v5100_v50, %v2357_v40  ;;  %v1754_v32 = vmax.f32 %v1687_v14, 0.0  ;;  %v2309_v12 = vmax.f32 %v2242_v45, 0.0 }
 0x262   :  { %v1691_v28 = vpop.f32.mrb[188].mxu0  ;;  %v2246_v5 = vpop.f32.mrb[188].mxu1 }
 0x263   :  { %2456 = vst.msk [vmem:[%s5478_s6 + $0x158] sm:$0xff] %vm2412_vm5, %v2406_v49  ;;  %v2358_v33 = vmax.f32 %v1754_v32, %v2309_v12  ;;  %v1692_v55 = vadd.f32 %v5325_v17, %v1691_v28  ;;  %v2247_v62 = vadd.f32 %v5325_v17, %v2246_v5  ;;  %v3394_v34 = vpop.f32.mrb[189].mxu0  ;;  %v3561_v58 = vpop.f32.mrb[189].mxu1 }
 0x265   :  { %v2407_v42 = vmax.f32 %v5485_v60, %v2358_v33  ;;  %v1755_v19 = vmax.f32 %v1692_v55, 0.0  ;;  %v2310_v50 = vmax.f32 %v2247_v62, 0.0 }
 0x266   :  { %v1696_v51 = vpop.f32.mrb[190].mxu0  ;;  %v2251_v53 = vpop.f32.mrb[190].mxu1 }
 0x267   :  { %2457 = vst.msk [vmem:[%s5478_s6 + $0x160] sm:$0xff] %vm2412_vm5, %v2407_v42  ;;  %v2359_v16 = vmax.f32 %v1755_v19, %v2310_v50  ;;  %v1697_v52 = vadd.f32 %v5325_v17, %v1696_v51  ;;  %v2252_v46 = vadd.f32 %v5325_v17, %v2251_v53  ;;  %v3397_v6 = vpop.f32.mrb[191].mxu0  ;;  %v3564_v59 = vpop.f32.mrb[191].mxu1 }
 0x269   :  { %v2408_v0 = vmax.f32 %v5486_v24, %v2359_v16  ;;  %v1756_v2 = vmax.f32 %v1697_v52, 0.0  ;;  %v2311_v20 = vmax.f32 %v2252_v46, 0.0 }
 0x26a   :  { %v1701_v61 = vpop.f32.mrb[192].mxu0  ;;  %v2256_v9 = vpop.f32.mrb[192].mxu1 }
 0x26b   :  { %2458 = vst.msk [vmem:[%s5478_s6 + $0x168] sm:$0xff] %vm2412_vm5, %v2408_v0  ;;  %v2360_v18 = vmax.f32 %v1756_v2, %v2311_v20  ;;  %v1702_v8 = vadd.f32 %v5325_v17, %v1701_v61  ;;  %v2257_v7 = vadd.f32 %v5325_v17, %v2256_v9  ;;  %v3400_v4 = vpop.f32.mrb[193].mxu0  ;;  %v3567_v15 = vpop.f32.mrb[193].mxu1 }
 0x26d   :  { %v2409_v36 = vmax.f32 %v5487_v22, %v2360_v18  ;;  %v1757_v48 = vmax.f32 %v1702_v8, 0.0  ;;  %v2312_v31 = vmax.f32 %v2257_v7, 0.0 }
 0x26e   :  { %v1706_v54 = vpop.f32.mrb[194].mxu0  ;;  %v2261_v25 = vpop.f32.mrb[194].mxu1 }
 0x26f   :  { %2459 = vst.msk [vmem:[%s5478_s6 + $0x170] sm:$0xff] %vm2412_vm5, %v2409_v36  ;;  %v2361_v27 = vmax.f32 %v1757_v48, %v2312_v31  ;;  %v1707_v57 = vadd.f32 %v5325_v17, %v1706_v54  ;;  %v2262_v29 = vadd.f32 %v5325_v17, %v2261_v25  ;;  %v3403_v26 = vpop.f32.mrb[195].mxu0  ;;  %v3570_v41 = vpop.f32.mrb[195].mxu1 }
 0x271   :  { %v2410_v11 = vmax.f32 %v5488_v23, %v2361_v27  ;;  %v1758_v39 = vmax.f32 %v1707_v57, 0.0  ;;  %v2313_v56 = vmax.f32 %v2262_v29, 0.0 }
 0x273   :  { %2460 = vst.msk [vmem:[%s5478_s6 + $0x178] sm:$0xff] %vm2412_vm5, %v2410_v11  ;;  %v2362_v21 = vmax.f32 %v1758_v39, %v2313_v56 }
 0x275   :  { %v2411_v35 = vmax.f32 %v5122_v10, %v2362_v21 }
 0x277   :  { %2461 = vst.msk [vmem:[%s5478_s6 + $0x180] sm:$0xff] %vm2412_vm5, %v2411_v35 }

// kernel: net_forward.4
= control target key start
LH: loop header
LB: loop body
LE: loop exit
PB: predicated region body
PF: predicated region fallthrough
CT: control target
= control target key end

     0   :  { %v799_v0 = vmov 0.0|0.0   ;;  %vm63_vm0 = vcmask 179200   ;;  %v800_v30 = vmov 0.0   ;;  %vm85_vm1 = vcmask 1045504   ;;  %s1274_s4 = inlined_call_operand.vmem [shape: f32[150,16], index: 4, kind: input, shape index: {}]   ;;  %s1275_s0 = inlined_call_operand.vmem [shape: f32[50,150], index: 0, kind: input, shape index: {}]   ;;  %s1276_s1 = inlined_call_operand.vmem [shape: f32[50,150], index: 1, kind: input, shape index: {}]   ;;  %s1277_s2 = inlined_call_operand.vmem [shape: f32[50,150], index: 2, kind: input, shape index: {}]   ;;  %s1278_s3 = inlined_call_operand.vmem [shape: f32[50,150], index: 3, kind: input, shape index: {}]   ;;  %s1279_s5 = inlined_call_operand.vmem [shape: f32[1,16], index: 5, kind: input, shape index: {}]   ;;  %s1280_s6 = inlined_call_operand.vmem [shape: f32[50,16], index: 6, kind: output, shape index: {}]  }
   0x1   :  { %689 = vmatprep.subr.bf16.mxu0 %v799_v0  ;;  %716 = vmatprep.subr.bf16.mxu1 %v799_v0  ;;  %v23_v1 = vld [vmem:[%s1274_s4] sm:$0xff]  ;;  %v24_v2 = vld [vmem:[%s1274_s4 + $0x8] sm:$0xff]  ;;  %v25_v3 = vld [vmem:[%s1274_s4 + $0x10] sm:$0xff]  ;;  %vm643_vm2 = vcmask 130048   ;;  %vm650_vm3 = vcmask 123904  }
   0x2   :  { %v847_v4 = vpack.c.bf16 %v24_v2, %v23_v1  ;;  %v26_v5 = vld [vmem:[%s1274_s4 + $0x18] sm:$0xff]  ;;  %v27_v7 = vld [vmem:[%s1274_s4 + $0x20] sm:$0xff]  ;;  %v28_v8 = vld [vmem:[%s1274_s4 + $0x28] sm:$0xff] }
   0x3   :  { %v854_v6 = vpack.c.bf16 %v26_v5, %v25_v3  ;;  %v44_v9 = vld [vmem:[%s1275_s0 + $0x8] sm:$0xff]  ;;  %v872_v11 = vpack.c.bf16 %v28_v8, %v27_v7  ;;  %v29_v12 = vld [vmem:[%s1274_s4 + $0x30] sm:$0xff]  ;;  %v30_v13 = vld [vmem:[%s1274_s4 + $0x38] sm:$0xff] }
   0x4   :  { %691 = vmatpush1.bf16.msra.mxu0 %v847_v4  ;;  %718 = vmatpush1.bf16.msra.mxu1 %v847_v4  ;;  %v197_v10 = vld [vmem:[%s1276_s1 + $0x8] sm:$0xff]  ;;  %v886_v14 = vpack.c.bf16 %v30_v13, %v29_v12  ;;  %v31_v15 = vld [vmem:[%s1274_s4 + $0x40] sm:$0xff]  ;;  %v33_v18 = vld [vmem:[%s1274_s4 + $0x50] sm:$0xff] }
   0x5   :  { %692 = vmatprep.subr.bf16.mxu0 %v799_v0  ;;  %719 = vmatprep.subr.bf16.mxu1 %v799_v0  ;;  %v32_v16 = vld [vmem:[%s1274_s4 + $0x48] sm:$0xff]  ;;  %v34_v19 = vld [vmem:[%s1274_s4 + $0x58] sm:$0xff]  ;;  %v35_v21 = vld [vmem:[%s1274_s4 + $0x60] sm:$0xff] }
   0x6   :  { %658 = vmatprep.mubr.msk.f32.mxu0 %vm63_vm0, %v44_v9  ;;  %666 = vmatprep.mubr.msk.f32.mxu1 %vm63_vm0, %v197_v10  ;;  %v898_v17 = vpack.c.bf16 %v32_v16, %v31_v15  ;;  %v910_v20 = vpack.c.bf16 %v34_v19, %v33_v18  ;;  %v36_v22 = vld [vmem:[%s1274_s4 + $0x68] sm:$0xff]  ;;  %v37_v24 = vld [vmem:[%s1274_s4 + $0x70] sm:$0xff]  ;;  %v38_v25 = vld [vmem:[%s1274_s4 + $0x78] sm:$0xff] }
   0x7   :  { %v922_v23 = vpack.c.bf16 %v36_v22, %v35_v21  ;;  %v934_v26 = vpack.c.bf16 %v38_v25, %v37_v24  ;;  %v39_v27 = vld [vmem:[%s1274_s4 + $0x80] sm:$0xff]  ;;  %v40_v28 = vld [vmem:[%s1274_s4 + $0x88] sm:$0xff]  ;;  %v957_v31 = vld [vmem:[%s1274_s4 + $0x90] sm:$0x3f] }
   0x8   :  { %694 = vmatpush1.bf16.msra.mxu0 %v854_v6  ;;  %721 = vmatpush1.bf16.msra.mxu1 %v854_v6  ;;  %v946_v29 = vpack.c.bf16 %v40_v28, %v39_v27  ;;  %v43_v32 = vld [vmem:[%s1275_s0] sm:$0xff]  ;;  %v46_v34 = vld [vmem:[%s1275_s0 + $0x18] sm:$0xff]  ;;  %v45_v36 = vld [vmem:[%s1275_s0 + $0x10] sm:$0xff] }
   0x9   :  { %695 = vmatprep.subr.bf16.mxu0 %v799_v0  ;;  %722 = vmatprep.subr.bf16.mxu1 %v799_v0  ;;  %v196_v33 = vld [vmem:[%s1276_s1] sm:$0xff]  ;;  %v199_v35 = vld [vmem:[%s1276_s1 + $0x18] sm:$0xff]  ;;  %v198_v37 = vld [vmem:[%s1276_s1 + $0x10] sm:$0xff] }
   0xa   :  { %v48_v38 = vld [vmem:[%s1275_s0 + $0x28] sm:$0xff]  ;;  %v47_v40 = vld [vmem:[%s1275_s0 + $0x20] sm:$0xff]  ;;  %v50_v42 = vld [vmem:[%s1275_s0 + $0x38] sm:$0xff] }
   0xb   :  { %v201_v39 = vld [vmem:[%s1276_s1 + $0x28] sm:$0xff]  ;;  %v200_v41 = vld [vmem:[%s1276_s1 + $0x20] sm:$0xff]  ;;  %v203_v43 = vld [vmem:[%s1276_s1 + $0x38] sm:$0xff] }
   0xc   :  { %697 = vmatpush1.bf16.msra.mxu0 %v872_v11  ;;  %724 = vmatpush1.bf16.msra.mxu1 %v872_v11  ;;  %v49_v44 = vld [vmem:[%s1275_s0 + $0x30] sm:$0xff]  ;;  %v52_v46 = vld [vmem:[%s1275_s0 + $0x48] sm:$0xff]  ;;  %v51_v48 = vld [vmem:[%s1275_s0 + $0x40] sm:$0xff] }
   0xd   :  { %698 = vmatprep.subr.bf16.mxu0 %v799_v0  ;;  %725 = vmatprep.subr.bf16.mxu1 %v799_v0  ;;  %v202_v45 = vld [vmem:[%s1276_s1 + $0x30] sm:$0xff]  ;;  %v205_v47 = vld [vmem:[%s1276_s1 + $0x48] sm:$0xff]  ;;  %v204_v49 = vld [vmem:[%s1276_s1 + $0x40] sm:$0xff] }
   0xe   :  { %v54_v50 = vld [vmem:[%s1275_s0 + $0x58] sm:$0xff]  ;;  %v53_v52 = vld [vmem:[%s1275_s0 + $0x50] sm:$0xff]  ;;  %v56_v54 = vld [vmem:[%s1275_s0 + $0x68] sm:$0x3] }
   0xf   :  { %v207_v51 = vld [vmem:[%s1276_s1 + $0x58] sm:$0xff]  ;;  %v206_v53 = vld [vmem:[%s1276_s1 + $0x50] sm:$0xff]  ;;  %v209_v55 = vld [vmem:[%s1276_s1 + $0x68] sm:$0x3] }
  0x10   :  { %700 = vmatpush1.bf16.msra.mxu0 %v886_v14  ;;  %727 = vmatpush1.bf16.msra.mxu1 %v886_v14  ;;  %v55_v56 = vld [vmem:[%s1275_s0 + $0x60] sm:$0x3]  ;;  %v346_v58 = vld [vmem:[%s1277_s2 + $0x8] sm:$0xff]  ;;  %v348_v62 = vld [vmem:[%s1277_s2 + $0x18] sm:$0xff] }
  0x11   :  { %701 = vmatprep.subr.bf16.mxu0 %v799_v0  ;;  %728 = vmatprep.subr.bf16.mxu1 %v799_v0  ;;  %v208_v57 = vld [vmem:[%s1276_s1 + $0x60] sm:$0x3]  ;;  %v488_v59 = vld [vmem:[%s1278_s3 + $0x8] sm:$0xff]  ;;  %v490_v63 = vld [vmem:[%s1278_s3 + $0x18] sm:$0xff] }
  0x12   :  { %v345_v60 = vld [vmem:[%s1277_s2] sm:$0xff]  ;;  %v489_v1 = vld [vmem:[%s1278_s3 + $0x10] sm:$0xff]  ;;  %v350_v2 = vld [vmem:[%s1277_s2 + $0x28] sm:$0xff] }
  0x13   :  { %v487_v61 = vld [vmem:[%s1278_s3] sm:$0xff]  ;;  %v492_v3 = vld [vmem:[%s1278_s3 + $0x28] sm:$0xff]  ;;  %v494_v7 = vld [vmem:[%s1278_s3 + $0x38] sm:$0xff] }
  0x14   :  { %703 = vmatpush1.bf16.msra.mxu0 %v898_v17  ;;  %730 = vmatpush1.bf16.msra.mxu1 %v898_v17  ;;  %v491_v5 = vld [vmem:[%s1278_s3 + $0x20] sm:$0xff]  ;;  %v351_v8 = vld [vmem:[%s1277_s2 + $0x30] sm:$0xff]  ;;  %v354_v10 = vld [vmem:[%s1277_s2 + $0x48] sm:$0xff] }
  0x15   :  { %704 = vmatprep.subr.bf16.mxu0 %v799_v0  ;;  %731 = vmatprep.subr.bf16.mxu1 %v799_v0  ;;  %v493_v9 = vld [vmem:[%s1278_s3 + $0x30] sm:$0xff]  ;;  %v353_v12 = vld [vmem:[%s1277_s2 + $0x40] sm:$0xff]  ;;  %v498_v15 = vld [vmem:[%s1278_s3 + $0x58] sm:$0xff] }
  0x16   :  { %v495_v13 = vld [vmem:[%s1278_s3 + $0x40] sm:$0xff]  ;;  %v355_v16 = vld [vmem:[%s1277_s2 + $0x50] sm:$0xff]  ;;  %v358_v18 = vld [vmem:[%s1277_s2 + $0x68] sm:$0x3] }
  0x17   :  { %v500_v19 = vld [vmem:[%s1278_s3 + $0x68] sm:$0x3]  ;;  %v499_v21 = vld [vmem:[%s1278_s3 + $0x60] sm:$0x3] }
  0x18   :  { %706 = vmatpush1.bf16.msra.mxu0 %v910_v20  ;;  %733 = vmatpush1.bf16.msra.mxu1 %v910_v20  ;;  %v1196_v22 = vld [vmem:[%s1279_s5] ss:$0 sm:$0xff] }
  0x19   :  { %707 = vmatprep.subr.bf16.mxu0 %v799_v0  ;;  %734 = vmatprep.subr.bf16.mxu1 %v799_v0 }
  0x1c   :  { %709 = vmatpush1.bf16.msra.mxu0 %v922_v23  ;;  %736 = vmatpush1.bf16.msra.mxu1 %v922_v23 }
  0x1d   :  { %710 = vmatprep.subr.bf16.mxu0 %v799_v0  ;;  %737 = vmatprep.subr.bf16.mxu1 %v799_v0 }
  0x20   :  { %712 = vmatpush1.bf16.msra.mxu0 %v934_v26  ;;  %739 = vmatpush1.bf16.msra.mxu1 %v934_v26 }
  0x21   :  { %713 = vmatprep.subr.bf16.mxu0 %v799_v0  ;;  %740 = vmatprep.subr.bf16.mxu1 %v799_v0 }
  0x24   :  { %715 = vmatpush1.bf16.msra.mxu0 %v946_v29  ;;  %742 = vmatpush1.bf16.msra.mxu1 %v946_v29 }
  0x25   :  { %125 = vmatprep.subr.mxu0 %v800_v30  ;;  %267 = vmatprep.subr.mxu1 %v800_v30 }
  0x28   :  { %657 = vmatpush1.msk.msra.mxu0 %vm85_vm1, %v957_v31  ;;  %665 = vmatpush1.msk.msra.mxu1 %vm85_vm1, %v957_v31 }
  0x29   :  { %154 = vmatmul.mubr.f32.vlgmr.msra.gmra.mrb[0].mxu0 %v43_v32  ;;  %296 = vmatmul.mubr.f32.vlgmr.msra.gmra.mrb[0].mxu1 %v196_v33 }
  0x2a   :  { %743 = vmatprep.subr.bf16.mxu0 %v799_v0  ;;  %770 = vmatprep.subr.bf16.mxu1 %v799_v0 }
  0x2b   :  { %745 = vmatpush1.bf16.msra.mxu0 %v847_v4  ;;  %772 = vmatpush1.bf16.msra.mxu1 %v847_v4  ;;  %v349_v4 = vld [vmem:[%s1277_s2 + $0x20] sm:$0xff] }
  0x2c   :  { %746 = vmatprep.subr.bf16.mxu0 %v799_v0  ;;  %773 = vmatprep.subr.bf16.mxu1 %v799_v0 }
  0x2d   :  { %659 = vmatprep.mubr.msk.f32.mxu0 %vm63_vm0, %v46_v34  ;;  %667 = vmatprep.mubr.msk.f32.mxu1 %vm63_vm0, %v199_v35 }
  0x2e   :  { %159 = vmatmul.mubr.f32.gmra.mrb[2].mxu0 %v45_v36  ;;  %301 = vmatmul.mubr.f32.gmra.mrb[2].mxu1 %v198_v37 }
  0x2f   :  { %748 = vmatpush1.bf16.msra.mxu0 %v854_v6  ;;  %775 = vmatpush1.bf16.msra.mxu1 %v854_v6  ;;  %v352_v6 = vld [vmem:[%s1277_s2 + $0x38] sm:$0xff] }
  0x30   :  { %749 = vmatprep.subr.bf16.mxu0 %v799_v0  ;;  %776 = vmatprep.subr.bf16.mxu1 %v799_v0 }
  0x31   :  { %660 = vmatprep.mubr.msk.f32.mxu0 %vm63_vm0, %v48_v38  ;;  %668 = vmatprep.mubr.msk.f32.mxu1 %vm63_vm0, %v201_v39 }
  0x32   :  { %164 = vmatmul.mubr.f32.gmra.mrb[4].mxu0 %v47_v40  ;;  %306 = vmatmul.mubr.f32.gmra.mrb[4].mxu1 %v200_v41 }
  0x33   :  { %751 = vmatpush1.bf16.msra.mxu0 %v872_v11  ;;  %778 = vmatpush1.bf16.msra.mxu1 %v872_v11  ;;  %v496_v11 = vld [vmem:[%s1278_s3 + $0x48] sm:$0xff] }
  0x34   :  { %752 = vmatprep.subr.bf16.mxu0 %v799_v0  ;;  %779 = vmatprep.subr.bf16.mxu1 %v799_v0 }
  0x35   :  { %661 = vmatprep.mubr.msk.f32.mxu0 %vm63_vm0, %v50_v42  ;;  %669 = vmatprep.mubr.msk.f32.mxu1 %vm63_vm0, %v203_v43 }
  0x36   :  { %169 = vmatmul.mubr.f32.gmra.mrb[6].mxu0 %v49_v44  ;;  %311 = vmatmul.mubr.f32.gmra.mrb[6].mxu1 %v202_v45 }
  0x37   :  { %754 = vmatpush1.bf16.msra.mxu0 %v886_v14  ;;  %781 = vmatpush1.bf16.msra.mxu1 %v886_v14  ;;  %v356_v14 = vld [vmem:[%s1277_s2 + $0x58] sm:$0xff] }
  0x38   :  { %755 = vmatprep.subr.bf16.mxu0 %v799_v0  ;;  %782 = vmatprep.subr.bf16.mxu1 %v799_v0 }
  0x39   :  { %662 = vmatprep.mubr.msk.f32.mxu0 %vm63_vm0, %v52_v46  ;;  %670 = vmatprep.mubr.msk.f32.mxu1 %vm63_vm0, %v205_v47 }
  0x3a   :  { %174 = vmatmul.mubr.f32.gmra.mrb[8].mxu0 %v51_v48  ;;  %316 = vmatmul.mubr.f32.gmra.mrb[8].mxu1 %v204_v49 }
  0x3b   :  { %757 = vmatpush1.bf16.msra.mxu0 %v898_v17  ;;  %784 = vmatpush1.bf16.msra.mxu1 %v898_v17  ;;  %v497_v17 = vld [vmem:[%s1278_s3 + $0x50] sm:$0xff] }
  0x3c   :  { %758 = vmatprep.subr.bf16.mxu0 %v799_v0  ;;  %785 = vmatprep.subr.bf16.mxu1 %v799_v0 }
  0x3d   :  { %663 = vmatprep.mubr.msk.f32.mxu0 %vm63_vm0, %v54_v50  ;;  %671 = vmatprep.mubr.msk.f32.mxu1 %vm63_vm0, %v207_v51 }
  0x3e   :  { %179 = vmatmul.mubr.f32.gmra.mrb[10].mxu0 %v53_v52  ;;  %321 = vmatmul.mubr.f32.gmra.mrb[10].mxu1 %v206_v53 }
  0x3f   :  { %760 = vmatpush1.bf16.msra.mxu0 %v910_v20  ;;  %787 = vmatpush1.bf16.msra.mxu1 %v910_v20  ;;  %v357_v20 = vld [vmem:[%s1277_s2 + $0x60] sm:$0x3] }
  0x40   :  { %761 = vmatprep.subr.bf16.mxu0 %v799_v0  ;;  %788 = vmatprep.subr.bf16.mxu1 %v799_v0 }
  0x41   :  { %664 = vmatprep.mubr.msk.f32.mxu0 %vm63_vm0, %v56_v54  ;;  %672 = vmatprep.mubr.msk.f32.mxu1 %vm63_vm0, %v209_v55 }
  0x42   :  { %184 = vmatmul.mubr.f32.gmra.mrb[12].mxu0 %v55_v56  ;;  %326 = vmatmul.mubr.f32.gmra.mrb[12].mxu1 %v208_v57 }
  0x43   :  { %763 = vmatpush1.bf16.msra.mxu0 %v922_v23  ;;  %790 = vmatpush1.bf16.msra.mxu1 %v922_v23 }
  0x44   :  { %764 = vmatprep.subr.bf16.mxu0 %v799_v0  ;;  %791 = vmatprep.subr.bf16.mxu1 %v799_v0 }
  0x45   :  { %674 = vmatprep.mubr.msk.f32.mxu0 %vm63_vm0, %v346_v58  ;;  %682 = vmatprep.mubr.msk.f32.mxu1 %vm63_vm0, %v488_v59 }
  0x47   :  { %766 = vmatpush1.bf16.msra.mxu0 %v934_v26  ;;  %793 = vmatpush1.bf16.msra.mxu1 %v934_v26 }
  0x48   :  { %767 = vmatprep.subr.bf16.mxu0 %v799_v0  ;;  %794 = vmatprep.subr.bf16.mxu1 %v799_v0  ;;  %v347_v0 = vld [vmem:[%s1277_s2 + $0x10] sm:$0xff] }
  0x4b   :  { %769 = vmatpush1.bf16.msra.mxu0 %v946_v29  ;;  %796 = vmatpush1.bf16.msra.mxu1 %v946_v29 }
  0x4c   :  { %416 = vmatprep.subr.mxu0 %v800_v30  ;;  %558 = vmatprep.subr.mxu1 %v800_v30 }
  0x4f   :  { %673 = vmatpush1.msk.msra.mxu0 %vm85_vm1, %v957_v31  ;;  %681 = vmatpush1.msk.msra.mxu1 %vm85_vm1, %v957_v31 }
  0x50   :  { %445 = vmatmul.mubr.f32.vlgmr.msra.gmra.mrb[14].mxu0 %v345_v60  ;;  %587 = vmatmul.mubr.f32.vlgmr.msra.gmra.mrb[14].mxu1 %v487_v61 }
  0x51   :  { %675 = vmatprep.mubr.msk.f32.mxu0 %vm63_vm0, %v348_v62  ;;  %683 = vmatprep.mubr.msk.f32.mxu1 %vm63_vm0, %v490_v63 }
  0x54   :  { %450 = vmatmul.mubr.f32.gmra.mrb[16].mxu0 %v347_v0  ;;  %592 = vmatmul.mubr.f32.gmra.mrb[16].mxu1 %v489_v1 }
  0x55   :  { %676 = vmatprep.mubr.msk.f32.mxu0 %vm63_vm0, %v350_v2  ;;  %684 = vmatprep.mubr.msk.f32.mxu1 %vm63_vm0, %v492_v3 }
  0x58   :  { %455 = vmatmul.mubr.f32.gmra.mrb[18].mxu0 %v349_v4  ;;  %597 = vmatmul.mubr.f32.gmra.mrb[18].mxu1 %v491_v5 }
  0x59   :  { %677 = vmatprep.mubr.msk.f32.mxu0 %vm63_vm0, %v352_v6  ;;  %685 = vmatprep.mubr.msk.f32.mxu1 %vm63_vm0, %v494_v7 }
  0x5c   :  { %460 = vmatmul.mubr.f32.gmra.mrb[20].mxu0 %v351_v8  ;;  %602 = vmatmul.mubr.f32.gmra.mrb[20].mxu1 %v493_v9 }
  0x5d   :  { %678 = vmatprep.mubr.msk.f32.mxu0 %vm63_vm0, %v354_v10  ;;  %686 = vmatprep.mubr.msk.f32.mxu1 %vm63_vm0, %v496_v11 }
  0x60   :  { %465 = vmatmul.mubr.f32.gmra.mrb[22].mxu0 %v353_v12  ;;  %607 = vmatmul.mubr.f32.gmra.mrb[22].mxu1 %v495_v13 }
  0x61   :  { %679 = vmatprep.mubr.msk.f32.mxu0 %vm63_vm0, %v356_v14  ;;  %687 = vmatprep.mubr.msk.f32.mxu1 %vm63_vm0, %v498_v15 }
  0x64   :  { %470 = vmatmul.mubr.f32.gmra.mrb[24].mxu0 %v355_v16  ;;  %612 = vmatmul.mubr.f32.gmra.mrb[24].mxu1 %v497_v17 }
  0x65   :  { %680 = vmatprep.mubr.msk.f32.mxu0 %vm63_vm0, %v358_v18  ;;  %688 = vmatprep.mubr.msk.f32.mxu1 %vm63_vm0, %v500_v19 }
  0x68   :  { %475 = vmatmul.mubr.f32.gmra.mrb[26].mxu0 %v357_v20  ;;  %617 = vmatmul.mubr.f32.gmra.mrb[26].mxu1 %v499_v21 }
  0xfc   :  { %v155_v23 = vpop.f32.mrb[0].mxu0  ;;  %v297_v24 = vpop.f32.mrb[0].mxu1 }
  0xfd   :  { %v156_v25 = vadd.f32 %v1196_v22, %v155_v23  ;;  %v298_v26 = vadd.f32 %v1196_v22, %v297_v24  ;;  %v157_v27 = vpop.f32.mrb[1].mxu0  ;;  %v299_v28 = vpop.f32.mrb[1].mxu1 }
  0xff   :  { %v189_v29 = vmax.f32 %v156_v25, 0.0  ;;  %v331_v30 = vmax.f32 %v298_v26, 0.0 }
 0x101   :  { %v1200_v31 = vmax.f32 %v189_v29, %v331_v30  ;;  %v160_v32 = vpop.f32.mrb[2].mxu0  ;;  %v302_v33 = vpop.f32.mrb[2].mxu1 }
 0x102   :  { %v161_v34 = vadd.f32 %v1196_v22, %v160_v32  ;;  %v303_v35 = vadd.f32 %v1196_v22, %v302_v33  ;;  %v162_v36 = vpop.f32.mrb[3].mxu0  ;;  %v304_v37 = vpop.f32.mrb[3].mxu1 }
 0x104   :  { %v190_v38 = vmax.f32 %v161_v34, 0.0  ;;  %v332_v39 = vmax.f32 %v303_v35, 0.0 }
 0x105   :  { %v165_v40 = vpop.f32.mrb[4].mxu0  ;;  %v307_v41 = vpop.f32.mrb[4].mxu1 }
 0x106   :  { %v1204_v42 = vmax.f32 %v190_v38, %v332_v39  ;;  %v166_v43 = vadd.f32 %v1196_v22, %v165_v40  ;;  %v308_v44 = vadd.f32 %v1196_v22, %v307_v41  ;;  %v167_v45 = vpop.f32.mrb[5].mxu0  ;;  %v309_v46 = vpop.f32.mrb[5].mxu1 }
 0x108   :  { %v191_v47 = vmax.f32 %v166_v43, 0.0  ;;  %v333_v48 = vmax.f32 %v308_v44, 0.0 }
 0x109   :  { %v170_v49 = vpop.f32.mrb[6].mxu0  ;;  %v312_v50 = vpop.f32.mrb[6].mxu1 }
 0x10a   :  { %v1208_v51 = vmax.f32 %v191_v47, %v333_v48  ;;  %v171_v52 = vadd.f32 %v1196_v22, %v170_v49  ;;  %v313_v53 = vadd.f32 %v1196_v22, %v312_v50  ;;  %v172_v54 = vpop.f32.mrb[7].mxu0  ;;  %v314_v55 = vpop.f32.mrb[7].mxu1 }
 0x10c   :  { %v192_v56 = vmax.f32 %v171_v52, 0.0  ;;  %v334_v57 = vmax.f32 %v313_v53, 0.0 }
 0x10d   :  { %v175_v58 = vpop.f32.mrb[8].mxu0  ;;  %v317_v59 = vpop.f32.mrb[8].mxu1 }
 0x10e   :  { %v1212_v60 = vmax.f32 %v192_v56, %v334_v57  ;;  %v176_v61 = vadd.f32 %v1196_v22, %v175_v58  ;;  %v318_v62 = vadd.f32 %v1196_v22, %v317_v59  ;;  %v177_v63 = vpop.f32.mrb[9].mxu0  ;;  %v319_v0 = vpop.f32.mrb[9].mxu1 }
 0x110   :  { %v193_v1 = vmax.f32 %v176_v61, 0.0  ;;  %v335_v2 = vmax.f32 %v318_v62, 0.0 }
 0x111   :  { %v180_v3 = vpop.f32.mrb[10].mxu0  ;;  %v322_v4 = vpop.f32.mrb[10].mxu1 }
 0x112   :  { %v1216_v5 = vmax.f32 %v193_v1, %v335_v2  ;;  %v181_v6 = vadd.f32 %v1196_v22, %v180_v3  ;;  %v323_v7 = vadd.f32 %v1196_v22, %v322_v4  ;;  %v182_v8 = vpop.f32.mrb[11].mxu0  ;;  %v324_v9 = vpop.f32.mrb[11].mxu1 }
 0x114   :  { %v194_v10 = vmax.f32 %v181_v6, 0.0  ;;  %v336_v11 = vmax.f32 %v323_v7, 0.0 }
 0x115   :  { %v185_v12 = vpop.f32.mrb[12].mxu0  ;;  %v327_v13 = vpop.f32.mrb[12].mxu1 }
 0x116   :  { %v1220_v14 = vmax.f32 %v194_v10, %v336_v11  ;;  %v186_v15 = vadd.f32 %v1196_v22, %v185_v12  ;;  %v328_v16 = vadd.f32 %v1196_v22, %v327_v13  ;;  %v187_v17 = vpop.f32.mrb[13].mxu0  ;;  %v329_v18 = vpop.f32.mrb[13].mxu1 }
 0x118   :  { %v195_v19 = vmax.f32 %v186_v15, 0.0  ;;  %v337_v20 = vmax.f32 %v328_v16, 0.0 }
 0x11a   :  { %v1224_v21 = vmax.f32 %v195_v19, %v337_v20 }
 0x123   :  { %v446_v23 = vpop.f32.mrb[14].mxu0  ;;  %v588_v24 = vpop.f32.mrb[14].mxu1 }
 0x124   :  { %v447_v25 = vadd.f32 %v1196_v22, %v446_v23  ;;  %v589_v26 = vadd.f32 %v1196_v22, %v588_v24  ;;  %v448_v27 = vpop.f32.mrb[15].mxu0  ;;  %v590_v28 = vpop.f32.mrb[15].mxu1 }
 0x126   :  { %v480_v29 = vmax.f32 %v447_v25, 0.0  ;;  %v622_v30 = vmax.f32 %v589_v26, 0.0 }
 0x127   :  { %v451_v32 = vpop.f32.mrb[16].mxu0  ;;  %v593_v33 = vpop.f32.mrb[16].mxu1 }
 0x128   :  { %v629_v34 = vmax.f32 %v480_v29, %v622_v30  ;;  %v452_v35 = vadd.f32 %v1196_v22, %v451_v32  ;;  %v594_v36 = vadd.f32 %v1196_v22, %v593_v33  ;;  %v453_v37 = vpop.f32.mrb[17].mxu0  ;;  %v595_v38 = vpop.f32.mrb[17].mxu1 }
 0x12a   :  { %v636_v39 = vmax.f32 %v1200_v31, %v629_v34  ;;  %v481_v40 = vmax.f32 %v452_v35, 0.0  ;;  %v623_v41 = vmax.f32 %v594_v36, 0.0 }
 0x12b   :  { %v456_v43 = vpop.f32.mrb[18].mxu0  ;;  %v598_v44 = vpop.f32.mrb[18].mxu1 }
 0x12c   :  { %644 = vst.msk [vmem:[%s1280_s6] sm:$0xff] %vm643_vm2, %v636_v39  ;;  %v630_v45 = vmax.f32 %v481_v40, %v623_v41  ;;  %v457_v46 = vadd.f32 %v1196_v22, %v456_v43  ;;  %v599_v47 = vadd.f32 %v1196_v22, %v598_v44  ;;  %v458_v48 = vpop.f32.mrb[19].mxu0  ;;  %v600_v49 = vpop.f32.mrb[19].mxu1 }
 0x12e   :  { %v637_v50 = vmax.f32 %v1204_v42, %v630_v45  ;;  %v482_v52 = vmax.f32 %v457_v46, 0.0  ;;  %v624_v31 = vmax.f32 %v599_v47, 0.0 }
 0x12f   :  { %v461_v53 = vpop.f32.mrb[20].mxu0  ;;  %v603_v54 = vpop.f32.mrb[20].mxu1 }
 0x130   :  { %645 = vst.msk [vmem:[%s1280_s6 + $0x8] sm:$0xff] %vm643_vm2, %v637_v50  ;;  %v631_v55 = vmax.f32 %v482_v52, %v624_v31  ;;  %v462_v56 = vadd.f32 %v1196_v22, %v461_v53  ;;  %v604_v57 = vadd.f32 %v1196_v22, %v603_v54  ;;  %v463_v58 = vpop.f32.mrb[21].mxu0  ;;  %v605_v59 = vpop.f32.mrb[21].mxu1 }
 0x132   :  { %v638_v61 = vmax.f32 %v1208_v51, %v631_v55  ;;  %v483_v62 = vmax.f32 %v462_v56, 0.0  ;;  %v625_v42 = vmax.f32 %v604_v57, 0.0 }
 0x133   :  { %v466_v63 = vpop.f32.mrb[22].mxu0  ;;  %v608_v0 = vpop.f32.mrb[22].mxu1 }
 0x134   :  { %646 = vst.msk [vmem:[%s1280_s6 + $0x10] sm:$0xff] %vm643_vm2, %v638_v61  ;;  %v632_v1 = vmax.f32 %v483_v62, %v625_v42  ;;  %v467_v2 = vadd.f32 %v1196_v22, %v466_v63  ;;  %v609_v3 = vadd.f32 %v1196_v22, %v608_v0  ;;  %v468_v4 = vpop.f32.mrb[23].mxu0  ;;  %v610_v6 = vpop.f32.mrb[23].mxu1 }
 0x136   :  { %v639_v7 = vmax.f32 %v1212_v60, %v632_v1  ;;  %v484_v8 = vmax.f32 %v467_v2, 0.0  ;;  %v626_v51 = vmax.f32 %v609_v3, 0.0 }
 0x137   :  { %v471_v9 = vpop.f32.mrb[24].mxu0  ;;  %v613_v10 = vpop.f32.mrb[24].mxu1 }
 0x138   :  { %647 = vst.msk [vmem:[%s1280_s6 + $0x18] sm:$0xff] %vm643_vm2, %v639_v7  ;;  %v633_v11 = vmax.f32 %v484_v8, %v626_v51  ;;  %v472_v12 = vadd.f32 %v1196_v22, %v471_v9  ;;  %v614_v13 = vadd.f32 %v1196_v22, %v613_v10  ;;  %v473_v15 = vpop.f32.mrb[25].mxu0  ;;  %v615_v16 = vpop.f32.mrb[25].mxu1 }
 0x13a   :  { %v640_v17 = vmax.f32 %v1216_v5, %v633_v11  ;;  %v485_v18 = vmax.f32 %v472_v12, 0.0  ;;  %v627_v60 = vmax.f32 %v614_v13, 0.0 }
 0x13b   :  { %v476_v19 = vpop.f32.mrb[26].mxu0  ;;  %v618_v20 = vpop.f32.mrb[26].mxu1 }
 0x13c   :  { %648 = vst.msk [vmem:[%s1280_s6 + $0x20] sm:$0xff] %vm643_vm2, %v640_v17  ;;  %v634_v23 = vmax.f32 %v485_v18, %v627_v60  ;;  %v477_v24 = vadd.f32 %v1196_v22, %v476_v19  ;;  %v619_v25 = vadd.f32 %v1196_v22, %v618_v20  ;;  %v478_v26 = vpop.f32.mrb[27].mxu0  ;;  %v620_v27 = vpop.f32.mrb[27].mxu1 }
 0x13e   :  { %v641_v28 = vmax.f32 %v1220_v14, %v634_v23  ;;  %v486_v29 = vmax.f32 %v477_v24, 0.0  ;;  %v628_v5 = vmax.f32 %v619_v25, 0.0 }
 0x140   :  { %649 = vst.msk [vmem:[%s1280_s6 + $0x28] sm:$0xff] %vm643_vm2, %v641_v28  ;;  %v635_v30 = vmax.f32 %v486_v29, %v628_v5 }
 0x142   :  { %v642_v32 = vmax.f32 %v1224_v21, %v635_v30 }
 0x144   :  { %651 = vst.msk [vmem:[%s1280_s6 + $0x30] sm:$0x3] %vm650_vm3, %v642_v32 }

// kernel: net_forward.5
= control target key start
LH: loop header
LB: loop body
LE: loop exit
PB: predicated region body
PF: predicated region fallthrough
CT: control target
= control target key end

     0   :  { %v712_v4 = vmov 0.0|0.0   ;;  %v713_v26 = vmov 1983009808   ;;  %v90_v28 = vlaneseq  ;;  %vm106_vm0 = vcmask 130048   ;;  %s1030_s0 = inlined_call_operand.vmem [shape: f32[2,400], index: 0, kind: input, shape index: {}]   ;;  %s1031_s1 = inlined_call_operand.vmem [shape: f32[400,120], index: 1, kind: input, shape index: {}]   ;;  %s1032_s2 = inlined_call_operand.vmem [shape: f32[1,120], index: 2, kind: input, shape index: {}]   ;;  %s1033_s3 = inlined_call_operand.vmem [shape: f32[120,84], index: 3, kind: input, shape index: {}]   ;;  %s1034_s4 = inlined_call_operand.vmem [shape: f32[1,84], index: 4, kind: input, shape index: {}]   ;;  %s1035_s5 = inlined_call_operand.vmem [shape: f32[84,10], index: 5, kind: input, shape index: {}]   ;;  %s1036_s6 = inlined_call_operand.vmem [shape: f32[1,10], index: 6, kind: input, shape index: {}]   ;;  %s1037_s7 = inlined_call_operand.hbm [shape: f32[2,10], index: 7, kind: output, shape index: {}]  }
   0x1   :  { %v44_v0 = vld [vmem:[%s1031_s1 + $0x80] sm:$0xff]  ;;  %v45_v1 = vld [vmem:[%s1031_s1 + $0x88] sm:$0xff]  ;;  %619 = vmatprep.subr.bf16.mxu1 %v712_v4  ;;  %v46_v10 = vld [vmem:[%s1031_s1 + $0x90] sm:$0xff]  ;;  %v88_v27 = vunpack.c.l.s4 %v713_v26 }
   0x2   :  { %v28_v2 = vld [vmem:[%s1031_s1] sm:$0xff]  ;;  %v587_v3 = vpack.c.bf16 %v45_v1, %v44_v0  ;;  %v29_v5 = vld [vmem:[%s1031_s1 + $0x8] sm:$0xff]  ;;  %v47_v11 = vld [vmem:[%s1031_s1 + $0x98] sm:$0xff]  ;;  %v91_v39 = vshrl.u32 %v90_v28, 7 }
   0x3   :  { %v60_v6 = vld [vmem:[%s1031_s1 + $0x100] sm:$0xff]  ;;  %v61_v7 = vld [vmem:[%s1031_s1 + $0x108] sm:$0xff]  ;;  %v589_v8 = vpack.c.bf16 %v29_v5, %v28_v2  ;;  %v30_v12 = vld [vmem:[%s1031_s1 + $0x10] sm:$0xff]  ;;  %v591_v13 = vpack.c.bf16 %v47_v11, %v46_v10  ;;  %v89_v38 = vunpack.c.0.s8 %v88_v27 }
   0x4   :  { %v620_v9 = vpack.c.bf16 %v61_v7, %v60_v6  ;;  %588 = vmatprep.subr.bf16.mxu0 %v587_v3  ;;  %v31_v14 = vld [vmem:[%s1031_s1 + $0x18] sm:$0xff]  ;;  %v62_v15 = vld [vmem:[%s1031_s1 + $0x110] sm:$0xff]  ;;  %v48_v19 = vld [vmem:[%s1031_s1 + $0xa0] sm:$0xff] }
   0x5   :  { %v63_v16 = vld [vmem:[%s1031_s1 + $0x118] sm:$0xff]  ;;  %590 = vmatpush3.bf16.msra.mxu0 %v589_v8  ;;  %v593_v17 = vpack.c.bf16 %v31_v14, %v30_v12  ;;  %v49_v20 = vld [vmem:[%s1031_s1 + $0xa8] sm:$0xff]  ;;  %v32_v21 = vld [vmem:[%s1031_s1 + $0x20] sm:$0xff]  ;;  %v92_v49 = vsub.s32 %v89_v38, %v91_v39 }
   0x6   :  { %621 = vmatpush1.bf16.msra.mxu1 %v620_v9  ;;  %v623_v18 = vpack.c.bf16 %v63_v16, %v62_v15  ;;  %592 = vmatprep.subr.bf16.mxu0 %v591_v13  ;;  %v595_v22 = vpack.c.bf16 %v49_v20, %v48_v19  ;;  %v33_v23 = vld [vmem:[%s1031_s1 + $0x28] sm:$0xff]  ;;  %v64_v24 = vld [vmem:[%s1031_s1 + $0x120] sm:$0xff]  ;;  %v50_v29 = vld [vmem:[%s1031_s1 + $0xb0] sm:$0xff] }
   0x7   :  { %622 = vmatprep.subr.bf16.mxu1 %v712_v4  ;;  %v65_v25 = vld [vmem:[%s1031_s1 + $0x128] sm:$0xff]  ;;  %v51_v30 = vld [vmem:[%s1031_s1 + $0xb8] sm:$0xff]  ;;  %v597_v31 = vpack.c.bf16 %v33_v23, %v32_v21  ;;  %v34_v33 = vld [vmem:[%s1031_s1 + $0x30] sm:$0xff] }
   0x8   :  { %v626_v32 = vpack.c.bf16 %v65_v25, %v64_v24  ;;  %v599_v34 = vpack.c.bf16 %v51_v30, %v50_v29  ;;  %v35_v35 = vld [vmem:[%s1031_s1 + $0x38] sm:$0xff]  ;;  %v66_v36 = vld [vmem:[%s1031_s1 + $0x130] sm:$0xff]  ;;  %v52_v40 = vld [vmem:[%s1031_s1 + $0xc0] sm:$0xff] }
   0x9   :  { %594 = vmatpush3.bf16.msra.mxu0 %v593_v17  ;;  %v67_v37 = vld [vmem:[%s1031_s1 + $0x138] sm:$0xff]  ;;  %v53_v41 = vld [vmem:[%s1031_s1 + $0xc8] sm:$0xff]  ;;  %v601_v42 = vpack.c.bf16 %v35_v35, %v34_v33  ;;  %v36_v44 = vld [vmem:[%s1031_s1 + $0x40] sm:$0xff] }
   0xa   :  { %624 = vmatpush1.bf16.msra.mxu1 %v623_v18  ;;  %596 = vmatprep.subr.bf16.mxu0 %v595_v22  ;;  %v629_v43 = vpack.c.bf16 %v67_v37, %v66_v36  ;;  %v603_v45 = vpack.c.bf16 %v53_v41, %v52_v40  ;;  %v37_v46 = vld [vmem:[%s1031_s1 + $0x48] sm:$0xff]  ;;  %v68_v47 = vld [vmem:[%s1031_s1 + $0x140] sm:$0xff]  ;;  %v54_v50 = vld [vmem:[%s1031_s1 + $0xd0] sm:$0xff] }
   0xb   :  { %625 = vmatprep.subr.bf16.mxu1 %v712_v4  ;;  %v69_v48 = vld [vmem:[%s1031_s1 + $0x148] sm:$0xff]  ;;  %v55_v51 = vld [vmem:[%s1031_s1 + $0xd8] sm:$0xff]  ;;  %v605_v52 = vpack.c.bf16 %v37_v46, %v36_v44  ;;  %v38_v54 = vld [vmem:[%s1031_s1 + $0x50] sm:$0xff] }
   0xc   :  { %v632_v53 = vpack.c.bf16 %v69_v48, %v68_v47  ;;  %v27_v55 = vld [vmem:[%s1030_s0] sm:$0xff]  ;;  %v607_v56 = vpack.c.bf16 %v55_v51, %v54_v50  ;;  %v39_v57 = vld [vmem:[%s1031_s1 + $0x58] sm:$0xff]  ;;  %v70_v58 = vld [vmem:[%s1031_s1 + $0x150] sm:$0xff] }
   0xd   :  { %598 = vmatpush3.bf16.msra.mxu0 %v597_v31  ;;  %v71_v59 = vld [vmem:[%s1031_s1 + $0x158] sm:$0xff]  ;;  %v86_v60 = vcombine.high %v27_v55, %v27_v55  ;;  %v93_v61 = vrot.slane %v27_v55, %v92_v49  ;;  %v56_v62 = vld [vmem:[%s1031_s1 + $0xe0] sm:$0xff]  ;;  %v57_v63 = vld [vmem:[%s1031_s1 + $0xe8] sm:$0xff]  ;;  %v609_v2 = vpack.c.bf16 %v39_v57, %v38_v54 }
   0xe   :  { %627 = vmatpush1.bf16.msra.mxu1 %v626_v32  ;;  %600 = vmatprep.subr.bf16.mxu0 %v599_v34  ;;  %v635_v3 = vpack.c.bf16 %v71_v59, %v70_v58  ;;  %v40_v5 = vld [vmem:[%s1031_s1 + $0x60] sm:$0xff] }
   0xf   :  { %628 = vmatprep.subr.bf16.mxu1 %v712_v4  ;;  %v101_v0 = vcombine.high %v93_v61, %v93_v61  ;;  %v100_v1 = vrot.slane %v86_v60, %v92_v49 }
  0x11   :  { %602 = vmatpush3.bf16.msra.mxu0 %v601_v42 }
  0x12   :  { %630 = vmatpush1.bf16.msra.mxu1 %v629_v43  ;;  %604 = vmatprep.subr.bf16.mxu0 %v603_v45 }
  0x13   :  { %631 = vmatprep.subr.bf16.mxu1 %v712_v4 }
  0x15   :  { %606 = vmatpush3.bf16.msra.mxu0 %v605_v52 }
  0x16   :  { %633 = vmatpush1.bf16.msra.mxu1 %v632_v53 }
  0x17   :  { %12 = vsyncpa [#allocation3], 0  ;;  %608 = vmatprep.subr.bf16.mxu0 %v607_v56  ;;  %634 = vmatprep.subr.bf16.mxu1 %v712_v4  ;;  %v611_v6 = vpack.c.bf16 %v57_v63, %v56_v62  ;;  %v41_v7 = vld [vmem:[%s1031_s1 + $0x68] sm:$0xff]  ;;  %v72_v8 = vld [vmem:[%s1031_s1 + $0x160] sm:$0xff]  ;;  %v102_v10 = vcombine.high %v100_v1, %v100_v1  ;;  %v714_v46 = vmov 0.0   ;;  %vm715_vm1 = vmmov 0  }
  0x18   :  { %v73_v9 = vld [vmem:[%s1031_s1 + $0x168] sm:$0xff]  ;;  %v58_v11 = vld [vmem:[%s1031_s1 + $0xf0] sm:$0xff]  ;;  %v59_v12 = vld [vmem:[%s1031_s1 + $0xf8] sm:$0xff]  ;;  %173 = vmatprep.mubr.f32.mxu0 %v101_v0  ;;  %v613_v13 = vpack.c.bf16 %v41_v7, %v40_v5  ;;  %vm272_vm2 = vcmask 982016   ;;  %vm369_vm3 = vcmask 1043456   ;;  %vm365_vm4 = vcmask 687104  }
  0x19   :  { %460 = vmatprep.mubr.msk.f32.mxu1 %vm106_vm0, %v102_v10  ;;  %610 = vmatpush3.bf16.msra.mxu0 %v609_v2  ;;  %v638_v14 = vpack.c.bf16 %v73_v9, %v72_v8  ;;  %v42_v15 = vld [vmem:[%s1031_s1 + $0x70] sm:$0xff]  ;;  %v615_v16 = vpack.c.bf16 %v59_v12, %v58_v11  ;;  %v43_v17 = vld [vmem:[%s1031_s1 + $0x78] sm:$0xff]  ;;  %v76_v22 = vld [vmem:[%s1031_s1 + $0x180] sm:$0xff]  ;;  %vm443_vm5 = vcmask 74752  }
  0x1a   :  { %636 = vmatpush1.bf16.msra.mxu1 %v635_v3  ;;  %612 = vmatprep.subr.bf16.mxu0 %v611_v6  ;;  %v74_v18 = vld [vmem:[%s1031_s1 + $0x170] sm:$0xff]  ;;  %v75_v19 = vld [vmem:[%s1031_s1 + $0x178] sm:$0xff]  ;;  %v617_v20 = vpack.c.bf16 %v43_v17, %v42_v15  ;;  %v77_v23 = vld [vmem:[%s1031_s1 + $0x188] sm:$0xff]  ;;  %s716_s1 = smov [#allocation2]  }
  0x1b   :  { %637 = vmatprep.subr.bf16.mxu1 %v712_v4  ;;  %v641_v21 = vpack.c.bf16 %v75_v19, %v74_v18  ;;  %v250_v24 = vld [vmem:[%s1033_s3] sm:$0xff]  ;;  %v251_v25 = vld [vmem:[%s1033_s3 + $0x8] sm:$0xff]  ;;  %v644_v26 = vpack.c.bf16 %v77_v23, %v76_v22  ;;  %v252_v28 = vld [vmem:[%s1033_s3 + $0x10] sm:$0xff]  ;;  %s451_s15 = sshll.u32 %s716_s1, 4  ;;  %s452_s15 = int_to_ptr.vmem [resolvable:$true] %s451_s15 }
  0x1c   :  { %v647_v27 = vpack.c.bf16 %v251_v25, %v250_v24  ;;  %v253_v29 = vld [vmem:[%s1033_s3 + $0x18] sm:$0xff]  ;;  %v254_v31 = vld [vmem:[%s1033_s3 + $0x20] sm:$0xff]  ;;  %v255_v32 = vld [vmem:[%s1033_s3 + $0x28] sm:$0xff]  ;;  %p693_p1 = scmp.lt.s32.totalorder %s452_s15, %s452_s15 }
  0x1d   :  { %614 = vmatpush3.bf16.msra.mxu0 %v613_v13  ;;  %v650_v30 = vpack.c.bf16 %v253_v29, %v252_v28  ;;  %v653_v33 = vpack.c.bf16 %v255_v32, %v254_v31  ;;  %v256_v34 = vld [vmem:[%s1033_s3 + $0x30] sm:$0xff]  ;;  %v257_v35 = vld [vmem:[%s1033_s3 + $0x38] sm:$0xff]  ;;  %v258_v37 = vld [vmem:[%s1033_s3 + $0x40] sm:$0xff] }
  0x1e   :  { %639 = vmatpush1.bf16.msra.mxu1 %v638_v14  ;;  %616 = vmatprep.subr.bf16.mxu0 %v615_v16  ;;  %v656_v36 = vpack.c.bf16 %v257_v35, %v256_v34  ;;  %v259_v38 = vld [vmem:[%s1033_s3 + $0x48] sm:$0xff]  ;;  %v260_v40 = vld [vmem:[%s1033_s3 + $0x50] sm:$0xff]  ;;  %v261_v41 = vld [vmem:[%s1033_s3 + $0x58] sm:$0xff] }
  0x1f   :  { %640 = vmatprep.subr.bf16.mxu1 %v712_v4  ;;  %v659_v39 = vpack.c.bf16 %v259_v38, %v258_v37  ;;  %v662_v42 = vpack.c.bf16 %v261_v41, %v260_v40  ;;  %v262_v43 = vld [vmem:[%s1033_s3 + $0x60] sm:$0xff]  ;;  %v263_v44 = vld [vmem:[%s1033_s3 + $0x68] sm:$0xff]  ;;  %v264_v47 = vld [vmem:[%s1033_s3 + $0x70] sm:$0xff] }
  0x20   :  { %v665_v45 = vpack.c.bf16 %v263_v44, %v262_v43  ;;  %v347_v48 = vld [vmem:[%s1035_s5] sm:$0xff]  ;;  %v348_v49 = vld [vmem:[%s1035_s5 + $0x8] sm:$0xff]  ;;  %v349_v50 = vld [vmem:[%s1035_s5 + $0x10] sm:$0xff] }
  0x21   :  { %618 = vmatpush3.bf16.msra.mxu0 %v617_v20  ;;  %v668_v51 = vpack.c.bf16 %v348_v49, %v347_v48  ;;  %v350_v52 = vld [vmem:[%s1035_s5 + $0x18] sm:$0xff]  ;;  %v351_v54 = vld [vmem:[%s1035_s5 + $0x20] sm:$0xff]  ;;  %v352_v55 = vld [vmem:[%s1035_s5 + $0x28] sm:$0xff] }
  0x22   :  { %642 = vmatpush1.bf16.msra.mxu1 %v641_v21  ;;  %646 = vmatprep.subr.bf16.mxu0 %v712_v4  ;;  %v671_v53 = vpack.c.bf16 %v350_v52, %v349_v50  ;;  %v674_v56 = vpack.c.bf16 %v352_v55, %v351_v54  ;;  %v353_v57 = vld [vmem:[%s1035_s5 + $0x30] sm:$0xff]  ;;  %v354_v58 = vld [vmem:[%s1035_s5 + $0x38] sm:$0xff]  ;;  %v459_v62 = vld [vmem:[%s1032_s2] ss:$0 sm:$0xff] }
  0x23   :  { %643 = vmatprep.subr.bf16.mxu1 %v712_v4  ;;  %v677_v59 = vpack.c.bf16 %v354_v58, %v353_v57  ;;  %v355_v6 = vld [vmem:[%s1035_s5 + $0x40] sm:$0xff]  ;;  %v357_v8 = vld [vmem:[%s1035_s5 + $0x50] sm:$0xf] }
  0x24   :  { %174 = vmatmul.mubr.f32.vlgmr.msra.gmra.mrb[0].mxu0 %v93_v61  ;;  %v461_v9 = vld [vmem:[%s1034_s4] ss:$0 sm:$0xff] }
  0x25   :  { %648 = vmatpush3.bf16.msra.mxu0 %v647_v27  ;;  %559 = vmatprep.mubr.msk.f32.mxu0 %vm715_vm1, %v714_v46  ;;  %v463_v14 = vld [vmem:[%s1036_s6] ss:$0 sm:$0xff] }
  0x26   :  { %645 = vmatpush1.bf16.msra.mxu1 %v644_v26  ;;  %649 = vmatprep.subr.bf16.mxu0 %v712_v4 }
  0x27   :  { %667 = vmatprep.subr.bf16.mxu1 %v712_v4 }
  0x29   :  { %244 = vmatmul.mubr.f32.vlgmr.msra.gmra.mrb[0].mxu1 %v100_v1  ;;  %651 = vmatpush3.bf16.msra.mxu0 %v650_v30 }
  0x2a   :  { %652 = vmatprep.subr.bf16.mxu0 %v712_v4  ;;  %584 = vmatprep.mubr.msk.f32.mxu1 %vm715_vm1, %v714_v46 }
  0x2b   :  { %669 = vmatpush3.bf16.msra.mxu1 %v668_v51 }
  0x2c   :  { %670 = vmatprep.subr.bf16.mxu1 %v712_v4 }
  0x2d   :  { %654 = vmatpush3.bf16.msra.mxu0 %v653_v33 }
  0x2e   :  { %655 = vmatprep.subr.bf16.mxu0 %v712_v4 }
  0x2f   :  { %672 = vmatpush3.bf16.msra.mxu1 %v671_v53 }
  0x30   :  { %673 = vmatprep.subr.bf16.mxu1 %v712_v4 }
  0x31   :  { %657 = vmatpush3.bf16.msra.mxu0 %v656_v36 }
  0x32   :  { %658 = vmatprep.subr.bf16.mxu0 %v712_v4 }
  0x33   :  { %675 = vmatpush3.bf16.msra.mxu1 %v674_v56 }
  0x34   :  { %676 = vmatprep.subr.bf16.mxu1 %v712_v4 }
  0x35   :  { %660 = vmatpush3.bf16.msra.mxu0 %v659_v39 }
  0x36   :  { %661 = vmatprep.subr.bf16.mxu0 %v712_v4 }
  0x37   :  { %678 = vmatpush3.bf16.msra.mxu1 %v677_v59 }
  0x38   :  { %679 = vmatprep.subr.bf16.mxu1 %v712_v4 }
  0x39   :  { %663 = vmatpush3.bf16.msra.mxu0 %v662_v42 }
  0x3a   :  { %664 = vmatprep.subr.bf16.mxu0 %v712_v4  ;;  %v356_v4 = vld [vmem:[%s1035_s5 + $0x48] sm:$0xff]  ;;  %s688_s5 = scalar_lea.vmem %s452_s15, 32 }
  0x3b   :  { %v680_v7 = vpack.c.bf16 %v356_v4, %v355_v6  ;;  %p689_p0 = scmp.ne.s32.totalorder %s452_s15, %s688_s5  ;;  %p694_p2 = scmp.lt.s32.totalorder %s688_s5, %s688_s5 }
  0x3d   :  { %666 = vmatpush3.bf16.msra.mxu0 %v665_v45  ;;  %681 = vmatpush3.bf16.msra.mxu1 %v680_v7  ;;  %p695_p3 = por %p694_p2, %p693_p1 }
  0x3e   :  { %557 = vmatprep.subr.mxu0 %v714_v46  ;;  %582 = vmatprep.subr.mxu1 %v714_v46 }
  0x3f   :  { %p696_p4 = pnand %p695_p3, %p689_p0 }
  0x41   :  { %558 = vmatpush3.msra.mxu0 %v264_v47  ;;  %583 = vmatpush3.msk.msra.mxu1 %vm369_vm3, %v357_v8 }
  0xf7   :  { %v498_v60 = vpop.f32.mrb[0].mxu0 }
  0xf8   :  { %v499_v61 = vpop.f32.mrb[1].mxu0 }
  0xf9   :  { %v500_v63 = vadd.f32 %v499_v61, %v498_v60 }
  0xfb   :  { %v176_v0 = vadd.f32 %v500_v63, %v459_v62 }
  0xfc   :  { %v245_v1 = vpop.f32.mrb[0].mxu1 }
  0xfd   :  { %v247_v2 = vpop.f32.mrb[1].mxu1  ;;  %v246_v3 = vadd.f32 %v245_v1, %v176_v0 }
  0xff   :  { %v249_v5 = vmax.f32 %v246_v3, 0.0 }
 0x101   :  { %560 = vmatmul.mubr.msk.f32.vlgmr.msra.gmra.mrb[2].mxu0 %vm272_vm2, %v249_v5 }
 0x1d4   :  { %v342_v10 = vpop.f32.mrb[2].mxu0 }
 0x1d5   :  { %v343_v11 = vadd.f32 %v461_v9, %v342_v10  ;;  %v561_v12 = vpop.f32.mrb[3].mxu0 }
 0x1d7   :  { %v346_v13 = vmax.f32 %v343_v11, 0.0 }
 0x1d9   :  { %585 = vmatmul.mubr.msk.f32.vlgmr.msra.gmra.mrb[2].mxu1 %vm365_vm4, %v346_v13 }
 0x2ac   :  { %v439_v15 = vpop.f32.mrb[2].mxu1 }
 0x2ad   :  { %v440_v16 = vadd.f32 %v463_v14, %v439_v15  ;;  %v586_v17 = vpop.f32.mrb[3].mxu1 }
 0x2af   :  { %444 = vst.msk [vmem:[#allocation2] sm:$0x3] %vm443_vm5, %v440_v16 }
 0x2b0   :  { %699 = shalt.err (!%p696_p4)
}
 0x2b1   :  { %s700_s17 = scalar_lea.hbm %s1037_s7, 32 }
 0x2b2   :  { %p701_p5 = scmp.ne.s32.totalorder %s1037_s7, %s700_s17  ;;  %p704_p6 = scmp.lt.u32.totalorder %s700_s17, %s1037_s7 }
 0x2b4   :  { %p706_p7 = pnand %p704_p6, %p701_p5 }
 0x2b6   :  { %709 = shalt.err (!%p706_p7)
}
 0x2b7   :  { %454 = dma.vmem_to_hbm [thread:$0]  %s452_s15, 32, %s1037_s7, [#allocation3]  }
 0x2b8   :  { %710 = dma.done.wait [#allocation3], 32  }
 0x2b9   :  { %711 = vsyncadd [#allocation3], 4294967264 }
 0x2ba   :  { %458 = vsyncpa [#allocation3], 1 }

</bundles_post_ra>
